<compile_context>
chip_gen: v7x
topology: tpu7x:2x2x1
jax: 0.10.0
libtpu: 0.0.40
codegen_flags: <defaults>
</compile_context>

<pallas_src>
import functools

import jax
import jax.numpy as jnp
import numpy as np
from jax.experimental import pallas as pl
from jax.experimental.pallas import tpu as pltpu


def _round_up(x, m):
    return ((x + m - 1) // m) * m


def _conv_out(n, k, s):
    return (n - k) // s + 1


# ---------------------------------------------------------------------------
# Fused DQN kernel helpers.
# ---------------------------------------------------------------------------
def _tap_rows(src_ref, start, count, stride):
    """Read `count` rows starting at `start` with row-stride `stride` (static)."""
    if stride == 1:
        return src_ref[pl.ds(start, count), :]
    return src_ref[pl.ds(start, count, stride=stride), :]


def _conv_row(src_ref, w_ref, ic, iw_src, k, s, row, ow):
    """One VALID-conv output row: returns (ow, oc) f32 pre-bias accumulation.

    src_ref: (ih*iw, ic) f32 scratch holding the previous activation (h-major rows).
    w_ref:   (k*k*ic, oc) bf16 weights in (i, j, c) tap order.
    """
    acc = None
    for i in range(k):
        for j in range(k):
            start = (s * row + i) * iw_src + j
            rows = _tap_rows(src_ref, start, ow, s).astype(jnp.bfloat16)
            t = i * k + j
            d = jnp.dot(rows, w_ref[t * ic:(t + 1) * ic, :],
                        preferred_element_type=jnp.float32)
            acc = d if acc is None else acc + d
    return acc


def _dqn_fused_kernel(p1_ref, w1_ref, b1_ref, w2_ref, b2_ref, w3_ref, b3_ref,
                      wf1_ref, bf1_ref, wf2_ref, bf2_ref, o_ref,
                      h1_ref, h2_ref, *,
                      ow1, k2, s2, oh2, ow2, k3, s3, oh3, ow3):
    oc1 = w1_ref.shape[1]          # conv1 out channels (== conv2 in channels)
    oc2 = w2_ref.shape[1]          # conv2 out channels (== conv3 in channels)
    oc3 = w3_ref.shape[1]          # conv3 out channels

    # --- conv1: patches pre-gathered in the wrapper -> one GEMM, result stays in VMEM.
    a1 = jnp.dot(p1_ref[0], w1_ref[...], preferred_element_type=jnp.float32)
    h1_ref[...] = jnp.maximum(a1 + b1_ref[...], 0.0)                 # (oh1*ow1, oc1) f32

    # --- conv2: im2col in VMEM via strided row reads of h1.
    for r in range(oh2):
        acc = _conv_row(h1_ref, w2_ref, oc1, ow1, k2, s2, r, ow2)     # (ow2, oc2) f32
        h2_ref[r * ow2:(r + 1) * ow2, :] = jnp.maximum(acc + b2_ref[...], 0.0)

    # --- conv3 (+ fc1 accumulation fused over spatial positions, NHWC flatten order;
    #     fc1 weight rows were pre-permuted to match PyTorch's NCHW flatten).
    fc_acc = None
    for r in range(oh3):
        acc = _conv_row(h2_ref, w3_ref, oc2, ow2, k3, s3, r, ow3)     # (ow3, oc3) f32
        h3 = jnp.maximum(acc + b3_ref[...], 0.0).astype(jnp.bfloat16)
        for c in range(ow3):
            p = r * ow3 + c
            d = jnp.dot(h3[c:c + 1, :], wf1_ref[p * oc3:(p + 1) * oc3, :],
                        preferred_element_type=jnp.float32)
            fc_acc = d if fc_acc is None else fc_acc + d              # (1, 512) f32

    # --- FC head.
    hf = jnp.maximum(fc_acc + bf1_ref[...], 0.0).astype(jnp.bfloat16)  # (1, 512)
    q = jnp.dot(hf, wf2_ref[...], preferred_element_type=jnp.float32) + bf2_ref[...]
    o_ref[0] = q.astype(o_ref.dtype)                                   # (1, Apad)


# ---------------------------------------------------------------------------
# conv1 patch extraction (XLA glue in the wrapper; tiny).  Feature order (i, j, c).
# ---------------------------------------------------------------------------
def _im2col_nhwc(x, k, s):
    """x: (B, H, W, C) -> (B, OH*OW, k*k*C), feature order (kh, kw, C)."""
    B, H, W, C = x.shape
    OH = _conv_out(H, k, s)
    OW = _conv_out(W, k, s)
    cols = []
    for i in range(k):
        for j in range(k):
            cols.append(x[:, i:i + s * OH:s, j:j + s * OW:s, :])   # (B, OH, OW, C)
    patches = jnp.stack(cols, axis=3)                              # (B, OH, OW, k*k, C)
    return patches.reshape(B, OH * OW, k * k * C), OH, OW


# ---------------------------------------------------------------------------
# DQN parameters (deterministic init, PyTorch layout) + one-time kernel prep.
# ---------------------------------------------------------------------------
def init_dqn_params(key, input_shape, num_actions):
    C, H, W = input_shape
    h1, w1 = _conv_out(H, 8, 4), _conv_out(W, 8, 4)
    h2, w2 = _conv_out(h1, 4, 2), _conv_out(w1, 4, 2)
    h3, w3 = _conv_out(h2, 3, 1), _conv_out(w2, 3, 1)
    feat = 64 * h3 * w3

    def uniform(key, shape, fan_in):
        bound = 1.0 / np.sqrt(fan_in)
        return jax.random.uniform(key, shape, jnp.float32, -bound, bound)

    ks = jax.random.split(key, 10)
    return {
        "conv1_w": uniform(ks[0], (32, C, 8, 8), C * 8 * 8),
        "conv1_b": uniform(ks[1], (32,), C * 8 * 8),
        "conv2_w": uniform(ks[2], (64, 32, 4, 4), 32 * 4 * 4),
        "conv2_b": uniform(ks[3], (64,), 32 * 4 * 4),
        "conv3_w": uniform(ks[4], (64, 64, 3, 3), 64 * 3 * 3),
        "conv3_b": uniform(ks[5], (64,), 64 * 3 * 3),
        "fc1_w": uniform(ks[6], (512, feat), feat),     # PyTorch (out, in)
        "fc1_b": uniform(ks[7], (512,), feat),
        "fc2_w": uniform(ks[8], (num_actions, 512), 512),
        "fc2_b": uniform(ks[9], (num_actions,), 512),
    }


def prepare_dqn_params(params, input_shape):
    """One-time: GEMM layout (K, N), bf16 weights, f32 (1, N) biases, fc2 lane-padded."""
    C, H, W = input_shape
    h1, w1 = _conv_out(H, 8, 4), _conv_out(W, 8, 4)
    h2, w2 = _conv_out(h1, 4, 2), _conv_out(w1, 4, 2)
    h3, w3 = _conv_out(h2, 3, 1), _conv_out(w2, 3, 1)

    def conv_w(w):                                   # (OC, IC, KH, KW) -> (KH*KW*IC, OC)
        OC, Ci, KH, KW = w.shape
        return jnp.transpose(w, (2, 3, 1, 0)).reshape(KH * KW * Ci, OC).astype(jnp.bfloat16)

    def conv_b(b):
        return b.reshape(1, -1).astype(jnp.float32)

    # fc1 rows: PyTorch flatten is (c, h, w); the kernel produces (h, w, c) order.
    fc1_w = params["fc1_w"].reshape(512, 64, h3, w3)
    fc1_w = jnp.transpose(fc1_w, (2, 3, 1, 0)).reshape(h3 * w3 * 64, 512)

    A = params["fc2_w"].shape[0]
    Ap = _round_up(A, 128)
    fc2_w = jnp.pad(params["fc2_w"].T, ((0, 0), (0, Ap - A)))
    fc2_b = jnp.pad(params["fc2_b"], (0, Ap - A)).reshape(1, Ap)

    return {
        "c1_w": conv_w(params["conv1_w"]), "c1_b": conv_b(params["conv1_b"]),
        "c2_w": conv_w(params["conv2_w"]), "c2_b": conv_b(params["conv2_b"]),
        "c3_w": conv_w(params["conv3_w"]), "c3_b": conv_b(params["conv3_b"]),
        "fc1_w": fc1_w.astype(jnp.bfloat16),
        "fc1_b": params["fc1_b"].reshape(1, 512).astype(jnp.float32),
        "fc2_w": fc2_w.astype(jnp.bfloat16),
        "fc2_b": fc2_b.astype(jnp.float32),
    }


# ---------------------------------------------------------------------------
# Forward pass: one fused pallas_call, grid over batch.
# ---------------------------------------------------------------------------
def dqn_forward(prep, x, num_actions):
    """x: (B, C, H, W) float32 (PyTorch layout) -> (B, num_actions) float32."""
    B, C, H, W = x.shape
    oh1, ow1 = _conv_out(H, 8, 4), _conv_out(W, 8, 4)
    oh2, ow2 = _conv_out(oh1, 4, 2), _conv_out(ow1, 4, 2)
    oh3, ow3 = _conv_out(oh2, 3, 1), _conv_out(ow2, 3, 1)

    c1_oc = prep["c1_w"].shape[1]
    c2_oc = prep["c2_w"].shape[1]
    c3_oc = prep["c3_w"].shape[1]
    Apad = prep["fc2_w"].shape[1]
    assert prep["fc1_w"].shape[0] == oh3 * ow3 * c3_oc

    xn = jnp.transpose(x, (0, 2, 3, 1)).astype(jnp.bfloat16)      # NHWC once, bf16
    p1, _, _ = _im2col_nhwc(xn, 8, 4)                             # (B, oh1*ow1, 8*8*C)
    n1, kkc = p1.shape[1], p1.shape[2]

    kern = functools.partial(
        _dqn_fused_kernel,
        ow1=ow1, k2=4, s2=2, oh2=oh2, ow2=ow2, k3=3, s3=1, oh3=oh3, ow3=ow3)

    flops = 2 * B * (n1 * kkc * c1_oc
                     + (oh2 * ow2) * (16 * c1_oc) * c2_oc
                     + (oh3 * ow3) * (9 * c2_oc) * c3_oc
                     + (oh3 * ow3 * c3_oc) * 512
                     + 512 * Apad)
    w_bytes = sum(int(prep[k].size) * prep[k].dtype.itemsize
                  for k in ("c1_w", "c2_w", "c3_w", "fc1_w", "fc2_w",
                            "c1_b", "c2_b", "c3_b", "fc1_b", "fc2_b"))
    bytes_accessed = int(p1.size) * 2 + w_bytes + B * Apad * 4

    out = pl.pallas_call(
        kern,
        out_shape=jax.ShapeDtypeStruct((B, 1, Apad), jnp.float32),
        grid=(B,),
        in_specs=[
            pl.BlockSpec((1, n1, kkc), lambda b: (b, 0, 0)),        # per-image patches
            pl.BlockSpec(prep["c1_w"].shape, lambda b: (0, 0)),     # resident weights
            pl.BlockSpec(prep["c1_b"].shape, lambda b: (0, 0)),
            pl.BlockSpec(prep["c2_w"].shape, lambda b: (0, 0)),
            pl.BlockSpec(prep["c2_b"].shape, lambda b: (0, 0)),
            pl.BlockSpec(prep["c3_w"].shape, lambda b: (0, 0)),
            pl.BlockSpec(prep["c3_b"].shape, lambda b: (0, 0)),
            pl.BlockSpec(prep["fc1_w"].shape, lambda b: (0, 0)),
            pl.BlockSpec(prep["fc1_b"].shape, lambda b: (0, 0)),
            pl.BlockSpec(prep["fc2_w"].shape, lambda b: (0, 0)),
            pl.BlockSpec(prep["fc2_b"].shape, lambda b: (0, 0)),
        ],
        out_specs=pl.BlockSpec((1, 1, Apad), lambda b: (b, 0, 0)),
        scratch_shapes=[
            pltpu.VMEM((oh1 * ow1, c1_oc), jnp.float32),            # conv1 activation
            pltpu.VMEM((oh2 * ow2, c2_oc), jnp.float32),            # conv2 activation
        ],
        compiler_params=pltpu.CompilerParams(
            dimension_semantics=("parallel",),
            vmem_limit_bytes=32 << 20),
        cost_estimate=pl.CostEstimate(
            flops=flops, transcendentals=0, bytes_accessed=bytes_accessed),
    )(p1, prep["c1_w"], prep["c1_b"], prep["c2_w"], prep["c2_b"],
      prep["c3_w"], prep["c3_b"], prep["fc1_w"], prep["fc1_b"],
      prep["fc2_w"], prep["fc2_b"])

    return out[:, 0, :num_actions]


# ---------------------------------------------------------------------------
# Pure-JAX f32 reference (XLA conv, PyTorch layout) for correctness checking.
# ---------------------------------------------------------------------------
def dqn_forward_ref(params, x):
    def conv(x, w, b, s):
        y = jax.lax.conv_general_dilated(
            x, w, window_strides=(s, s), padding="VALID",
            dimension_numbers=("NCHW", "OIHW", "NCHW"))
        return jnp.maximum(y + b[None, :, None, None], 0.0)

    x = conv(x, params["conv1_w"], params["conv1_b"], 4)
    x = conv(x, params["conv2_w"], params["conv2_b"], 2)
    x = conv(x, params["conv3_w"], params["conv3_b"], 1)
    x = x.reshape(x.shape[0], -1)
    x = jnp.maximum(x @ params["fc1_w"].T + params["fc1_b"], 0.0)
    x = x @ params["fc2_w"].T + params["fc2_b"]
    return x


if __name__ == "__main__":
    # Small shapes: batch=2, channels=4, spatial=36x36 (smallest surviving the
    # 8/4 -> 4/2 -> 3/1 conv stack), num_actions=6.
    B, C, H, W = 2, 4, 36, 36
    num_actions = 6

    key = jax.random.PRNGKey(0)
    k_params, k_x = jax.random.split(key)
    torch_params = init_dqn_params(k_params, (C, H, W), num_actions)
    prep = prepare_dqn_params(torch_params, (C, H, W))
    x = jax.random.normal(k_x, (B, C, H, W), jnp.float32)

    fwd = jax.jit(dqn_forward, static_argnums=2)
    out = jax.block_until_ready(fwd(prep, x, num_actions))

    ref = jax.block_until_ready(dqn_forward_ref(torch_params, x))
    assert out.shape == (B, num_actions)
    # bf16 operands / f32 accumulation -> loose tolerance vs f32 reference.
    np.testing.assert_allclose(np.asarray(out), np.asarray(ref), rtol=5e-2, atol=5e-2)

    print("KERNEL_OK")
</pallas_src>

<mosaic_0001>
module attributes {stable_mosaic.version = 11 : i64} {
  func.func @_dqn_fused_kernel(%arg0: i32, %arg1: memref<1x64x256xbf16, #tpu.memory_space<vmem>>, %arg2: memref<256x32xbf16, #tpu.memory_space<vmem>>, %arg3: memref<1x32xf32, #tpu.memory_space<vmem>>, %arg4: memref<512x64xbf16, #tpu.memory_space<vmem>>, %arg5: memref<1x64xf32, #tpu.memory_space<vmem>>, %arg6: memref<576x64xbf16, #tpu.memory_space<vmem>>, %arg7: memref<1x64xf32, #tpu.memory_space<vmem>>, %arg8: memref<64x512xbf16, #tpu.memory_space<vmem>>, %arg9: memref<1x512xf32, #tpu.memory_space<vmem>>, %arg10: memref<512x128xbf16, #tpu.memory_space<vmem>>, %arg11: memref<1x128xf32, #tpu.memory_space<vmem>>, %arg12: memref<1x1x128xf32, #tpu.memory_space<vmem>>, %arg13: memref<64x32xf32, #tpu.memory_space<vmem>>, %arg14: memref<9x64xf32, #tpu.memory_space<vmem>>) attributes {dimension_semantics = [#tpu.dimension_semantics<parallel>], iteration_bounds = array<i64: 2>, scalar_prefetch = 0 : i64, scratch_operands = 2 : i64, tpu.core_type = #tpu.core_type<tc>, window_params = [{transform_indices = @transform_0, window_bounds = array<i64: 1, 64, 256>}, {pipeline_mode = #tpu.pipeline_mode<synchronous>, transform_indices = @transform_1, window_bounds = array<i64: 256, 32>}, {pipeline_mode = #tpu.pipeline_mode<synchronous>, transform_indices = @transform_2, window_bounds = array<i64: 1, 32>}, {pipeline_mode = #tpu.pipeline_mode<synchronous>, transform_indices = @transform_3, window_bounds = array<i64: 512, 64>}, {pipeline_mode = #tpu.pipeline_mode<synchronous>, transform_indices = @transform_4, window_bounds = array<i64: 1, 64>}, {pipeline_mode = #tpu.pipeline_mode<synchronous>, transform_indices = @transform_5, window_bounds = array<i64: 576, 64>}, {pipeline_mode = #tpu.pipeline_mode<synchronous>, transform_indices = @transform_6, window_bounds = array<i64: 1, 64>}, {pipeline_mode = #tpu.pipeline_mode<synchronous>, transform_indices = @transform_7, window_bounds = array<i64: 64, 512>}, {pipeline_mode = #tpu.pipeline_mode<synchronous>, transform_indices = @transform_8, window_bounds = array<i64: 1, 512>}, {pipeline_mode = #tpu.pipeline_mode<synchronous>, transform_indices = @transform_9, window_bounds = array<i64: 512, 128>}, {pipeline_mode = #tpu.pipeline_mode<synchronous>, transform_indices = @transform_10, window_bounds = array<i64: 1, 128>}, {transform_indices = @transform_11, window_bounds = array<i64: 1, 1, 128>}]} {
    %c0 = arith.constant 0 : index
    %c0_0 = arith.constant 0 : index
    %c0_1 = arith.constant 0 : index
    %0 = vector.load %arg1[%c0, %c0_0, %c0_1] : memref<1x64x256xbf16, #tpu.memory_space<vmem>>, vector<1x64x256xbf16>
    %1 = vector.shape_cast %0 : vector<1x64x256xbf16> to vector<64x256xbf16>
    %c0_2 = arith.constant 0 : index
    %c0_3 = arith.constant 0 : index
    %2 = vector.load %arg2[%c0_2, %c0_3] : memref<256x32xbf16, #tpu.memory_space<vmem>>, vector<256x32xbf16>
    %cst = arith.constant dense<0.000000e+00> : vector<64x32xf32>
    %3 = tpu.matmul %1, %2, %cst {dimension_numbers = #tpu.dot_dimension_numbers<[1], [0], [0], [1], [0, 0, 1, 1], [], []>} : vector<64x256xbf16>, vector<256x32xbf16>, vector<64x32xf32> -> vector<64x32xf32>
    %c0_4 = arith.constant 0 : index
    %c0_5 = arith.constant 0 : index
    %4 = vector.load %arg3[%c0_4, %c0_5] : memref<1x32xf32, #tpu.memory_space<vmem>>, vector<1x32xf32>
    %5 = vector.broadcast %4 : vector<1x32xf32> to vector<64x32xf32>
    %6 = arith.addf %3, %5 : vector<64x32xf32>
    %cst_6 = arith.constant 0.000000e+00 : f32
    %7 = vector.broadcast %cst_6 : f32 to vector<64x32xf32>
    %8 = arith.maximumf %6, %7 : vector<64x32xf32>
    %c0_7 = arith.constant 0 : index
    %c0_8 = arith.constant 0 : index
    %9 = vector.load %arg13[%c0_7, %c0_8] : memref<64x32xf32, #tpu.memory_space<vmem>>, vector<64x32xf32>
    tpu.vector_store %arg13[%c0_7, %c0_8], %8 {strides = array<i32>} : memref<64x32xf32, #tpu.memory_space<vmem>>, vector<64x32xf32>,
    %c0_9 = arith.constant 0 : index
    %c0_10 = arith.constant 0 : index
    %10 = tpu.strided_load %arg13[%c0_9, %c0_10] {strides = array<i32: 2, 1>} : memref<64x32xf32, #tpu.memory_space<vmem>>, vector<3x32xf32>
    %11 = arith.truncf %10 : vector<3x32xf32> to vector<3x32xbf16>
    %c0_11 = arith.constant 0 : index
    %c0_12 = arith.constant 0 : index
    %12 = vector.load %arg4[%c0_11, %c0_12] : memref<512x64xbf16, #tpu.memory_space<vmem>>, vector<32x64xbf16>
    %cst_13 = arith.constant dense<0.000000e+00> : vector<3x64xf32>
    %13 = tpu.matmul %11, %12, %cst_13 {dimension_numbers = #tpu.dot_dimension_numbers<[1], [0], [0], [1], [0, 0, 1, 1], [], []>} : vector<3x32xbf16>, vector<32x64xbf16>, vector<3x64xf32> -> vector<3x64xf32>
    %c1 = arith.constant 1 : index
    %c0_14 = arith.constant 0 : index
    %14 = tpu.strided_load %arg13[%c1, %c0_14] {strides = array<i32: 2, 1>} : memref<64x32xf32, #tpu.memory_space<vmem>>, vector<3x32xf32>
    %15 = arith.truncf %14 : vector<3x32xf32> to vector<3x32xbf16>
    %c32 = arith.constant 32 : index
    %c0_15 = arith.constant 0 : index
    %16 = vector.load %arg4[%c32, %c0_15] : memref<512x64xbf16, #tpu.memory_space<vmem>>, vector<32x64xbf16>
    %cst_16 = arith.constant dense<0.000000e+00> : vector<3x64xf32>
    %17 = tpu.matmul %15, %16, %cst_16 {dimension_numbers = #tpu.dot_dimension_numbers<[1], [0], [0], [1], [0, 0, 1, 1], [], []>} : vector<3x32xbf16>, vector<32x64xbf16>, vector<3x64xf32> -> vector<3x64xf32>
    %18 = arith.addf %13, %17 : vector<3x64xf32>
    %c2 = arith.constant 2 : index
    %c0_17 = arith.constant 0 : index
    %19 = tpu.strided_load %arg13[%c2, %c0_17] {strides = array<i32: 2, 1>} : memref<64x32xf32, #tpu.memory_space<vmem>>, vector<3x32xf32>
    %20 = arith.truncf %19 : vector<3x32xf32> to vector<3x32xbf16>
    %c64 = arith.constant 64 : index
    %c0_18 = arith.constant 0 : index
    %21 = vector.load %arg4[%c64, %c0_18] : memref<512x64xbf16, #tpu.memory_space<vmem>>, vector<32x64xbf16>
    %cst_19 = arith.constant dense<0.000000e+00> : vector<3x64xf32>
    %22 = tpu.matmul %20, %21, %cst_19 {dimension_numbers = #tpu.dot_dimension_numbers<[1], [0], [0], [1], [0, 0, 1, 1], [], []>} : vector<3x32xbf16>, vector<32x64xbf16>, vector<3x64xf32> -> vector<3x64xf32>
    %23 = arith.addf %18, %22 : vector<3x64xf32>
    %c3 = arith.constant 3 : index
    %c0_20 = arith.constant 0 : index
    %24 = tpu.strided_load %arg13[%c3, %c0_20] {strides = array<i32: 2, 1>} : memref<64x32xf32, #tpu.memory_space<vmem>>, vector<3x32xf32>
    %25 = arith.truncf %24 : vector<3x32xf32> to vector<3x32xbf16>
    %c96 = arith.constant 96 : index
    %c0_21 = arith.constant 0 : index
    %26 = vector.load %arg4[%c96, %c0_21] : memref<512x64xbf16, #tpu.memory_space<vmem>>, vector<32x64xbf16>
    %cst_22 = arith.constant dense<0.000000e+00> : vector<3x64xf32>
    %27 = tpu.matmul %25, %26, %cst_22 {dimension_numbers = #tpu.dot_dimension_numbers<[1], [0], [0], [1], [0, 0, 1, 1], [], []>} : vector<3x32xbf16>, vector<32x64xbf16>, vector<3x64xf32> -> vector<3x64xf32>
    %28 = arith.addf %23, %27 : vector<3x64xf32>
    %c8 = arith.constant 8 : index
    %c0_23 = arith.constant 0 : index
    %29 = tpu.strided_load %arg13[%c8, %c0_23] {strides = array<i32: 2, 1>} : memref<64x32xf32, #tpu.memory_space<vmem>>, vector<3x32xf32>
    %30 = arith.truncf %29 : vector<3x32xf32> to vector<3x32xbf16>
    %c128 = arith.constant 128 : index
    %c0_24 = arith.constant 0 : index
    %31 = vector.load %arg4[%c128, %c0_24] : memref<512x64xbf16, #tpu.memory_space<vmem>>, vector<32x64xbf16>
    %cst_25 = arith.constant dense<0.000000e+00> : vector<3x64xf32>
    %32 = tpu.matmul %30, %31, %cst_25 {dimension_numbers = #tpu.dot_dimension_numbers<[1], [0], [0], [1], [0, 0, 1, 1], [], []>} : vector<3x32xbf16>, vector<32x64xbf16>, vector<3x64xf32> -> vector<3x64xf32>
    %33 = arith.addf %28, %32 : vector<3x64xf32>
    %c9 = arith.constant 9 : index
    %c0_26 = arith.constant 0 : index
    %34 = tpu.strided_load %arg13[%c9, %c0_26] {strides = array<i32: 2, 1>} : memref<64x32xf32, #tpu.memory_space<vmem>>, vector<3x32xf32>
    %35 = arith.truncf %34 : vector<3x32xf32> to vector<3x32xbf16>
    %c160 = arith.constant 160 : index
    %c0_27 = arith.constant 0 : index
    %36 = vector.load %arg4[%c160, %c0_27] : memref<512x64xbf16, #tpu.memory_space<vmem>>, vector<32x64xbf16>
    %cst_28 = arith.constant dense<0.000000e+00> : vector<3x64xf32>
    %37 = tpu.matmul %35, %36, %cst_28 {dimension_numbers = #tpu.dot_dimension_numbers<[1], [0], [0], [1], [0, 0, 1, 1], [], []>} : vector<3x32xbf16>, vector<32x64xbf16>, vector<3x64xf32> -> vector<3x64xf32>
    %38 = arith.addf %33, %37 : vector<3x64xf32>
    %c10 = arith.constant 10 : index
    %c0_29 = arith.constant 0 : index
    %39 = tpu.strided_load %arg13[%c10, %c0_29] {strides = array<i32: 2, 1>} : memref<64x32xf32, #tpu.memory_space<vmem>>, vector<3x32xf32>
    %40 = arith.truncf %39 : vector<3x32xf32> to vector<3x32xbf16>
    %c192 = arith.constant 192 : index
    %c0_30 = arith.constant 0 : index
    %41 = vector.load %arg4[%c192, %c0_30] : memref<512x64xbf16, #tpu.memory_space<vmem>>, vector<32x64xbf16>
    %cst_31 = arith.constant dense<0.000000e+00> : vector<3x64xf32>
    %42 = tpu.matmul %40, %41, %cst_31 {dimension_numbers = #tpu.dot_dimension_numbers<[1], [0], [0], [1], [0, 0, 1, 1], [], []>} : vector<3x32xbf16>, vector<32x64xbf16>, vector<3x64xf32> -> vector<3x64xf32>
    %43 = arith.addf %38, %42 : vector<3x64xf32>
    %c11 = arith.constant 11 : index
    %c0_32 = arith.constant 0 : index
    %44 = tpu.strided_load %arg13[%c11, %c0_32] {strides = array<i32: 2, 1>} : memref<64x32xf32, #tpu.memory_space<vmem>>, vector<3x32xf32>
    %45 = arith.truncf %44 : vector<3x32xf32> to vector<3x32xbf16>
    %c224 = arith.constant 224 : index
    %c0_33 = arith.constant 0 : index
    %46 = vector.load %arg4[%c224, %c0_33] : memref<512x64xbf16, #tpu.memory_space<vmem>>, vector<32x64xbf16>
    %cst_34 = arith.constant dense<0.000000e+00> : vector<3x64xf32>
    %47 = tpu.matmul %45, %46, %cst_34 {dimension_numbers = #tpu.dot_dimension_numbers<[1], [0], [0], [1], [0, 0, 1, 1], [], []>} : vector<3x32xbf16>, vector<32x64xbf16>, vector<3x64xf32> -> vector<3x64xf32>
    %48 = arith.addf %43, %47 : vector<3x64xf32>
    %c16 = arith.constant 16 : index
    %c0_35 = arith.constant 0 : index
    %49 = tpu.strided_load %arg13[%c16, %c0_35] {strides = array<i32: 2, 1>} : memref<64x32xf32, #tpu.memory_space<vmem>>, vector<3x32xf32>
    %50 = arith.truncf %49 : vector<3x32xf32> to vector<3x32xbf16>
    %c256 = arith.constant 256 : index
    %c0_36 = arith.constant 0 : index
    %51 = vector.load %arg4[%c256, %c0_36] : memref<512x64xbf16, #tpu.memory_space<vmem>>, vector<32x64xbf16>
    %cst_37 = arith.constant dense<0.000000e+00> : vector<3x64xf32>
    %52 = tpu.matmul %50, %51, %cst_37 {dimension_numbers = #tpu.dot_dimension_numbers<[1], [0], [0], [1], [0, 0, 1, 1], [], []>} : vector<3x32xbf16>, vector<32x64xbf16>, vector<3x64xf32> -> vector<3x64xf32>
    %53 = arith.addf %48, %52 : vector<3x64xf32>
    %c17 = arith.constant 17 : index
    %c0_38 = arith.constant 0 : index
    %54 = tpu.strided_load %arg13[%c17, %c0_38] {strides = array<i32: 2, 1>} : memref<64x32xf32, #tpu.memory_space<vmem>>, vector<3x32xf32>
    %55 = arith.truncf %54 : vector<3x32xf32> to vector<3x32xbf16>
    %c288 = arith.constant 288 : index
    %c0_39 = arith.constant 0 : index
    %56 = vector.load %arg4[%c288, %c0_39] : memref<512x64xbf16, #tpu.memory_space<vmem>>, vector<32x64xbf16>
    %cst_40 = arith.constant dense<0.000000e+00> : vector<3x64xf32>
    %57 = tpu.matmul %55, %56, %cst_40 {dimension_numbers = #tpu.dot_dimension_numbers<[1], [0], [0], [1], [0, 0, 1, 1], [], []>} : vector<3x32xbf16>, vector<32x64xbf16>, vector<3x64xf32> -> vector<3x64xf32>
    %58 = arith.addf %53, %57 : vector<3x64xf32>
    %c18 = arith.constant 18 : index
    %c0_41 = arith.constant 0 : index
    %59 = tpu.strided_load %arg13[%c18, %c0_41] {strides = array<i32: 2, 1>} : memref<64x32xf32, #tpu.memory_space<vmem>>, vector<3x32xf32>
    %60 = arith.truncf %59 : vector<3x32xf32> to vector<3x32xbf16>
    %c320 = arith.constant 320 : index
    %c0_42 = arith.constant 0 : index
    %61 = vector.load %arg4[%c320, %c0_42] : memref<512x64xbf16, #tpu.memory_space<vmem>>, vector<32x64xbf16>
    %cst_43 = arith.constant dense<0.000000e+00> : vector<3x64xf32>
    %62 = tpu.matmul %60, %61, %cst_43 {dimension_numbers = #tpu.dot_dimension_numbers<[1], [0], [0], [1], [0, 0, 1, 1], [], []>} : vector<3x32xbf16>, vector<32x64xbf16>, vector<3x64xf32> -> vector<3x64xf32>
    %63 = arith.addf %58, %62 : vector<3x64xf32>
    %c19 = arith.constant 19 : index
    %c0_44 = arith.constant 0 : index
    %64 = tpu.strided_load %arg13[%c19, %c0_44] {strides = array<i32: 2, 1>} : memref<64x32xf32, #tpu.memory_space<vmem>>, vector<3x32xf32>
    %65 = arith.truncf %64 : vector<3x32xf32> to vector<3x32xbf16>
    %c352 = arith.constant 352 : index
    %c0_45 = arith.constant 0 : index
    %66 = vector.load %arg4[%c352, %c0_45] : memref<512x64xbf16, #tpu.memory_space<vmem>>, vector<32x64xbf16>
    %cst_46 = arith.constant dense<0.000000e+00> : vector<3x64xf32>
    %67 = tpu.matmul %65, %66, %cst_46 {dimension_numbers = #tpu.dot_dimension_numbers<[1], [0], [0], [1], [0, 0, 1, 1], [], []>} : vector<3x32xbf16>, vector<32x64xbf16>, vector<3x64xf32> -> vector<3x64xf32>
    %68 = arith.addf %63, %67 : vector<3x64xf32>
    %c24 = arith.constant 24 : index
    %c0_47 = arith.constant 0 : index
    %69 = tpu.strided_load %arg13[%c24, %c0_47] {strides = array<i32: 2, 1>} : memref<64x32xf32, #tpu.memory_space<vmem>>, vector<3x32xf32>
    %70 = arith.truncf %69 : vector<3x32xf32> to vector<3x32xbf16>
    %c384 = arith.constant 384 : index
    %c0_48 = arith.constant 0 : index
    %71 = vector.load %arg4[%c384, %c0_48] : memref<512x64xbf16, #tpu.memory_space<vmem>>, vector<32x64xbf16>
    %cst_49 = arith.constant dense<0.000000e+00> : vector<3x64xf32>
    %72 = tpu.matmul %70, %71, %cst_49 {dimension_numbers = #tpu.dot_dimension_numbers<[1], [0], [0], [1], [0, 0, 1, 1], [], []>} : vector<3x32xbf16>, vector<32x64xbf16>, vector<3x64xf32> -> vector<3x64xf32>
    %73 = arith.addf %68, %72 : vector<3x64xf32>
    %c25 = arith.constant 25 : index
    %c0_50 = arith.constant 0 : index
    %74 = tpu.strided_load %arg13[%c25, %c0_50] {strides = array<i32: 2, 1>} : memref<64x32xf32, #tpu.memory_space<vmem>>, vector<3x32xf32>
    %75 = arith.truncf %74 : vector<3x32xf32> to vector<3x32xbf16>
    %c416 = arith.constant 416 : index
    %c0_51 = arith.constant 0 : index
    %76 = vector.load %arg4[%c416, %c0_51] : memref<512x64xbf16, #tpu.memory_space<vmem>>, vector<32x64xbf16>
    %cst_52 = arith.constant dense<0.000000e+00> : vector<3x64xf32>
    %77 = tpu.matmul %75, %76, %cst_52 {dimension_numbers = #tpu.dot_dimension_numbers<[1], [0], [0], [1], [0, 0, 1, 1], [], []>} : vector<3x32xbf16>, vector<32x64xbf16>, vector<3x64xf32> -> vector<3x64xf32>
    %78 = arith.addf %73, %77 : vector<3x64xf32>
    %c26 = arith.constant 26 : index
    %c0_53 = arith.constant 0 : index
    %79 = tpu.strided_load %arg13[%c26, %c0_53] {strides = array<i32: 2, 1>} : memref<64x32xf32, #tpu.memory_space<vmem>>, vector<3x32xf32>
    %80 = arith.truncf %79 : vector<3x32xf32> to vector<3x32xbf16>
    %c448 = arith.constant 448 : index
    %c0_54 = arith.constant 0 : index
    %81 = vector.load %arg4[%c448, %c0_54] : memref<512x64xbf16, #tpu.memory_space<vmem>>, vector<32x64xbf16>
    %cst_55 = arith.constant dense<0.000000e+00> : vector<3x64xf32>
    %82 = tpu.matmul %80, %81, %cst_55 {dimension_numbers = #tpu.dot_dimension_numbers<[1], [0], [0], [1], [0, 0, 1, 1], [], []>} : vector<3x32xbf16>, vector<32x64xbf16>, vector<3x64xf32> -> vector<3x64xf32>
    %83 = arith.addf %78, %82 : vector<3x64xf32>
    %c27 = arith.constant 27 : index
    %c0_56 = arith.constant 0 : index
    %84 = tpu.strided_load %arg13[%c27, %c0_56] {strides = array<i32: 2, 1>} : memref<64x32xf32, #tpu.memory_space<vmem>>, vector<3x32xf32>
    %85 = arith.truncf %84 : vector<3x32xf32> to vector<3x32xbf16>
    %c480 = arith.constant 480 : index
    %c0_57 = arith.constant 0 : index
    %86 = vector.load %arg4[%c480, %c0_57] : memref<512x64xbf16, #tpu.memory_space<vmem>>, vector<32x64xbf16>
    %cst_58 = arith.constant dense<0.000000e+00> : vector<3x64xf32>
    %87 = tpu.matmul %85, %86, %cst_58 {dimension_numbers = #tpu.dot_dimension_numbers<[1], [0], [0], [1], [0, 0, 1, 1], [], []>} : vector<3x32xbf16>, vector<32x64xbf16>, vector<3x64xf32> -> vector<3x64xf32>
    %88 = arith.addf %83, %87 : vector<3x64xf32>
    %c0_59 = arith.constant 0 : index
    %c0_60 = arith.constant 0 : index
    %89 = vector.load %arg5[%c0_59, %c0_60] : memref<1x64xf32, #tpu.memory_space<vmem>>, vector<1x64xf32>
    %90 = vector.broadcast %89 : vector<1x64xf32> to vector<3x64xf32>
    %91 = arith.addf %88, %90 : vector<3x64xf32>
    %cst_61 = arith.constant 0.000000e+00 : f32
    %92 = vector.broadcast %cst_61 : f32 to vector<3x64xf32>
    %93 = arith.maximumf %91, %92 : vector<3x64xf32>
    %c0_62 = arith.constant 0 : index
    %c0_63 = arith.constant 0 : index
    %94 = vector.load %arg14[%c0_62, %c0_63] : memref<9x64xf32, #tpu.memory_space<vmem>>, vector<3x64xf32>
    tpu.vector_store %arg14[%c0_62, %c0_63], %93 {strides = array<i32>} : memref<9x64xf32, #tpu.memory_space<vmem>>, vector<3x64xf32>,
    %c16_64 = arith.constant 16 : index
    %c0_65 = arith.constant 0 : index
    %95 = tpu.strided_load %arg13[%c16_64, %c0_65] {strides = array<i32: 2, 1>} : memref<64x32xf32, #tpu.memory_space<vmem>>, vector<3x32xf32>
    %96 = arith.truncf %95 : vector<3x32xf32> to vector<3x32xbf16>
    %c0_66 = arith.constant 0 : index
    %c0_67 = arith.constant 0 : index
    %97 = vector.load %arg4[%c0_66, %c0_67] : memref<512x64xbf16, #tpu.memory_space<vmem>>, vector<32x64xbf16>
    %cst_68 = arith.constant dense<0.000000e+00> : vector<3x64xf32>
    %98 = tpu.matmul %96, %97, %cst_68 {dimension_numbers = #tpu.dot_dimension_numbers<[1], [0], [0], [1], [0, 0, 1, 1], [], []>} : vector<3x32xbf16>, vector<32x64xbf16>, vector<3x64xf32> -> vector<3x64xf32>
    %c17_69 = arith.constant 17 : index
    %c0_70 = arith.constant 0 : index
    %99 = tpu.strided_load %arg13[%c17_69, %c0_70] {strides = array<i32: 2, 1>} : memref<64x32xf32, #tpu.memory_space<vmem>>, vector<3x32xf32>
    %100 = arith.truncf %99 : vector<3x32xf32> to vector<3x32xbf16>
    %c32_71 = arith.constant 32 : index
    %c0_72 = arith.constant 0 : index
    %101 = vector.load %arg4[%c32_71, %c0_72] : memref<512x64xbf16, #tpu.memory_space<vmem>>, vector<32x64xbf16>
    %cst_73 = arith.constant dense<0.000000e+00> : vector<3x64xf32>
    %102 = tpu.matmul %100, %101, %cst_73 {dimension_numbers = #tpu.dot_dimension_numbers<[1], [0], [0], [1], [0, 0, 1, 1], [], []>} : vector<3x32xbf16>, vector<32x64xbf16>, vector<3x64xf32> -> vector<3x64xf32>
    %103 = arith.addf %98, %102 : vector<3x64xf32>
    %c18_74 = arith.constant 18 : index
    %c0_75 = arith.constant 0 : index
    %104 = tpu.strided_load %arg13[%c18_74, %c0_75] {strides = array<i32: 2, 1>} : memref<64x32xf32, #tpu.memory_space<vmem>>, vector<3x32xf32>
    %105 = arith.truncf %104 : vector<3x32xf32> to vector<3x32xbf16>
    %c64_76 = arith.constant 64 : index
    %c0_77 = arith.constant 0 : index
    %106 = vector.load %arg4[%c64_76, %c0_77] : memref<512x64xbf16, #tpu.memory_space<vmem>>, vector<32x64xbf16>
    %cst_78 = arith.constant dense<0.000000e+00> : vector<3x64xf32>
    %107 = tpu.matmul %105, %106, %cst_78 {dimension_numbers = #tpu.dot_dimension_numbers<[1], [0], [0], [1], [0, 0, 1, 1], [], []>} : vector<3x32xbf16>, vector<32x64xbf16>, vector<3x64xf32> -> vector<3x64xf32>
    %108 = arith.addf %103, %107 : vector<3x64xf32>
    %c19_79 = arith.constant 19 : index
    %c0_80 = arith.constant 0 : index
    %109 = tpu.strided_load %arg13[%c19_79, %c0_80] {strides = array<i32: 2, 1>} : memref<64x32xf32, #tpu.memory_space<vmem>>, vector<3x32xf32>
    %110 = arith.truncf %109 : vector<3x32xf32> to vector<3x32xbf16>
    %c96_81 = arith.constant 96 : index
    %c0_82 = arith.constant 0 : index
    %111 = vector.load %arg4[%c96_81, %c0_82] : memref<512x64xbf16, #tpu.memory_space<vmem>>, vector<32x64xbf16>
    %cst_83 = arith.constant dense<0.000000e+00> : vector<3x64xf32>
    %112 = tpu.matmul %110, %111, %cst_83 {dimension_numbers = #tpu.dot_dimension_numbers<[1], [0], [0], [1], [0, 0, 1, 1], [], []>} : vector<3x32xbf16>, vector<32x64xbf16>, vector<3x64xf32> -> vector<3x64xf32>
    %113 = arith.addf %108, %112 : vector<3x64xf32>
    %c24_84 = arith.constant 24 : index
    %c0_85 = arith.constant 0 : index
    %114 = tpu.strided_load %arg13[%c24_84, %c0_85] {strides = array<i32: 2, 1>} : memref<64x32xf32, #tpu.memory_space<vmem>>, vector<3x32xf32>
    %115 = arith.truncf %114 : vector<3x32xf32> to vector<3x32xbf16>
    %c128_86 = arith.constant 128 : index
    %c0_87 = arith.constant 0 : index
    %116 = vector.load %arg4[%c128_86, %c0_87] : memref<512x64xbf16, #tpu.memory_space<vmem>>, vector<32x64xbf16>
    %cst_88 = arith.constant dense<0.000000e+00> : vector<3x64xf32>
    %117 = tpu.matmul %115, %116, %cst_88 {dimension_numbers = #tpu.dot_dimension_numbers<[1], [0], [0], [1], [0, 0, 1, 1], [], []>} : vector<3x32xbf16>, vector<32x64xbf16>, vector<3x64xf32> -> vector<3x64xf32>
    %118 = arith.addf %113, %117 : vector<3x64xf32>
    %c25_89 = arith.constant 25 : index
    %c0_90 = arith.constant 0 : index
    %119 = tpu.strided_load %arg13[%c25_89, %c0_90] {strides = array<i32: 2, 1>} : memref<64x32xf32, #tpu.memory_space<vmem>>, vector<3x32xf32>
    %120 = arith.truncf %119 : vector<3x32xf32> to vector<3x32xbf16>
    %c160_91 = arith.constant 160 : index
    %c0_92 = arith.constant 0 : index
    %121 = vector.load %arg4[%c160_91, %c0_92] : memref<512x64xbf16, #tpu.memory_space<vmem>>, vector<32x64xbf16>
    %cst_93 = arith.constant dense<0.000000e+00> : vector<3x64xf32>
    %122 = tpu.matmul %120, %121, %cst_93 {dimension_numbers = #tpu.dot_dimension_numbers<[1], [0], [0], [1], [0, 0, 1, 1], [], []>} : vector<3x32xbf16>, vector<32x64xbf16>, vector<3x64xf32> -> vector<3x64xf32>
    %123 = arith.addf %118, %122 : vector<3x64xf32>
    %c26_94 = arith.constant 26 : index
    %c0_95 = arith.constant 0 : index
    %124 = tpu.strided_load %arg13[%c26_94, %c0_95] {strides = array<i32: 2, 1>} : memref<64x32xf32, #tpu.memory_space<vmem>>, vector<3x32xf32>
    %125 = arith.truncf %124 : vector<3x32xf32> to vector<3x32xbf16>
    %c192_96 = arith.constant 192 : index
    %c0_97 = arith.constant 0 : index
    %126 = vector.load %arg4[%c192_96, %c0_97] : memref<512x64xbf16, #tpu.memory_space<vmem>>, vector<32x64xbf16>
    %cst_98 = arith.constant dense<0.000000e+00> : vector<3x64xf32>
    %127 = tpu.matmul %125, %126, %cst_98 {dimension_numbers = #tpu.dot_dimension_numbers<[1], [0], [0], [1], [0, 0, 1, 1], [], []>} : vector<3x32xbf16>, vector<32x64xbf16>, vector<3x64xf32> -> vector<3x64xf32>
    %128 = arith.addf %123, %127 : vector<3x64xf32>
    %c27_99 = arith.constant 27 : index
    %c0_100 = arith.constant 0 : index
    %129 = tpu.strided_load %arg13[%c27_99, %c0_100] {strides = array<i32: 2, 1>} : memref<64x32xf32, #tpu.memory_space<vmem>>, vector<3x32xf32>
    %130 = arith.truncf %129 : vector<3x32xf32> to vector<3x32xbf16>
    %c224_101 = arith.constant 224 : index
    %c0_102 = arith.constant 0 : index
    %131 = vector.load %arg4[%c224_101, %c0_102] : memref<512x64xbf16, #tpu.memory_space<vmem>>, vector<32x64xbf16>
    %cst_103 = arith.constant dense<0.000000e+00> : vector<3x64xf32>
    %132 = tpu.matmul %130, %131, %cst_103 {dimension_numbers = #tpu.dot_dimension_numbers<[1], [0], [0], [1], [0, 0, 1, 1], [], []>} : vector<3x32xbf16>, vector<32x64xbf16>, vector<3x64xf32> -> vector<3x64xf32>
    %133 = arith.addf %128, %132 : vector<3x64xf32>
    %c32_104 = arith.constant 32 : index
    %c0_105 = arith.constant 0 : index
    %134 = tpu.strided_load %arg13[%c32_104, %c0_105] {strides = array<i32: 2, 1>} : memref<64x32xf32, #tpu.memory_space<vmem>>, vector<3x32xf32>
    %135 = arith.truncf %134 : vector<3x32xf32> to vector<3x32xbf16>
    %c256_106 = arith.constant 256 : index
    %c0_107 = arith.constant 0 : index
    %136 = vector.load %arg4[%c256_106, %c0_107] : memref<512x64xbf16, #tpu.memory_space<vmem>>, vector<32x64xbf16>
    %cst_108 = arith.constant dense<0.000000e+00> : vector<3x64xf32>
    %137 = tpu.matmul %135, %136, %cst_108 {dimension_numbers = #tpu.dot_dimension_numbers<[1], [0], [0], [1], [0, 0, 1, 1], [], []>} : vector<3x32xbf16>, vector<32x64xbf16>, vector<3x64xf32> -> vector<3x64xf32>
    %138 = arith.addf %133, %137 : vector<3x64xf32>
    %c33 = arith.constant 33 : index
    %c0_109 = arith.constant 0 : index
    %139 = tpu.strided_load %arg13[%c33, %c0_109] {strides = array<i32: 2, 1>} : memref<64x32xf32, #tpu.memory_space<vmem>>, vector<3x32xf32>
    %140 = arith.truncf %139 : vector<3x32xf32> to vector<3x32xbf16>
    %c288_110 = arith.constant 288 : index
    %c0_111 = arith.constant 0 : index
    %141 = vector.load %arg4[%c288_110, %c0_111] : memref<512x64xbf16, #tpu.memory_space<vmem>>, vector<32x64xbf16>
    %cst_112 = arith.constant dense<0.000000e+00> : vector<3x64xf32>
    %142 = tpu.matmul %140, %141, %cst_112 {dimension_numbers = #tpu.dot_dimension_numbers<[1], [0], [0], [1], [0, 0, 1, 1], [], []>} : vector<3x32xbf16>, vector<32x64xbf16>, vector<3x64xf32> -> vector<3x64xf32>
    %143 = arith.addf %138, %142 : vector<3x64xf32>
    %c34 = arith.constant 34 : index
    %c0_113 = arith.constant 0 : index
    %144 = tpu.strided_load %arg13[%c34, %c0_113] {strides = array<i32: 2, 1>} : memref<64x32xf32, #tpu.memory_space<vmem>>, vector<3x32xf32>
    %145 = arith.truncf %144 : vector<3x32xf32> to vector<3x32xbf16>
    %c320_114 = arith.constant 320 : index
    %c0_115 = arith.constant 0 : index
    %146 = vector.load %arg4[%c320_114, %c0_115] : memref<512x64xbf16, #tpu.memory_space<vmem>>, vector<32x64xbf16>
    %cst_116 = arith.constant dense<0.000000e+00> : vector<3x64xf32>
    %147 = tpu.matmul %145, %146, %cst_116 {dimension_numbers = #tpu.dot_dimension_numbers<[1], [0], [0], [1], [0, 0, 1, 1], [], []>} : vector<3x32xbf16>, vector<32x64xbf16>, vector<3x64xf32> -> vector<3x64xf32>
    %148 = arith.addf %143, %147 : vector<3x64xf32>
    %c35 = arith.constant 35 : index
    %c0_117 = arith.constant 0 : index
    %149 = tpu.strided_load %arg13[%c35, %c0_117] {strides = array<i32: 2, 1>} : memref<64x32xf32, #tpu.memory_space<vmem>>, vector<3x32xf32>
    %150 = arith.truncf %149 : vector<3x32xf32> to vector<3x32xbf16>
    %c352_118 = arith.constant 352 : index
    %c0_119 = arith.constant 0 : index
    %151 = vector.load %arg4[%c352_118, %c0_119] : memref<512x64xbf16, #tpu.memory_space<vmem>>, vector<32x64xbf16>
    %cst_120 = arith.constant dense<0.000000e+00> : vector<3x64xf32>
    %152 = tpu.matmul %150, %151, %cst_120 {dimension_numbers = #tpu.dot_dimension_numbers<[1], [0], [0], [1], [0, 0, 1, 1], [], []>} : vector<3x32xbf16>, vector<32x64xbf16>, vector<3x64xf32> -> vector<3x64xf32>
    %153 = arith.addf %148, %152 : vector<3x64xf32>
    %c40 = arith.constant 40 : index
    %c0_121 = arith.constant 0 : index
    %154 = tpu.strided_load %arg13[%c40, %c0_121] {strides = array<i32: 2, 1>} : memref<64x32xf32, #tpu.memory_space<vmem>>, vector<3x32xf32>
    %155 = arith.truncf %154 : vector<3x32xf32> to vector<3x32xbf16>
    %c384_122 = arith.constant 384 : index
    %c0_123 = arith.constant 0 : index
    %156 = vector.load %arg4[%c384_122, %c0_123] : memref<512x64xbf16, #tpu.memory_space<vmem>>, vector<32x64xbf16>
    %cst_124 = arith.constant dense<0.000000e+00> : vector<3x64xf32>
    %157 = tpu.matmul %155, %156, %cst_124 {dimension_numbers = #tpu.dot_dimension_numbers<[1], [0], [0], [1], [0, 0, 1, 1], [], []>} : vector<3x32xbf16>, vector<32x64xbf16>, vector<3x64xf32> -> vector<3x64xf32>
    %158 = arith.addf %153, %157 : vector<3x64xf32>
    %c41 = arith.constant 41 : index
    %c0_125 = arith.constant 0 : index
    %159 = tpu.strided_load %arg13[%c41, %c0_125] {strides = array<i32: 2, 1>} : memref<64x32xf32, #tpu.memory_space<vmem>>, vector<3x32xf32>
    %160 = arith.truncf %159 : vector<3x32xf32> to vector<3x32xbf16>
    %c416_126 = arith.constant 416 : index
    %c0_127 = arith.constant 0 : index
    %161 = vector.load %arg4[%c416_126, %c0_127] : memref<512x64xbf16, #tpu.memory_space<vmem>>, vector<32x64xbf16>
    %cst_128 = arith.constant dense<0.000000e+00> : vector<3x64xf32>
    %162 = tpu.matmul %160, %161, %cst_128 {dimension_numbers = #tpu.dot_dimension_numbers<[1], [0], [0], [1], [0, 0, 1, 1], [], []>} : vector<3x32xbf16>, vector<32x64xbf16>, vector<3x64xf32> -> vector<3x64xf32>
    %163 = arith.addf %158, %162 : vector<3x64xf32>
    %c42 = arith.constant 42 : index
    %c0_129 = arith.constant 0 : index
    %164 = tpu.strided_load %arg13[%c42, %c0_129] {strides = array<i32: 2, 1>} : memref<64x32xf32, #tpu.memory_space<vmem>>, vector<3x32xf32>
    %165 = arith.truncf %164 : vector<3x32xf32> to vector<3x32xbf16>
    %c448_130 = arith.constant 448 : index
    %c0_131 = arith.constant 0 : index
    %166 = vector.load %arg4[%c448_130, %c0_131] : memref<512x64xbf16, #tpu.memory_space<vmem>>, vector<32x64xbf16>
    %cst_132 = arith.constant dense<0.000000e+00> : vector<3x64xf32>
    %167 = tpu.matmul %165, %166, %cst_132 {dimension_numbers = #tpu.dot_dimension_numbers<[1], [0], [0], [1], [0, 0, 1, 1], [], []>} : vector<3x32xbf16>, vector<32x64xbf16>, vector<3x64xf32> -> vector<3x64xf32>
    %168 = arith.addf %163, %167 : vector<3x64xf32>
    %c43 = arith.constant 43 : index
    %c0_133 = arith.constant 0 : index
    %169 = tpu.strided_load %arg13[%c43, %c0_133] {strides = array<i32: 2, 1>} : memref<64x32xf32, #tpu.memory_space<vmem>>, vector<3x32xf32>
    %170 = arith.truncf %169 : vector<3x32xf32> to vector<3x32xbf16>
    %c480_134 = arith.constant 480 : index
    %c0_135 = arith.constant 0 : index
    %171 = vector.load %arg4[%c480_134, %c0_135] : memref<512x64xbf16, #tpu.memory_space<vmem>>, vector<32x64xbf16>
    %cst_136 = arith.constant dense<0.000000e+00> : vector<3x64xf32>
    %172 = tpu.matmul %170, %171, %cst_136 {dimension_numbers = #tpu.dot_dimension_numbers<[1], [0], [0], [1], [0, 0, 1, 1], [], []>} : vector<3x32xbf16>, vector<32x64xbf16>, vector<3x64xf32> -> vector<3x64xf32>
    %173 = arith.addf %168, %172 : vector<3x64xf32>
    %c0_137 = arith.constant 0 : index
    %c0_138 = arith.constant 0 : index
    %174 = vector.load %arg5[%c0_137, %c0_138] : memref<1x64xf32, #tpu.memory_space<vmem>>, vector<1x64xf32>
    %175 = vector.broadcast %174 : vector<1x64xf32> to vector<3x64xf32>
    %176 = arith.addf %173, %175 : vector<3x64xf32>
    %cst_139 = arith.constant 0.000000e+00 : f32
    %177 = vector.broadcast %cst_139 : f32 to vector<3x64xf32>
    %178 = arith.maximumf %176, %177 : vector<3x64xf32>
    %c3_140 = arith.constant 3 : index
    %c0_141 = arith.constant 0 : index
    %179 = vector.load %arg14[%c3_140, %c0_141] : memref<9x64xf32, #tpu.memory_space<vmem>>, vector<3x64xf32>
    tpu.vector_store %arg14[%c3_140, %c0_141], %178 {strides = array<i32>} : memref<9x64xf32, #tpu.memory_space<vmem>>, vector<3x64xf32>,
    %c32_142 = arith.constant 32 : index
    %c0_143 = arith.constant 0 : index
    %180 = tpu.strided_load %arg13[%c32_142, %c0_143] {strides = array<i32: 2, 1>} : memref<64x32xf32, #tpu.memory_space<vmem>>, vector<3x32xf32>
    %181 = arith.truncf %180 : vector<3x32xf32> to vector<3x32xbf16>
    %c0_144 = arith.constant 0 : index
    %c0_145 = arith.constant 0 : index
    %182 = vector.load %arg4[%c0_144, %c0_145] : memref<512x64xbf16, #tpu.memory_space<vmem>>, vector<32x64xbf16>
    %cst_146 = arith.constant dense<0.000000e+00> : vector<3x64xf32>
    %183 = tpu.matmul %181, %182, %cst_146 {dimension_numbers = #tpu.dot_dimension_numbers<[1], [0], [0], [1], [0, 0, 1, 1], [], []>} : vector<3x32xbf16>, vector<32x64xbf16>, vector<3x64xf32> -> vector<3x64xf32>
    %c33_147 = arith.constant 33 : index
    %c0_148 = arith.constant 0 : index
    %184 = tpu.strided_load %arg13[%c33_147, %c0_148] {strides = array<i32: 2, 1>} : memref<64x32xf32, #tpu.memory_space<vmem>>, vector<3x32xf32>
    %185 = arith.truncf %184 : vector<3x32xf32> to vector<3x32xbf16>
    %c32_149 = arith.constant 32 : index
    %c0_150 = arith.constant 0 : index
    %186 = vector.load %arg4[%c32_149, %c0_150] : memref<512x64xbf16, #tpu.memory_space<vmem>>, vector<32x64xbf16>
    %cst_151 = arith.constant dense<0.000000e+00> : vector<3x64xf32>
    %187 = tpu.matmul %185, %186, %cst_151 {dimension_numbers = #tpu.dot_dimension_numbers<[1], [0], [0], [1], [0, 0, 1, 1], [], []>} : vector<3x32xbf16>, vector<32x64xbf16>, vector<3x64xf32> -> vector<3x64xf32>
    %188 = arith.addf %183, %187 : vector<3x64xf32>
    %c34_152 = arith.constant 34 : index
    %c0_153 = arith.constant 0 : index
    %189 = tpu.strided_load %arg13[%c34_152, %c0_153] {strides = array<i32: 2, 1>} : memref<64x32xf32, #tpu.memory_space<vmem>>, vector<3x32xf32>
    %190 = arith.truncf %189 : vector<3x32xf32> to vector<3x32xbf16>
    %c64_154 = arith.constant 64 : index
    %c0_155 = arith.constant 0 : index
    %191 = vector.load %arg4[%c64_154, %c0_155] : memref<512x64xbf16, #tpu.memory_space<vmem>>, vector<32x64xbf16>
    %cst_156 = arith.constant dense<0.000000e+00> : vector<3x64xf32>
    %192 = tpu.matmul %190, %191, %cst_156 {dimension_numbers = #tpu.dot_dimension_numbers<[1], [0], [0], [1], [0, 0, 1, 1], [], []>} : vector<3x32xbf16>, vector<32x64xbf16>, vector<3x64xf32> -> vector<3x64xf32>
    %193 = arith.addf %188, %192 : vector<3x64xf32>
    %c35_157 = arith.constant 35 : index
    %c0_158 = arith.constant 0 : index
    %194 = tpu.strided_load %arg13[%c35_157, %c0_158] {strides = array<i32: 2, 1>} : memref<64x32xf32, #tpu.memory_space<vmem>>, vector<3x32xf32>
    %195 = arith.truncf %194 : vector<3x32xf32> to vector<3x32xbf16>
    %c96_159 = arith.constant 96 : index
    %c0_160 = arith.constant 0 : index
    %196 = vector.load %arg4[%c96_159, %c0_160] : memref<512x64xbf16, #tpu.memory_space<vmem>>, vector<32x64xbf16>
    %cst_161 = arith.constant dense<0.000000e+00> : vector<3x64xf32>
    %197 = tpu.matmul %195, %196, %cst_161 {dimension_numbers = #tpu.dot_dimension_numbers<[1], [0], [0], [1], [0, 0, 1, 1], [], []>} : vector<3x32xbf16>, vector<32x64xbf16>, vector<3x64xf32> -> vector<3x64xf32>
    %198 = arith.addf %193, %197 : vector<3x64xf32>
    %c40_162 = arith.constant 40 : index
    %c0_163 = arith.constant 0 : index
    %199 = tpu.strided_load %arg13[%c40_162, %c0_163] {strides = array<i32: 2, 1>} : memref<64x32xf32, #tpu.memory_space<vmem>>, vector<3x32xf32>
    %200 = arith.truncf %199 : vector<3x32xf32> to vector<3x32xbf16>
    %c128_164 = arith.constant 128 : index
    %c0_165 = arith.constant 0 : index
    %201 = vector.load %arg4[%c128_164, %c0_165] : memref<512x64xbf16, #tpu.memory_space<vmem>>, vector<32x64xbf16>
    %cst_166 = arith.constant dense<0.000000e+00> : vector<3x64xf32>
    %202 = tpu.matmul %200, %201, %cst_166 {dimension_numbers = #tpu.dot_dimension_numbers<[1], [0], [0], [1], [0, 0, 1, 1], [], []>} : vector<3x32xbf16>, vector<32x64xbf16>, vector<3x64xf32> -> vector<3x64xf32>
    %203 = arith.addf %198, %202 : vector<3x64xf32>
    %c41_167 = arith.constant 41 : index
    %c0_168 = arith.constant 0 : index
    %204 = tpu.strided_load %arg13[%c41_167, %c0_168] {strides = array<i32: 2, 1>} : memref<64x32xf32, #tpu.memory_space<vmem>>, vector<3x32xf32>
    %205 = arith.truncf %204 : vector<3x32xf32> to vector<3x32xbf16>
    %c160_169 = arith.constant 160 : index
    %c0_170 = arith.constant 0 : index
    %206 = vector.load %arg4[%c160_169, %c0_170] : memref<512x64xbf16, #tpu.memory_space<vmem>>, vector<32x64xbf16>
    %cst_171 = arith.constant dense<0.000000e+00> : vector<3x64xf32>
    %207 = tpu.matmul %205, %206, %cst_171 {dimension_numbers = #tpu.dot_dimension_numbers<[1], [0], [0], [1], [0, 0, 1, 1], [], []>} : vector<3x32xbf16>, vector<32x64xbf16>, vector<3x64xf32> -> vector<3x64xf32>
    %208 = arith.addf %203, %207 : vector<3x64xf32>
    %c42_172 = arith.constant 42 : index
    %c0_173 = arith.constant 0 : index
    %209 = tpu.strided_load %arg13[%c42_172, %c0_173] {strides = array<i32: 2, 1>} : memref<64x32xf32, #tpu.memory_space<vmem>>, vector<3x32xf32>
    %210 = arith.truncf %209 : vector<3x32xf32> to vector<3x32xbf16>
    %c192_174 = arith.constant 192 : index
    %c0_175 = arith.constant 0 : index
    %211 = vector.load %arg4[%c192_174, %c0_175] : memref<512x64xbf16, #tpu.memory_space<vmem>>, vector<32x64xbf16>
    %cst_176 = arith.constant dense<0.000000e+00> : vector<3x64xf32>
    %212 = tpu.matmul %210, %211, %cst_176 {dimension_numbers = #tpu.dot_dimension_numbers<[1], [0], [0], [1], [0, 0, 1, 1], [], []>} : vector<3x32xbf16>, vector<32x64xbf16>, vector<3x64xf32> -> vector<3x64xf32>
    %213 = arith.addf %208, %212 : vector<3x64xf32>
    %c43_177 = arith.constant 43 : index
    %c0_178 = arith.constant 0 : index
    %214 = tpu.strided_load %arg13[%c43_177, %c0_178] {strides = array<i32: 2, 1>} : memref<64x32xf32, #tpu.memory_space<vmem>>, vector<3x32xf32>
    %215 = arith.truncf %214 : vector<3x32xf32> to vector<3x32xbf16>
    %c224_179 = arith.constant 224 : index
    %c0_180 = arith.constant 0 : index
    %216 = vector.load %arg4[%c224_179, %c0_180] : memref<512x64xbf16, #tpu.memory_space<vmem>>, vector<32x64xbf16>
    %cst_181 = arith.constant dense<0.000000e+00> : vector<3x64xf32>
    %217 = tpu.matmul %215, %216, %cst_181 {dimension_numbers = #tpu.dot_dimension_numbers<[1], [0], [0], [1], [0, 0, 1, 1], [], []>} : vector<3x32xbf16>, vector<32x64xbf16>, vector<3x64xf32> -> vector<3x64xf32>
    %218 = arith.addf %213, %217 : vector<3x64xf32>
    %c48 = arith.constant 48 : index
    %c0_182 = arith.constant 0 : index
    %219 = tpu.strided_load %arg13[%c48, %c0_182] {strides = array<i32: 2, 1>} : memref<64x32xf32, #tpu.memory_space<vmem>>, vector<3x32xf32>
    %220 = arith.truncf %219 : vector<3x32xf32> to vector<3x32xbf16>
    %c256_183 = arith.constant 256 : index
    %c0_184 = arith.constant 0 : index
    %221 = vector.load %arg4[%c256_183, %c0_184] : memref<512x64xbf16, #tpu.memory_space<vmem>>, vector<32x64xbf16>
    %cst_185 = arith.constant dense<0.000000e+00> : vector<3x64xf32>
    %222 = tpu.matmul %220, %221, %cst_185 {dimension_numbers = #tpu.dot_dimension_numbers<[1], [0], [0], [1], [0, 0, 1, 1], [], []>} : vector<3x32xbf16>, vector<32x64xbf16>, vector<3x64xf32> -> vector<3x64xf32>
    %223 = arith.addf %218, %222 : vector<3x64xf32>
    %c49 = arith.constant 49 : index
    %c0_186 = arith.constant 0 : index
    %224 = tpu.strided_load %arg13[%c49, %c0_186] {strides = array<i32: 2, 1>} : memref<64x32xf32, #tpu.memory_space<vmem>>, vector<3x32xf32>
    %225 = arith.truncf %224 : vector<3x32xf32> to vector<3x32xbf16>
    %c288_187 = arith.constant 288 : index
    %c0_188 = arith.constant 0 : index
    %226 = vector.load %arg4[%c288_187, %c0_188] : memref<512x64xbf16, #tpu.memory_space<vmem>>, vector<32x64xbf16>
    %cst_189 = arith.constant dense<0.000000e+00> : vector<3x64xf32>
    %227 = tpu.matmul %225, %226, %cst_189 {dimension_numbers = #tpu.dot_dimension_numbers<[1], [0], [0], [1], [0, 0, 1, 1], [], []>} : vector<3x32xbf16>, vector<32x64xbf16>, vector<3x64xf32> -> vector<3x64xf32>
    %228 = arith.addf %223, %227 : vector<3x64xf32>
    %c50 = arith.constant 50 : index
    %c0_190 = arith.constant 0 : index
    %229 = tpu.strided_load %arg13[%c50, %c0_190] {strides = array<i32: 2, 1>} : memref<64x32xf32, #tpu.memory_space<vmem>>, vector<3x32xf32>
    %230 = arith.truncf %229 : vector<3x32xf32> to vector<3x32xbf16>
    %c320_191 = arith.constant 320 : index
    %c0_192 = arith.constant 0 : index
    %231 = vector.load %arg4[%c320_191, %c0_192] : memref<512x64xbf16, #tpu.memory_space<vmem>>, vector<32x64xbf16>
    %cst_193 = arith.constant dense<0.000000e+00> : vector<3x64xf32>
    %232 = tpu.matmul %230, %231, %cst_193 {dimension_numbers = #tpu.dot_dimension_numbers<[1], [0], [0], [1], [0, 0, 1, 1], [], []>} : vector<3x32xbf16>, vector<32x64xbf16>, vector<3x64xf32> -> vector<3x64xf32>
    %233 = arith.addf %228, %232 : vector<3x64xf32>
    %c51 = arith.constant 51 : index
    %c0_194 = arith.constant 0 : index
    %234 = tpu.strided_load %arg13[%c51, %c0_194] {strides = array<i32: 2, 1>} : memref<64x32xf32, #tpu.memory_space<vmem>>, vector<3x32xf32>
    %235 = arith.truncf %234 : vector<3x32xf32> to vector<3x32xbf16>
    %c352_195 = arith.constant 352 : index
    %c0_196 = arith.constant 0 : index
    %236 = vector.load %arg4[%c352_195, %c0_196] : memref<512x64xbf16, #tpu.memory_space<vmem>>, vector<32x64xbf16>
    %cst_197 = arith.constant dense<0.000000e+00> : vector<3x64xf32>
    %237 = tpu.matmul %235, %236, %cst_197 {dimension_numbers = #tpu.dot_dimension_numbers<[1], [0], [0], [1], [0, 0, 1, 1], [], []>} : vector<3x32xbf16>, vector<32x64xbf16>, vector<3x64xf32> -> vector<3x64xf32>
    %238 = arith.addf %233, %237 : vector<3x64xf32>
    %c56 = arith.constant 56 : index
    %c0_198 = arith.constant 0 : index
    %239 = tpu.strided_load %arg13[%c56, %c0_198] {strides = array<i32: 2, 1>} : memref<64x32xf32, #tpu.memory_space<vmem>>, vector<3x32xf32>
    %240 = arith.truncf %239 : vector<3x32xf32> to vector<3x32xbf16>
    %c384_199 = arith.constant 384 : index
    %c0_200 = arith.constant 0 : index
    %241 = vector.load %arg4[%c384_199, %c0_200] : memref<512x64xbf16, #tpu.memory_space<vmem>>, vector<32x64xbf16>
    %cst_201 = arith.constant dense<0.000000e+00> : vector<3x64xf32>
    %242 = tpu.matmul %240, %241, %cst_201 {dimension_numbers = #tpu.dot_dimension_numbers<[1], [0], [0], [1], [0, 0, 1, 1], [], []>} : vector<3x32xbf16>, vector<32x64xbf16>, vector<3x64xf32> -> vector<3x64xf32>
    %243 = arith.addf %238, %242 : vector<3x64xf32>
    %c57 = arith.constant 57 : index
    %c0_202 = arith.constant 0 : index
    %244 = tpu.strided_load %arg13[%c57, %c0_202] {strides = array<i32: 2, 1>} : memref<64x32xf32, #tpu.memory_space<vmem>>, vector<3x32xf32>
    %245 = arith.truncf %244 : vector<3x32xf32> to vector<3x32xbf16>
    %c416_203 = arith.constant 416 : index
    %c0_204 = arith.constant 0 : index
    %246 = vector.load %arg4[%c416_203, %c0_204] : memref<512x64xbf16, #tpu.memory_space<vmem>>, vector<32x64xbf16>
    %cst_205 = arith.constant dense<0.000000e+00> : vector<3x64xf32>
    %247 = tpu.matmul %245, %246, %cst_205 {dimension_numbers = #tpu.dot_dimension_numbers<[1], [0], [0], [1], [0, 0, 1, 1], [], []>} : vector<3x32xbf16>, vector<32x64xbf16>, vector<3x64xf32> -> vector<3x64xf32>
    %248 = arith.addf %243, %247 : vector<3x64xf32>
    %c58 = arith.constant 58 : index
    %c0_206 = arith.constant 0 : index
    %249 = tpu.strided_load %arg13[%c58, %c0_206] {strides = array<i32: 2, 1>} : memref<64x32xf32, #tpu.memory_space<vmem>>, vector<3x32xf32>
    %250 = arith.truncf %249 : vector<3x32xf32> to vector<3x32xbf16>
    %c448_207 = arith.constant 448 : index
    %c0_208 = arith.constant 0 : index
    %251 = vector.load %arg4[%c448_207, %c0_208] : memref<512x64xbf16, #tpu.memory_space<vmem>>, vector<32x64xbf16>
    %cst_209 = arith.constant dense<0.000000e+00> : vector<3x64xf32>
    %252 = tpu.matmul %250, %251, %cst_209 {dimension_numbers = #tpu.dot_dimension_numbers<[1], [0], [0], [1], [0, 0, 1, 1], [], []>} : vector<3x32xbf16>, vector<32x64xbf16>, vector<3x64xf32> -> vector<3x64xf32>
    %253 = arith.addf %248, %252 : vector<3x64xf32>
    %c59 = arith.constant 59 : index
    %c0_210 = arith.constant 0 : index
    %254 = tpu.strided_load %arg13[%c59, %c0_210] {strides = array<i32: 2, 1>} : memref<64x32xf32, #tpu.memory_space<vmem>>, vector<3x32xf32>
    %255 = arith.truncf %254 : vector<3x32xf32> to vector<3x32xbf16>
    %c480_211 = arith.constant 480 : index
    %c0_212 = arith.constant 0 : index
    %256 = vector.load %arg4[%c480_211, %c0_212] : memref<512x64xbf16, #tpu.memory_space<vmem>>, vector<32x64xbf16>
    %cst_213 = arith.constant dense<0.000000e+00> : vector<3x64xf32>
    %257 = tpu.matmul %255, %256, %cst_213 {dimension_numbers = #tpu.dot_dimension_numbers<[1], [0], [0], [1], [0, 0, 1, 1], [], []>} : vector<3x32xbf16>, vector<32x64xbf16>, vector<3x64xf32> -> vector<3x64xf32>
    %258 = arith.addf %253, %257 : vector<3x64xf32>
    %c0_214 = arith.constant 0 : index
    %c0_215 = arith.constant 0 : index
    %259 = vector.load %arg5[%c0_214, %c0_215] : memref<1x64xf32, #tpu.memory_space<vmem>>, vector<1x64xf32>
    %260 = vector.broadcast %259 : vector<1x64xf32> to vector<3x64xf32>
    %261 = arith.addf %258, %260 : vector<3x64xf32>
    %cst_216 = arith.constant 0.000000e+00 : f32
    %262 = vector.broadcast %cst_216 : f32 to vector<3x64xf32>
    %263 = arith.maximumf %261, %262 : vector<3x64xf32>
    %c6 = arith.constant 6 : index
    %c0_217 = arith.constant 0 : index
    %264 = vector.load %arg14[%c6, %c0_217] : memref<9x64xf32, #tpu.memory_space<vmem>>, vector<3x64xf32>
    tpu.vector_store %arg14[%c6, %c0_217], %263 {strides = array<i32>} : memref<9x64xf32, #tpu.memory_space<vmem>>, vector<3x64xf32>,
    %c0_218 = arith.constant 0 : index
    %c0_219 = arith.constant 0 : index
    %265 = vector.load %arg14[%c0_218, %c0_219] : memref<9x64xf32, #tpu.memory_space<vmem>>, vector<1x64xf32>
    %266 = arith.truncf %265 : vector<1x64xf32> to vector<1x64xbf16>
    %c0_220 = arith.constant 0 : index
    %c0_221 = arith.constant 0 : index
    %267 = vector.load %arg6[%c0_220, %c0_221] : memref<576x64xbf16, #tpu.memory_space<vmem>>, vector<64x64xbf16>
    %cst_222 = arith.constant dense<0.000000e+00> : vector<1x64xf32>
    %268 = tpu.matmul %266, %267, %cst_222 {dimension_numbers = #tpu.dot_dimension_numbers<[1], [0], [0], [1], [0, 0, 1, 1], [], []>} : vector<1x64xbf16>, vector<64x64xbf16>, vector<1x64xf32> -> vector<1x64xf32>
    %c1_223 = arith.constant 1 : index
    %c0_224 = arith.constant 0 : index
    %269 = vector.load %arg14[%c1_223, %c0_224] : memref<9x64xf32, #tpu.memory_space<vmem>>, vector<1x64xf32>
    %270 = arith.truncf %269 : vector<1x64xf32> to vector<1x64xbf16>
    %c64_225 = arith.constant 64 : index
    %c0_226 = arith.constant 0 : index
    %271 = vector.load %arg6[%c64_225, %c0_226] : memref<576x64xbf16, #tpu.memory_space<vmem>>, vector<64x64xbf16>
    %cst_227 = arith.constant dense<0.000000e+00> : vector<1x64xf32>
    %272 = tpu.matmul %270, %271, %cst_227 {dimension_numbers = #tpu.dot_dimension_numbers<[1], [0], [0], [1], [0, 0, 1, 1], [], []>} : vector<1x64xbf16>, vector<64x64xbf16>, vector<1x64xf32> -> vector<1x64xf32>
    %273 = arith.addf %268, %272 : vector<1x64xf32>
    %c2_228 = arith.constant 2 : index
    %c0_229 = arith.constant 0 : index
    %274 = vector.load %arg14[%c2_228, %c0_229] : memref<9x64xf32, #tpu.memory_space<vmem>>, vector<1x64xf32>
    %275 = arith.truncf %274 : vector<1x64xf32> to vector<1x64xbf16>
    %c128_230 = arith.constant 128 : index
    %c0_231 = arith.constant 0 : index
    %276 = vector.load %arg6[%c128_230, %c0_231] : memref<576x64xbf16, #tpu.memory_space<vmem>>, vector<64x64xbf16>
    %cst_232 = arith.constant dense<0.000000e+00> : vector<1x64xf32>
    %277 = tpu.matmul %275, %276, %cst_232 {dimension_numbers = #tpu.dot_dimension_numbers<[1], [0], [0], [1], [0, 0, 1, 1], [], []>} : vector<1x64xbf16>, vector<64x64xbf16>, vector<1x64xf32> -> vector<1x64xf32>
    %278 = arith.addf %273, %277 : vector<1x64xf32>
    %c3_233 = arith.constant 3 : index
    %c0_234 = arith.constant 0 : index
    %279 = vector.load %arg14[%c3_233, %c0_234] : memref<9x64xf32, #tpu.memory_space<vmem>>, vector<1x64xf32>
    %280 = arith.truncf %279 : vector<1x64xf32> to vector<1x64xbf16>
    %c192_235 = arith.constant 192 : index
    %c0_236 = arith.constant 0 : index
    %281 = vector.load %arg6[%c192_235, %c0_236] : memref<576x64xbf16, #tpu.memory_space<vmem>>, vector<64x64xbf16>
    %cst_237 = arith.constant dense<0.000000e+00> : vector<1x64xf32>
    %282 = tpu.matmul %280, %281, %cst_237 {dimension_numbers = #tpu.dot_dimension_numbers<[1], [0], [0], [1], [0, 0, 1, 1], [], []>} : vector<1x64xbf16>, vector<64x64xbf16>, vector<1x64xf32> -> vector<1x64xf32>
    %283 = arith.addf %278, %282 : vector<1x64xf32>
    %c4 = arith.constant 4 : index
    %c0_238 = arith.constant 0 : index
    %284 = vector.load %arg14[%c4, %c0_238] : memref<9x64xf32, #tpu.memory_space<vmem>>, vector<1x64xf32>
    %285 = arith.truncf %284 : vector<1x64xf32> to vector<1x64xbf16>
    %c256_239 = arith.constant 256 : index
    %c0_240 = arith.constant 0 : index
    %286 = vector.load %arg6[%c256_239, %c0_240] : memref<576x64xbf16, #tpu.memory_space<vmem>>, vector<64x64xbf16>
    %cst_241 = arith.constant dense<0.000000e+00> : vector<1x64xf32>
    %287 = tpu.matmul %285, %286, %cst_241 {dimension_numbers = #tpu.dot_dimension_numbers<[1], [0], [0], [1], [0, 0, 1, 1], [], []>} : vector<1x64xbf16>, vector<64x64xbf16>, vector<1x64xf32> -> vector<1x64xf32>
    %288 = arith.addf %283, %287 : vector<1x64xf32>
    %c5 = arith.constant 5 : index
    %c0_242 = arith.constant 0 : index
    %289 = vector.load %arg14[%c5, %c0_242] : memref<9x64xf32, #tpu.memory_space<vmem>>, vector<1x64xf32>
    %290 = arith.truncf %289 : vector<1x64xf32> to vector<1x64xbf16>
    %c320_243 = arith.constant 320 : index
    %c0_244 = arith.constant 0 : index
    %291 = vector.load %arg6[%c320_243, %c0_244] : memref<576x64xbf16, #tpu.memory_space<vmem>>, vector<64x64xbf16>
    %cst_245 = arith.constant dense<0.000000e+00> : vector<1x64xf32>
    %292 = tpu.matmul %290, %291, %cst_245 {dimension_numbers = #tpu.dot_dimension_numbers<[1], [0], [0], [1], [0, 0, 1, 1], [], []>} : vector<1x64xbf16>, vector<64x64xbf16>, vector<1x64xf32> -> vector<1x64xf32>
    %293 = arith.addf %288, %292 : vector<1x64xf32>
    %c6_246 = arith.constant 6 : index
    %c0_247 = arith.constant 0 : index
    %294 = vector.load %arg14[%c6_246, %c0_247] : memref<9x64xf32, #tpu.memory_space<vmem>>, vector<1x64xf32>
    %295 = arith.truncf %294 : vector<1x64xf32> to vector<1x64xbf16>
    %c384_248 = arith.constant 384 : index
    %c0_249 = arith.constant 0 : index
    %296 = vector.load %arg6[%c384_248, %c0_249] : memref<576x64xbf16, #tpu.memory_space<vmem>>, vector<64x64xbf16>
    %cst_250 = arith.constant dense<0.000000e+00> : vector<1x64xf32>
    %297 = tpu.matmul %295, %296, %cst_250 {dimension_numbers = #tpu.dot_dimension_numbers<[1], [0], [0], [1], [0, 0, 1, 1], [], []>} : vector<1x64xbf16>, vector<64x64xbf16>, vector<1x64xf32> -> vector<1x64xf32>
    %298 = arith.addf %293, %297 : vector<1x64xf32>
    %c7 = arith.constant 7 : index
    %c0_251 = arith.constant 0 : index
    %299 = vector.load %arg14[%c7, %c0_251] : memref<9x64xf32, #tpu.memory_space<vmem>>, vector<1x64xf32>
    %300 = arith.truncf %299 : vector<1x64xf32> to vector<1x64xbf16>
    %c448_252 = arith.constant 448 : index
    %c0_253 = arith.constant 0 : index
    %301 = vector.load %arg6[%c448_252, %c0_253] : memref<576x64xbf16, #tpu.memory_space<vmem>>, vector<64x64xbf16>
    %cst_254 = arith.constant dense<0.000000e+00> : vector<1x64xf32>
    %302 = tpu.matmul %300, %301, %cst_254 {dimension_numbers = #tpu.dot_dimension_numbers<[1], [0], [0], [1], [0, 0, 1, 1], [], []>} : vector<1x64xbf16>, vector<64x64xbf16>, vector<1x64xf32> -> vector<1x64xf32>
    %303 = arith.addf %298, %302 : vector<1x64xf32>
    %c8_255 = arith.constant 8 : index
    %c0_256 = arith.constant 0 : index
    %304 = vector.load %arg14[%c8_255, %c0_256] : memref<9x64xf32, #tpu.memory_space<vmem>>, vector<1x64xf32>
    %305 = arith.truncf %304 : vector<1x64xf32> to vector<1x64xbf16>
    %c512 = arith.constant 512 : index
    %c0_257 = arith.constant 0 : index
    %306 = vector.load %arg6[%c512, %c0_257] : memref<576x64xbf16, #tpu.memory_space<vmem>>, vector<64x64xbf16>
    %cst_258 = arith.constant dense<0.000000e+00> : vector<1x64xf32>
    %307 = tpu.matmul %305, %306, %cst_258 {dimension_numbers = #tpu.dot_dimension_numbers<[1], [0], [0], [1], [0, 0, 1, 1], [], []>} : vector<1x64xbf16>, vector<64x64xbf16>, vector<1x64xf32> -> vector<1x64xf32>
    %308 = arith.addf %303, %307 : vector<1x64xf32>
    %c0_259 = arith.constant 0 : index
    %c0_260 = arith.constant 0 : index
    %309 = vector.load %arg7[%c0_259, %c0_260] : memref<1x64xf32, #tpu.memory_space<vmem>>, vector<1x64xf32>
    %310 = arith.addf %308, %309 : vector<1x64xf32>
    %cst_261 = arith.constant 0.000000e+00 : f32
    %311 = vector.broadcast %cst_261 : f32 to vector<1x64xf32>
    %312 = arith.maximumf %310, %311 : vector<1x64xf32>
    %313 = arith.truncf %312 : vector<1x64xf32> to vector<1x64xbf16>
    %c0_262 = arith.constant 0 : index
    %c0_263 = arith.constant 0 : index
    %314 = vector.load %arg8[%c0_262, %c0_263] : memref<64x512xbf16, #tpu.memory_space<vmem>>, vector<64x512xbf16>
    %cst_264 = arith.constant dense<0.000000e+00> : vector<1x512xf32>
    %315 = tpu.matmul %313, %314, %cst_264 {dimension_numbers = #tpu.dot_dimension_numbers<[1], [0], [0], [1], [0, 0, 1, 1], [], []>} : vector<1x64xbf16>, vector<64x512xbf16>, vector<1x512xf32> -> vector<1x512xf32>
    %c0_265 = arith.constant 0 : index
    %c0_266 = arith.constant 0 : index
    %316 = vector.load %arg9[%c0_265, %c0_266] : memref<1x512xf32, #tpu.memory_space<vmem>>, vector<1x512xf32>
    %317 = arith.addf %315, %316 : vector<1x512xf32>
    %cst_267 = arith.constant 0.000000e+00 : f32
    %318 = vector.broadcast %cst_267 : f32 to vector<1x512xf32>
    %319 = arith.maximumf %317, %318 : vector<1x512xf32>
    %320 = arith.truncf %319 : vector<1x512xf32> to vector<1x512xbf16>
    %c0_268 = arith.constant 0 : index
    %c0_269 = arith.constant 0 : index
    %321 = vector.load %arg10[%c0_268, %c0_269] : memref<512x128xbf16, #tpu.memory_space<vmem>>, vector<512x128xbf16>
    %cst_270 = arith.constant dense<0.000000e+00> : vector<1x128xf32>
    %322 = tpu.matmul %320, %321, %cst_270 {dimension_numbers = #tpu.dot_dimension_numbers<[1], [0], [0], [1], [0, 0, 1, 1], [], []>} : vector<1x512xbf16>, vector<512x128xbf16>, vector<1x128xf32> -> vector<1x128xf32>
    %c0_271 = arith.constant 0 : index
    %c0_272 = arith.constant 0 : index
    %323 = vector.load %arg11[%c0_271, %c0_272] : memref<1x128xf32, #tpu.memory_space<vmem>>, vector<1x128xf32>
    %324 = arith.addf %322, %323 : vector<1x128xf32>
    %c0_273 = arith.constant 0 : index
    %c0_274 = arith.constant 0 : index
    %c0_275 = arith.constant 0 : index
    %325 = vector.load %arg12[%c0_273, %c0_274, %c0_275] : memref<1x1x128xf32, #tpu.memory_space<vmem>>, vector<1x1x128xf32>
    %326 = vector.shape_cast %325 : vector<1x1x128xf32> to vector<1x128xf32>
    %327 = vector.shape_cast %324 : vector<1x128xf32> to vector<1x1x128xf32>
    tpu.vector_store %arg12[%c0_273, %c0_274, %c0_275], %327 {strides = array<i32>} : memref<1x1x128xf32, #tpu.memory_space<vmem>>, vector<1x1x128xf32>,
    return
  }
  func.func @transform_0(%arg0: i32) -> (i32, i32, i32) {
    %c0_i32 = arith.constant 0 : i32
    %c0_i32_0 = arith.constant 0 : i32
    %c0_i32_1 = arith.constant 0 : i32
    return %arg0, %c0_i32, %c0_i32_0 : i32, i32, i32
  }
  func.func @transform_1(%arg0: i32) -> (i32, i32) {
    %c0_i32 = arith.constant 0 : i32
    %c0_i32_0 = arith.constant 0 : i32
    %c0_i32_1 = arith.constant 0 : i32
    return %c0_i32, %c0_i32_0 : i32, i32
  }
  func.func @transform_2(%arg0: i32) -> (i32, i32) {
    %c0_i32 = arith.constant 0 : i32
    %c0_i32_0 = arith.constant 0 : i32
    %c0_i32_1 = arith.constant 0 : i32
    return %c0_i32, %c0_i32_0 : i32, i32
  }
  func.func @transform_3(%arg0: i32) -> (i32, i32) {
    %c0_i32 = arith.constant 0 : i32
    %c0_i32_0 = arith.constant 0 : i32
    %c0_i32_1 = arith.constant 0 : i32
    return %c0_i32, %c0_i32_0 : i32, i32
  }
  func.func @transform_4(%arg0: i32) -> (i32, i32) {
    %c0_i32 = arith.constant 0 : i32
    %c0_i32_0 = arith.constant 0 : i32
    %c0_i32_1 = arith.constant 0 : i32
    return %c0_i32, %c0_i32_0 : i32, i32
  }
  func.func @transform_5(%arg0: i32) -> (i32, i32) {
    %c0_i32 = arith.constant 0 : i32
    %c0_i32_0 = arith.constant 0 : i32
    %c0_i32_1 = arith.constant 0 : i32
    return %c0_i32, %c0_i32_0 : i32, i32
  }
  func.func @transform_6(%arg0: i32) -> (i32, i32) {
    %c0_i32 = arith.constant 0 : i32
    %c0_i32_0 = arith.constant 0 : i32
    %c0_i32_1 = arith.constant 0 : i32
    return %c0_i32, %c0_i32_0 : i32, i32
  }
  func.func @transform_7(%arg0: i32) -> (i32, i32) {
    %c0_i32 = arith.constant 0 : i32
    %c0_i32_0 = arith.constant 0 : i32
    %c0_i32_1 = arith.constant 0 : i32
    return %c0_i32, %c0_i32_0 : i32, i32
  }
  func.func @transform_8(%arg0: i32) -> (i32, i32) {
    %c0_i32 = arith.constant 0 : i32
    %c0_i32_0 = arith.constant 0 : i32
    %c0_i32_1 = arith.constant 0 : i32
    return %c0_i32, %c0_i32_0 : i32, i32
  }
  func.func @transform_9(%arg0: i32) -> (i32, i32) {
    %c0_i32 = arith.constant 0 : i32
    %c0_i32_0 = arith.constant 0 : i32
    %c0_i32_1 = arith.constant 0 : i32
    return %c0_i32, %c0_i32_0 : i32, i32
  }
  func.func @transform_10(%arg0: i32) -> (i32, i32) {
    %c0_i32 = arith.constant 0 : i32
    %c0_i32_0 = arith.constant 0 : i32
    %c0_i32_1 = arith.constant 0 : i32
    return %c0_i32, %c0_i32_0 : i32, i32
  }
  func.func @transform_11(%arg0: i32) -> (i32, i32, i32) {
    %c0_i32 = arith.constant 0 : i32
    %c0_i32_0 = arith.constant 0 : i32
    %c0_i32_1 = arith.constant 0 : i32
    return %arg0, %c0_i32, %c0_i32_0 : i32, i32, i32
  }
}

</mosaic_0001>

<bundles_post_ra>
// kernel: dqn_forward.1
= control target key start
LH: loop header
LB: loop body
LE: loop exit
PB: predicated region body
PF: predicated region fallthrough
CT: control target
= control target key end

     0   :  { %16 = vsyncpa [#allocation5], 0  ;;  %s7524_s0 = inlined_call_operand.vmem [shape: bf16[2,64,256], index: 0, kind: input, shape index: {}]   ;;  %s7525_s1 = inlined_call_operand.vmem [shape: bf16[256,32], index: 1, kind: input, shape index: {}]   ;;  %s7526_s2 = inlined_call_operand.vmem [shape: f32[1,32], index: 2, kind: input, shape index: {}]   ;;  %s7527_s3 = inlined_call_operand.vmem [shape: bf16[512,64], index: 3, kind: input, shape index: {}]   ;;  %s7528_s4 = inlined_call_operand.vmem [shape: f32[1,64], index: 4, kind: input, shape index: {}]   ;;  %s7529_s5 = inlined_call_operand.vmem [shape: bf16[576,64], index: 5, kind: input, shape index: {}]   ;;  %s7530_s6 = inlined_call_operand.vmem [shape: f32[1,64], index: 6, kind: input, shape index: {}]   ;;  %s7531_s7 = inlined_call_operand.vmem [shape: bf16[64,512], index: 7, kind: input, shape index: {}]   ;;  %s7532_s8 = inlined_call_operand.vmem [shape: f32[1,512], index: 8, kind: input, shape index: {}]   ;;  %s7533_s9 = inlined_call_operand.vmem [shape: bf16[512,128], index: 9, kind: input, shape index: {}]   ;;  %s7534_s10 = inlined_call_operand.vmem [shape: f32[1,128], index: 10, kind: input, shape index: {}]   ;;  %s7535_s11 = inlined_call_operand.hbm [shape: f32[2,1,128], index: 11, kind: output, shape index: {}]  }
   0x1   :  { %18 = vsyncpa [#allocation5 + $0x1], 0  ;;  %s6432_s17 = smov 0   ;;  %s6434_s18 = smov 0  }
   0x2   :  { %s6436_s19 = smov 0   ;;  %s6438_s20 = smov 0  }
   0x3 LB: > { %s6453_s21 = sadd.s32 4294967295, %s6366_s20   ;;  %s5004_s22 = sadd.s32 4294967294, %s6366_s20   ;;  %s6366_s20 = sphi %s6438_s20, %s7543_s20   ;;  %s6362_s19 = sphi %s6436_s19, %s7542_s19   ;;  %s6358_s18 = sphi %s6434_s18, %s7541_s18   ;;  %s6354_s17 = sphi %s6432_s17, %s7540_s17  }
   0x4   : > { %s6457_s23 = sadd.s32 1, %s6366_s20   ;;  %s267_s24 = sadd.s32 1, %s6362_s19 }
   0x5   : > { %s264_s25 = ssub.s32 %s6366_s20, %s6457_s23  ;;  %p277_p0 = scmp.ne.s32.totalorder %s6362_s19, %s6358_s18 }
   0x6   : > { %p265_p1 = scmp.eq.s32.totalorder %s264_s25, 0  ;;  %p278_p2 = scmp.eq.s32.totalorder %s6453_s21, 1 }
   0x7   : > { %p283_p3 = scmp.ne.s32.totalorder %s6358_s18, %s6354_s17  ;;  %p284_p4 = scmp.eq.s32.totalorder %s5004_s22, 1 }
   0x8   : > { %s6468_s26 = scalar_select %p265_p1, %s6362_s19, %s267_s24  }
   0x9   : > { %p6470_p5 = por %p278_p2, %p277_p0  ;;  %p6474_p6 = por %p284_p4, %p283_p3 }
   0xa   : > { %7536 = sst [smem:[#allocation7_spill]] %s6468_s26  ;;  %p5007_p7 = scmp.ge.s32.totalorder %s6366_s20, 1 }
   0xb   : > { %p340_p8 = scmp.lt.s32.totalorder %s6366_s20, 3 }
   0xd   : > { %p341_p9 = pnand %p5007_p7, %p340_p8 }
   0xe   : > { %v6088_v0 = vld [vmem:[%s7525_s1 + $0x40] sm:$0xff] (!%p341_p9)   ;;  %v6090_v2 = vld [vmem:[%s7525_s1 + $0x48] sm:$0xff] (!%p341_p9)   ;;  %p379_p10 = scmp.lt.s32.totalorder (!%p341_p9), %s6453_s21, 1  ;;  %v6092_v4 = vld [vmem:[%s7525_s1 + $0x50] sm:$0xff] (!%p341_p9)   ;;  %v6368_v25 = vmov (!%p341_p9), 0.0   ;;  %vm6369_vm0 = vmmov (!%p341_p9), 0  }
   0xf   : > { %344 = sbr.rel (%p341_p9) target bundleno = 1403 (0x57b), region = 64  ;;  %v6089_v1 = vld [vmem:[%s7525_s1] sm:$0xff] (!%p341_p9)   ;;  %5281 = vmatprep.subr.bf16.mxu0 (!%p341_p9), %v6088_v0  ;;  %v6091_v3 = vld [vmem:[%s7525_s1 + $0x8] sm:$0xff] (!%p341_p9)   ;;  %v6093_v5 = vld [vmem:[%s7525_s1 + $0x10] sm:$0xff] (!%p341_p9)   ;;  %5554 = vmatprep.subr.bf16.mxu1 (!%p341_p9), %v6368_v25  ;;  %vm641_vm1 = vcmask (!%p341_p9), 261120   ;;  %vm1664_vm2 = vcmask (!%p341_p9), 518144  }
  0x10   : > { %5282 = vmatpush3.bf16.msra.mxu0 (!%p341_p9), %v6089_v1  ;;  %v6094_v6 = vld [vmem:[%s7525_s1 + $0x58] sm:$0xff] (!%p341_p9)   ;;  %v6096_v8 = vld [vmem:[%s7525_s1 + $0x60] sm:$0xff] (!%p341_p9)   ;;  %v6098_v10 = vld [vmem:[%s7525_s1 + $0x68] sm:$0xff] (!%p341_p9)   ;;  %5558 = vmatprep.mubr.msk.bf16.mxu1 (!%p341_p9), %vm6369_vm0, %v6368_v25  ;;  %vm3726_vm3 = vcmask (!%p341_p9), 523264   ;;  %s5277_s14 = sshll.u32 (!%p341_p9), %s6453_s21, 4 }
  0x11   : > { %5283 = vmatprep.subr.bf16.mxu0 (!%p341_p9), %v6090_v2  ;;  %v6095_v7 = vld [vmem:[%s7525_s1 + $0x18] sm:$0xff] (!%p341_p9)   ;;  %v6097_v9 = vld [vmem:[%s7525_s1 + $0x20] sm:$0xff] (!%p341_p9)   ;;  %v6099_v12 = vld [vmem:[%s7525_s1 + $0x28] sm:$0xff] (!%p341_p9)   ;;  %s7482_s26 = scalar_lea.hbm (!%p341_p9), %s7535_s11, %s5277_s14 }
  0x12   : > { %v6100_v13 = vld [vmem:[%s7525_s1 + $0x70] sm:$0xff] (!%p341_p9)   ;;  %v6102_v15 = vld [vmem:[%s7525_s1 + $0x78] sm:$0xff] (!%p341_p9)   ;;  %v6568_v30 = vld [vmem:[%s7526_s2] ss:$0 sm:$0xff] (!%p341_p9) }
  0x13   : > { %v6101_v14 = vld [vmem:[%s7525_s1 + $0x30] sm:$0xff] (!%p341_p9)   ;;  %v6103_v16 = vld [vmem:[%s7525_s1 + $0x38] sm:$0xff] (!%p341_p9)   ;;  %v6120_v50 = vld [vmem:[%s7527_s3] sm:$0xff] (!%p341_p9)  }
  0x14   : > { %5284 = vmatpush3.bf16.msra.mxu0 (!%p341_p9), %v6091_v3  ;;  %v6116_v24 = vld [vmem:[%s7527_s3 + $0x10] sm:$0xff] (!%p341_p9)   ;;  %v6118_v27 = vld [vmem:[%s7527_s3 + $0x18] sm:$0xff] (!%p341_p9)   ;;  %v6122_v57 = vld [vmem:[%s7527_s3 + $0x8] sm:$0xff] (!%p341_p9)  }
  0x15   : > { %5285 = vmatprep.subr.bf16.mxu0 (!%p341_p9), %v6092_v4  ;;  %5555 = vmatpush3.bf16.msra.mxu1 (!%p341_p9), %v6116_v24  ;;  %v6117_v26 = vld [vmem:[%s7527_s3 + $0x70] sm:$0xff] (!%p341_p9)   ;;  %v6119_v28 = vld [vmem:[%s7527_s3 + $0x78] sm:$0xff] (!%p341_p9)   ;;  %v6124_v2 = vld [vmem:[%s7527_s3 + $0x20] sm:$0xff] (!%p341_p9)  }
  0x16   : > { %s380_s12 = scalar_select %p379_p10, %s6453_s21, 1  ;;  %5556 = vmatprep.subr.bf16.mxu1 %v6368_v25  ;;  %v6121_v55 = vld [vmem:[%s7527_s3 + $0x90] sm:$0xff]   ;;  %v6123_v61 = vld [vmem:[%s7527_s3 + $0x98] sm:$0xff]  }
  0x17   : > { %s6371_s21 = smov [#allocation4]  }
  0x18   : > { %5286 = vmatpush3.bf16.msra.mxu0 %v6093_v5  ;;  %s5280_s22 = sshll.u32 %s380_s12, 6  ;;  %s6308_s29 = sshll.u32 %s6371_s21, 4  ;;  %s6309_s29 = int_to_ptr.vmem [resolvable:$false] %s6308_s29 }
  0x19   : > { %5287 = vmatprep.subr.bf16.mxu0 %v6094_v6  ;;  %s6512_s30 = scalar_lea.vmem %s7524_s0, %s5280_s22  ;;  %5557 = vmatpush3.bf16.msra.mxu1 %v6118_v27  ;;  %v6132_v27 = vld [vmem:[%s7527_s3 + $0x40] sm:$0xff]   ;;  %s6310_s13 = scalar_lea.vmem %s6309_s29, 32 }
  0x1a   : > { %v6106_v11 = vld [vmem:[%s6512_s30 + $0x4] ss:$8 sps:$4 sm:$0xff]   ;;  %v6104_v17 = vld [vmem:[%s6512_s30] ss:$8 sps:$4 sm:$0xff]   ;;  %v6107_v18 = vld [vmem:[%s6512_s30 + $0x14] ss:$8 sps:$4 sm:$0xff]   ;;  %5562 = vmatprep.subr.bf16.mxu1 %v6368_v25 }
  0x1b   : > { %600 = vmatprep.mubr.bf16.mxu0 %v6106_v11  ;;  %v6109_v19 = vld [vmem:[%s6512_s30 + $0x10] ss:$8 sps:$4 sm:$0xff]   ;;  %v6110_v20 = vld [vmem:[%s6512_s30 + $0x24] ss:$8 sps:$4 sm:$0xff]   ;;  %v6112_v21 = vld [vmem:[%s6512_s30 + $0x20] ss:$8 sps:$4 sm:$0xff]  }
  0x1c   : > { %5288 = vmatpush3.bf16.msra.mxu0 %v6095_v7  ;;  %v6113_v22 = vld [vmem:[%s6512_s30 + $0x34] ss:$8 sps:$4 sm:$0xff]   ;;  %v6115_v23 = vld [vmem:[%s6512_s30 + $0x30] ss:$8 sps:$4 sm:$0xff]   ;;  %s377_s30 = sand.u32 1, %s6358_s18  }
  0x1d   : > { %5289 = vmatprep.subr.bf16.mxu0 %v6096_v8  ;;  %v6125_v7 = vld [vmem:[%s7527_s3 + $0xb0] sm:$0xff]   ;;  %v6127_v11 = vld [vmem:[%s7527_s3 + $0xb8] sm:$0xff]   ;;  %s378_s15 = scalar_lea.vmem [#allocation4], %s377_s30  ;;  %s4937_s22 = scalar_lea.sflag [#allocation5], %s377_s30 }
  0x1e   : > { %s4949_s12 = sshll.u32 %s378_s15, 4  ;;  %s7484_s12 = int_to_ptr.vmem [resolvable:$true] %s4949_s12 }
  0x1f   : > { %s6304_s25 = scalar_lea.vmem %s7484_s12, 16  ;;  %p6311_p0 = scmp.lt.s32.totalorder %s7484_s12, %s6309_s29 }
  0x20   : > { %5290 = vmatpush3.bf16.msra.mxu0 %v6097_v9  ;;  %p6305_p11 = scmp.ne.s32.totalorder %s7484_s12, %s6304_s25  ;;  %p6312_p1 = scmp.lt.s32.totalorder %s6310_s13, %s6304_s25 }
  0x21   : > { %5291 = vmatprep.subr.bf16.mxu0 %v6098_v10  ;;  %v6126_v10 = vld [vmem:[%s7527_s3 + $0x28] sm:$0xff]  }
  0x22   : > { %p6306_p12 = pnand %p6305_p11, %p6470_p5  ;;  %p6313_p2 = por %p6312_p1, %p6311_p0 }
  0x24   : > { %5292 = vmatpush3.bf16.msra.mxu0 %v6099_v12  ;;  %p6307_p13 = pneg %p6306_p12 }
  0x25   : > { %5293 = vmatprep.subr.bf16.mxu0 %v6100_v13 }
  0x26   : > { %p6314_p3 = pnand %p6313_p2, %p6307_p13 }
  0x28   : > { %5294 = vmatpush3.bf16.msra.mxu0 %v6101_v14  ;;  %v6128_v14 = vld [vmem:[%s7527_s3 + $0x30] sm:$0xff]  }
  0x29   : > { %5295 = vmatprep.subr.bf16.mxu0 %v6102_v15 }
  0x2c   : > { %5296 = vmatpush3.bf16.msra.mxu0 %v6103_v16 }
  0x2d   : > { %5610 = vmatprep.subr.bf16.mxu0 %v6368_v25 }
  0x2f   : > { %601 = vmatmul.mubr.bf16.vlgmr.msra.gmra.mrb[0].mxu0 %v6104_v17 }
  0x30   : > { %608 = vmatprep.mubr.bf16.mxu0 %v6107_v18  ;;  %5611 = vmatpush3.bf16.msra.mxu0 %v6117_v26 }
  0x31   : > { %5612 = vmatprep.subr.bf16.mxu0 %v6368_v25 }
  0x34   : > { %5613 = vmatpush3.bf16.msra.mxu0 %v6119_v28 }
  0x35   : > { %5626 = vmatprep.subr.bf16.mxu0 %v6368_v25 }
  0x37   : > { %609 = vmatmul.mubr.bf16.gmra.mrb[4].mxu0 %v6109_v19  ;;  %v6129_v19 = vld [vmem:[%s7527_s3 + $0xd0] sm:$0xff]  }
  0x38   : > { %616 = vmatprep.mubr.bf16.mxu0 %v6110_v20 }
  0x3f   : > { %617 = vmatmul.mubr.bf16.gmra.mrb[8].mxu0 %v6112_v21  ;;  %v6130_v21 = vld [vmem:[%s7527_s3 + $0x38] sm:$0xff]  }
  0x40   : > { %624 = vmatprep.mubr.bf16.mxu0 %v6113_v22  ;;  %v6131_v22 = vld [vmem:[%s7527_s3 + $0xd8] sm:$0xff]  }
  0x47   : > { %625 = vmatmul.mubr.bf16.gmra.mrb[12].mxu0 %v6115_v23 }
  0x48   : > { %5614 = vmatprep.mubr.msk.bf16.mxu0 %vm6369_vm0, %v6368_v25 }
 0x102   : > { %v5297_v29 = vpop.f32.mrb[0].mxu0 }
 0x103   : > { %v5298_v31 = vpop.f32.mrb[1].mxu0 }
 0x104   : > { %v5299_v32 = vadd.f32 %v5298_v31, %v5297_v29  ;;  %v5300_v33 = vpop.f32.mrb[2].mxu0 }
 0x105   : > { %v5301_v34 = vpop.f32.mrb[3].mxu0 }
 0x106   : > { %v603_v35 = vadd.f32 %v5299_v32, %v6568_v30  ;;  %v5302_v36 = vadd.f32 %v5301_v34, %v5300_v33  ;;  %v6133_v32 = vld [vmem:[%s7527_s3 + $0xf0] sm:$0xff]   ;;  %v6134_v33 = vld [vmem:[%s7527_s3 + $0x48] sm:$0xff]  }
 0x108   : > { %v633_v37 = vmax.f32 %v603_v35, 0.0  ;;  %v606_v38 = vadd.f32 %v5302_v36, %v6568_v30  ;;  %v6135_v35 = vld [vmem:[%s7527_s3 + $0xf8] sm:$0xff]  }
 0x10a   : > { %642 = vst.msk [vmem:[#allocation2] sm:$0xff] %vm641_vm1, %v633_v37  ;;  %v634_v39 = vmax.f32 %v606_v38, 0.0  ;;  %v5303_v40 = vpop.f32.mrb[4].mxu0 }
 0x10b   : > { %v5304_v41 = vpop.f32.mrb[5].mxu0 }
 0x10c   : > { %643 = vst.msk [vmem:[#allocation2 + $0x8] sm:$0xff] %vm641_vm1, %v634_v39  ;;  %v5305_v42 = vadd.f32 %v5304_v41, %v5303_v40  ;;  %v5306_v43 = vpop.f32.mrb[6].mxu0  ;;  %v6136_v40 = vld [vmem:[%s7527_s3 + $0x50] sm:$0xff]  }
 0x10d   : > { %v5307_v44 = vpop.f32.mrb[7].mxu0 }
 0x10e   : > { %v611_v45 = vadd.f32 %v5305_v42, %v6568_v30  ;;  %v5308_v46 = vadd.f32 %v5307_v44, %v5306_v43  ;;  %v6137_v44 = vld [vmem:[%s7527_s3] sm:$0xff]  }
 0x110   : > { %v635_v47 = vmax.f32 %v611_v45, 0.0  ;;  %v614_v48 = vadd.f32 %v5308_v46, %v6568_v30  ;;  %v6138_v46 = vld [vmem:[%s7527_s3 + $0x58] sm:$0xff]  }
 0x111   : > { %v657_v49 = vld [vmem:[#allocation2 + $0x1] ss:$2 sm:$0x7]  ;;  %v650_v62 = vld [vmem:[#allocation2] ss:$2 sm:$0x7] }
 0x112   : > { %644 = vst.msk [vmem:[#allocation2 + $0x10] sm:$0xff] %vm641_vm1, %v635_v47  ;;  %v658_v51 = vpack.c.bf16 %v657_v49, %v657_v49  ;;  %v636_v52 = vmax.f32 %v614_v48, 0.0  ;;  %v5309_v53 = vpop.f32.mrb[8].mxu0  ;;  %v651_v4 = vpack.c.bf16 %v650_v62, %v650_v62  ;;  %v774_v12 = vld [vmem:[#allocation2 + $0x2] ss:$2 sm:$0x7] }
 0x113   : > { %v1089_v54 = vld [vmem:[#allocation2 + $0xb] ss:$2 sm:$0x7]  ;;  %v5310_v58 = vpop.f32.mrb[9].mxu0  ;;  %v775_v16 = vpack.c.bf16 %v774_v12, %v774_v12  ;;  %v6140_v49 = vld [vmem:[%s7527_s3 + $0x60] sm:$0xff]  }
 0x114   : > { %5559 = vmatmul.mubr.msk.bf16.vlgmr.msra.gmra.mrb[0].mxu1 %vm641_vm1, %v658_v51  ;;  %v1090_v56 = vpack.c.bf16 %v1089_v54, %v1089_v54  ;;  %645 = vst.msk [vmem:[#allocation2 + $0x18] sm:$0xff] %vm641_vm1, %v636_v52  ;;  %v5311_v59 = vadd.f32 %v5310_v58, %v5309_v53  ;;  %v5312_v60 = vpop.f32.mrb[10].mxu0  ;;  %v837_v24 = vld [vmem:[#allocation2 + $0x3] ss:$2 sm:$0x7]  ;;  %v6141_v52 = vld [vmem:[%s7527_s3 + $0x30] sm:$0xff]  }
 0x115   : > { %5563 = vmatpush3.bf16.msra.mxu1 %v6120_v50  ;;  %5566 = vmatprep.mubr.msk.bf16.mxu1 %vm6369_vm0, %v6368_v25  ;;  %v5313_v63 = vpop.f32.mrb[11].mxu0  ;;  %v838_v28 = vpack.c.bf16 %v837_v24, %v837_v24  ;;  %v900_v37 = vld [vmem:[#allocation2 + $0x8] ss:$2 sm:$0x7]  ;;  %v6143_v54 = vld [vmem:[%s7527_s3 + $0x38] sm:$0xff]  }
 0x116   : > { %5615 = vmatmul.mubr.msk.bf16.vlgmr.msra.gmra.mrb[16].mxu0 %vm641_vm1, %v1090_v56  ;;  %5564 = vmatprep.subr.bf16.mxu1 %v6368_v25  ;;  %v619_v0 = vadd.f32 %v5311_v59, %v6568_v30  ;;  %v5314_v1 = vadd.f32 %v5313_v63, %v5312_v60  ;;  %v901_v42 = vpack.c.bf16 %v900_v37, %v900_v37  ;;  %v963_v47 = vld [vmem:[#allocation2 + $0x9] ss:$2 sm:$0x7]  ;;  %v6145_v60 = vld [vmem:[%s7527_s3 + $0x50] sm:$0xff]   ;;  %v6147_v63 = vld [vmem:[%s7527_s3 + $0x58] sm:$0xff]  }
 0x117   : > { %5627 = vmatpush3.bf16.msra.mxu0 %v6121_v55  ;;  %5630 = vmatprep.mubr.msk.bf16.mxu0 %vm6369_vm0, %v6368_v25  ;;  %v964_v50 = vpack.c.bf16 %v963_v47, %v963_v47  ;;  %v6142_v53 = vld [vmem:[%s7527_s3 + $0x68] sm:$0xff]  }
 0x118   : > { %5628 = vmatprep.subr.bf16.mxu0 %v6368_v25  ;;  %v622_v6 = vadd.f32 %v5314_v1, %v6568_v30  ;;  %v637_v8 = vmax.f32 %v619_v0, 0.0  ;;  %v1026_v55 = vld [vmem:[#allocation2 + $0xa] ss:$2 sm:$0x7]  ;;  %v6148_v1 = vld [vmem:[%s7527_s3 + $0xa0] sm:$0xff]  }
 0x119   : > { %5565 = vmatpush3.bf16.msra.mxu1 %v6122_v57  ;;  %v1215_v3 = vld [vmem:[#allocation2 + $0x11] ss:$2 sm:$0x7]  ;;  %v1666_v48 = vld [vmem:[#allocation2 + $0x10] ss:$2 sm:$0x7]  ;;  %v1027_v58 = vpack.c.bf16 %v1026_v55, %v1026_v55 }
 0x11a   : > { %5570 = vmatprep.subr.bf16.mxu1 %v6368_v25  ;;  %v1216_v5 = vpack.c.bf16 %v1215_v3, %v1215_v3  ;;  %v638_v9 = vmax.f32 %v622_v6, 0.0  ;;  %646 = vst.msk [vmem:[#allocation2 + $0x20] sm:$0xff] %vm641_vm1, %v637_v8  ;;  %v1341_v13 = vld [vmem:[#allocation2 + $0x13] ss:$2 sm:$0x7]  ;;  %v5315_v15 = vpop.f32.mrb[12].mxu0  ;;  %v1667_v51 = vpack.c.bf16 %v1666_v48, %v1666_v48 }
 0x11b   : > { %5629 = vmatpush3.bf16.msra.mxu0 %v6123_v61  ;;  %v1342_v17 = vpack.c.bf16 %v1341_v13, %v1341_v13  ;;  %v5316_v18 = vpop.f32.mrb[13].mxu0  ;;  %v1467_v26 = vld [vmem:[#allocation2 + $0x19] ss:$2 sm:$0x7]  ;;  %v6144_v57 = vld [vmem:[%s7527_s3 + $0x80] sm:$0xff]   ;;  %v6146_v61 = vld [vmem:[%s7527_s3 + $0x88] sm:$0xff]  }
 0x11c   : > { %5567 = vmatmul.mubr.msk.bf16.vlgmr.msra.gmra.mrb[4].mxu1 %vm641_vm1, %v651_v4  ;;  %5642 = vmatprep.subr.bf16.mxu0 %v6368_v25  ;;  %647 = vst.msk [vmem:[#allocation2 + $0x28] sm:$0xff] %vm641_vm1, %v638_v9  ;;  %v5317_v20 = vadd.f32 %v5316_v18, %v5315_v15  ;;  %v1468_v29 = vpack.c.bf16 %v1467_v26, %v1467_v26  ;;  %v5318_v34 = vpop.f32.mrb[14].mxu0  ;;  %v1593_v38 = vld [vmem:[#allocation2 + $0x1b] ss:$2 sm:$0x7]  ;;  %v6149_v3 = vld [vmem:[%s7527_s3 + $0x70] sm:$0xff]  }
 0x11d   : > { %5571 = vmatpush3.bf16.msra.mxu1 %v6124_v2  ;;  %5574 = vmatprep.mubr.msk.bf16.mxu1 %vm6369_vm0, %v6368_v25  ;;  %v5319_v36 = vpop.f32.mrb[15].mxu0  ;;  %v1594_v43 = vpack.c.bf16 %v1593_v38, %v1593_v38  ;;  %v1850_v56 = vld [vmem:[#allocation2 + $0x13] ss:$2 sm:$0x7]  ;;  %v6151_v6 = vld [vmem:[%s7527_s3 + $0x78] sm:$0xff]   ;;  %v6152_v8 = vld [vmem:[%s7527_s3 + $0xc0] sm:$0xff]  }
 0x11e   : > { %5631 = vmatmul.mubr.msk.bf16.vlgmr.msra.gmra.mrb[20].mxu0 %vm641_vm1, %v1216_v5  ;;  %5572 = vmatprep.subr.bf16.mxu1 %v6368_v25  ;;  %v627_v23 = vadd.f32 %v5317_v20, %v6568_v30  ;;  %v5320_v39 = vadd.f32 %v5319_v36, %v5318_v34  ;;  %v1851_v59 = vpack.c.bf16 %v1850_v56, %v1850_v56  ;;  %v1152_v62 = vld [vmem:[#allocation2 + $0x10] ss:$2 sm:$0x7]  ;;  %v1974_v2 = vld [vmem:[#allocation2 + $0x19] ss:$2 sm:$0x7] }
 0x11f   : > { %5643 = vmatpush3.bf16.msra.mxu0 %v6125_v7  ;;  %5646 = vmatprep.mubr.msk.bf16.mxu0 %vm6369_vm0, %v6368_v25  ;;  %v1153_v0 = vpack.c.bf16 %v1152_v62, %v1152_v62  ;;  %v1975_v4 = vpack.c.bf16 %v1974_v2, %v1974_v2  ;;  %v6150_v5 = vld [vmem:[%s7527_s3 + $0xa8] sm:$0xff]   ;;  %v1278_v7 = vld [vmem:[#allocation2 + $0x12] ss:$2 sm:$0x7]  ;;  %v6175_v55 = vld [vmem:[%s7527_s3 + $0x38] sm:$0xff]  }
 0x120   : > { %5644 = vmatprep.subr.bf16.mxu0 %v6368_v25  ;;  %v639_v31 = vmax.f32 %v627_v23, 0.0  ;;  %v630_v41 = vadd.f32 %v5320_v39, %v6568_v30  ;;  %v6139_v30 = vld [vmem:[%s7527_s3 + $0x8] sm:$0xff]   ;;  %v2098_v9 = vld [vmem:[#allocation2 + $0x1b] ss:$2 sm:$0x7]  ;;  %v6157_v20 = vld [vmem:[%s7527_s3 + $0xb0] sm:$0xff]  }
 0x121   : > { %5573 = vmatpush3.bf16.msra.mxu1 %v6126_v10  ;;  %v1279_v10 = vpack.c.bf16 %v1278_v7, %v1278_v7  ;;  %v2099_v12 = vpack.c.bf16 %v2098_v9, %v2098_v9  ;;  %v6154_v13 = vld [vmem:[%s7527_s3 + $0xc8] sm:$0xff]   ;;  %v1404_v15 = vld [vmem:[#allocation2 + $0x18] ss:$2 sm:$0x7]  ;;  %v6160_v26 = vld [vmem:[%s7527_s3 + $0x10] sm:$0xff]  }
 0x122   : > { %5578 = vmatprep.subr.bf16.mxu1 %v6368_v25  ;;  %648 = vst.msk [vmem:[#allocation2 + $0x30] sm:$0xff] %vm641_vm1, %v639_v31  ;;  %v640_v45 = vmax.f32 %v630_v41, 0.0  ;;  %v1405_v18 = vpack.c.bf16 %v1404_v15, %v1404_v15  ;;  %v1530_v23 = vld [vmem:[#allocation2 + $0x1a] ss:$2 sm:$0x7]  ;;  %v6165_v38 = vld [vmem:[%s7527_s3 + $0xf0] sm:$0xff]  }
 0x123   : > { %5645 = vmatpush3.bf16.msra.mxu0 %v6127_v11  ;;  %v6153_v11 = vld [vmem:[%s7527_s3 + $0x90] sm:$0xff]   ;;  %v2350_v24 = vld [vmem:[#allocation2 + $0x23] ss:$2 sm:$0x7]  ;;  %v6162_v31 = vld [vmem:[%s7527_s3 + $0x18] sm:$0xff]  }
 0x124   : > { %5575 = vmatmul.mubr.msk.bf16.vlgmr.msra.gmra.mrb[8].mxu1 %vm641_vm1, %v775_v16  ;;  %5658 = vmatprep.subr.bf16.mxu0 %v6368_v25  ;;  %649 = vst.msk [vmem:[#allocation2 + $0x38] sm:$0xff] %vm641_vm1, %v640_v45  ;;  %v2224_v16 = vld [vmem:[#allocation2 + $0x21] ss:$2 sm:$0x7]  ;;  %v6166_v39 = vld [vmem:[%s7527_s3 + $0x28] sm:$0xff]   ;;  %v6183_v7 = vld [vmem:[%s7527_s3 + $0x78] sm:$0xff]  }
 0x125   : > { %5579 = vmatpush3.bf16.msra.mxu1 %v6128_v14  ;;  %5582 = vmatprep.mubr.msk.bf16.mxu1 %vm6369_vm0, %v6368_v25  ;;  %v6155_v14 = vld [vmem:[%s7527_s3 + $0x98] sm:$0xff]   ;;  %v2476_v34 = vld [vmem:[#allocation2 + $0x29] ss:$2 sm:$0x7]  ;;  %v6180_v2 = vld [vmem:[%s7527_s3 + $0xa0] sm:$0xff]  }
 0x126   : > { %5647 = vmatmul.mubr.msk.bf16.vlgmr.msra.gmra.mrb[24].mxu0 %vm641_vm1, %v1342_v17  ;;  %5580 = vmatprep.subr.bf16.mxu1 %v6368_v25  ;;  %v6156_v17 = vld [vmem:[%s7527_s3 + $0xe0] sm:$0xff]   ;;  %v2477_v37 = vpack.c.bf16 %v2476_v34, %v2476_v34  ;;  %v1788_v41 = vld [vmem:[#allocation2 + $0x12] ss:$2 sm:$0x7]  ;;  %v6171_v47 = vld [vmem:[%s7527_s3 + $0x8] sm:$0xff]  }
 0x127   : > { %5659 = vmatpush3.bf16.msra.mxu0 %v6129_v19  ;;  %5662 = vmatprep.mubr.msk.bf16.mxu0 %vm6369_vm0, %v6368_v25  ;;  %v2225_v19 = vpack.c.bf16 %v2224_v16, %v2224_v16  ;;  %v1912_v48 = vld [vmem:[#allocation2 + $0x18] ss:$2 sm:$0x7]  ;;  %v6178_v62 = vld [vmem:[%s7527_s3 + $0x88] sm:$0xff]   ;;  %v6184_v9 = vld [vmem:[%s7527_s3 + $0xc0] sm:$0xff]  }
 0x128   : > { %5660 = vmatprep.subr.bf16.mxu0 %v6368_v25  ;;  %v2036_v56 = vld [vmem:[#allocation2 + $0x1a] ss:$2 sm:$0x7]  ;;  %v2413_v15 = vld [vmem:[#allocation2 + $0x28] ss:$2 sm:$0x7] }
 0x129   : > { %5581 = vmatpush3.bf16.msra.mxu1 %v6130_v21  ;;  %v6158_v21 = vld [vmem:[%s7527_s3 + $0xe8] sm:$0xff]   ;;  %v6192_v16 = vld [vmem:[%s7527_s3 + $0x98] sm:$0xff]  }
 0x12a   : > { %5586 = vmatprep.subr.bf16.mxu1 %v6368_v25  ;;  %v6200_v34 = vld [vmem:[%s7527_s3 + $0xd8] sm:$0xff]  }
 0x12b   : > { %5661 = vmatpush3.bf16.msra.mxu0 %v6131_v22  ;;  %v6159_v22 = vld [vmem:[%s7527_s3 + $0xb8] sm:$0xff]  }
 0x12c   : > { %5583 = vmatmul.mubr.msk.bf16.vlgmr.msra.gmra.mrb[12].mxu1 %vm641_vm1, %v838_v28  ;;  %5674 = vmatprep.subr.bf16.mxu0 %v6368_v25  ;;  %v2351_v28 = vpack.c.bf16 %v2350_v24, %v2350_v24  ;;  %v6196_v24 = vld [vmem:[%s7527_s3 + $0xb8] sm:$0xff]  }
 0x12d   : > { %5587 = vmatpush3.bf16.msra.mxu1 %v6132_v27  ;;  %5590 = vmatprep.mubr.msk.bf16.mxu1 %vm6369_vm0, %v6368_v25  ;;  %v1531_v27 = vpack.c.bf16 %v1530_v23, %v1530_v23  ;;  %v2539_v23 = vld [vmem:[#allocation2 + $0x2a] ss:$2 sm:$0x7] }
 0x12e   : > { %5663 = vmatmul.mubr.msk.bf16.vlgmr.msra.gmra.mrb[28].mxu0 %vm641_vm1, %v1468_v29  ;;  %5588 = vmatprep.subr.bf16.mxu1 %v6368_v25  ;;  %v6161_v29 = vld [vmem:[%s7527_s3 + $0xd0] sm:$0xff]  }
 0x12f   : > { %5675 = vmatpush3.bf16.msra.mxu0 %v6133_v32  ;;  %5678 = vmatprep.mubr.msk.bf16.mxu0 %vm6369_vm0, %v6368_v25  ;;  %v6163_v32 = vld [vmem:[%s7527_s3 + $0xd8] sm:$0xff]  }
 0x130   : > { %5676 = vmatprep.subr.bf16.mxu0 %v6368_v25 }
 0x131   : > { %5589 = vmatpush3.bf16.msra.mxu1 %v6134_v33  ;;  %v1672_v33 = vld [vmem:[#allocation2 + $0x11] ss:$2 sm:$0x7] }
 0x132   : > { %5594 = vmatprep.subr.bf16.mxu1 %v6368_v25  ;;  %v1673_v36 = vpack.c.bf16 %v1672_v33, %v1672_v33  ;;  %v2680_v33 = vld [vmem:[#allocation2 + $0x21] ss:$2 sm:$0x7] }
 0x133   : > { %5677 = vmatpush3.bf16.msra.mxu0 %v6135_v35  ;;  %v6164_v35 = vld [vmem:[%s7527_s3 + $0x20] sm:$0xff]  }
 0x134   : > { %5591 = vmatmul.mubr.msk.bf16.vlgmr.msra.gmra.mrb[16].mxu1 %vm641_vm1, %v901_v42  ;;  %5690 = vmatprep.subr.bf16.mxu0 %v6368_v25  ;;  %v2602_v42 = vld [vmem:[#allocation2 + $0x2b] ss:$2 sm:$0x7] }
 0x135   : > { %5595 = vmatpush3.bf16.msra.mxu1 %v6136_v40  ;;  %5598 = vmatprep.mubr.msk.bf16.mxu1 %vm6369_vm0, %v6368_v25  ;;  %v6167_v40 = vld [vmem:[%s7527_s3 + $0xf8] sm:$0xff]   ;;  %v2603_v45 = vpack.c.bf16 %v2602_v42, %v2602_v42 }
 0x136   : > { %5679 = vmatmul.mubr.msk.bf16.vlgmr.msra.gmra.mrb[32].mxu0 %vm641_vm1, %v1594_v43  ;;  %5596 = vmatprep.subr.bf16.mxu1 %v6368_v25  ;;  %v6168_v43 = vld [vmem:[%s7527_s3 + $0x40] sm:$0xff]   ;;  %v6204_v42 = vld [vmem:[%s7527_s3 + $0xf8] sm:$0xff]  }
 0x137   : > { %5691 = vmatpush3.bf16.msra.mxu0 %v6137_v44  ;;  %5694 = vmatprep.mubr.msk.bf16.mxu0 %vm6369_vm0, %v6368_v25  ;;  %v1789_v44 = vpack.c.bf16 %v1788_v41, %v1788_v41  ;;  %v2796_v41 = vld [vmem:[#allocation2 + $0x22] ss:$2 sm:$0x7] }
 0x138   : > { %5692 = vmatprep.subr.bf16.mxu0 %v6368_v25 }
 0x139   : > { %5597 = vmatpush3.bf16.msra.mxu1 %v6138_v46  ;;  %v6169_v46 = vld [vmem:[%s7527_s3] sm:$0xff]  }
 0x13a   : > { %5602 = vmatprep.subr.bf16.mxu1 %v6368_v25 }
 0x13b   : > { %5693 = vmatpush3.bf16.msra.mxu0 %v6139_v30  ;;  %v6170_v30 = vld [vmem:[%s7527_s3 + $0x48] sm:$0xff]  }
 0x13c   : > { %5599 = vmatmul.mubr.msk.bf16.vlgmr.msra.gmra.mrb[20].mxu1 %vm641_vm1, %v964_v50  ;;  %5706 = vmatprep.subr.bf16.mxu0 %v6368_v25  ;;  %v6172_v50 = vld [vmem:[%s7527_s3 + $0x60] sm:$0xff]  }
 0x13d   : > { %5603 = vmatpush3.bf16.msra.mxu1 %v6140_v49  ;;  %5606 = vmatprep.mubr.msk.bf16.mxu1 %vm6369_vm0, %v6368_v25  ;;  %v2674_v49 = vld [vmem:[#allocation2 + $0x20] ss:$2 sm:$0x7] }
 0x13e   : > { %5695 = vmatmul.mubr.msk.bf16.vlgmr.msra.gmra.mrb[36].mxu0 %vm641_vm1, %v1667_v51  ;;  %5604 = vmatprep.subr.bf16.mxu1 %v6368_v25  ;;  %v1913_v51 = vpack.c.bf16 %v1912_v48, %v1912_v48  ;;  %v6199_v48 = vld [vmem:[%s7527_s3 + $0x60] sm:$0xff]  }
 0x13f   : > { %5707 = vmatpush3.bf16.msra.mxu0 %v6141_v52  ;;  %5710 = vmatprep.mubr.msk.bf16.mxu0 %vm6369_vm0, %v6368_v25  ;;  %v2675_v52 = vpack.c.bf16 %v2674_v49, %v2674_v49 }
 0x140   : > { %5708 = vmatprep.subr.bf16.mxu0 %v6368_v25 }
 0x141   : > { %5605 = vmatpush3.bf16.msra.mxu1 %v6142_v53  ;;  %v6173_v53 = vld [vmem:[%s7527_s3 + $0x30] sm:$0xff]  }
 0x142   : > { %5618 = vmatprep.subr.bf16.mxu1 %v6368_v25 }
 0x143   : > { %5709 = vmatpush3.bf16.msra.mxu0 %v6143_v54  ;;  %v6174_v54 = vld [vmem:[%s7527_s3 + $0x68] sm:$0xff]  }
 0x144   : > { %5607 = vmatmul.mubr.msk.bf16.vlgmr.msra.gmra.mrb[24].mxu1 %vm641_vm1, %v1027_v58  ;;  %5722 = vmatprep.subr.bf16.mxu0 %v6368_v25  ;;  %v6176_v58 = vld [vmem:[%s7527_s3 + $0x80] sm:$0xff]  }
 0x145   : > { %5619 = vmatpush3.bf16.msra.mxu1 %v6144_v57  ;;  %5622 = vmatprep.mubr.msk.bf16.mxu1 %vm6369_vm0, %v6368_v25  ;;  %v2858_v57 = vld [vmem:[#allocation2 + $0x23] ss:$2 sm:$0x7] }
 0x146   : > { %5711 = vmatmul.mubr.msk.bf16.vlgmr.msra.gmra.mrb[40].mxu0 %vm641_vm1, %v1851_v59  ;;  %5620 = vmatprep.subr.bf16.mxu1 %v6368_v25  ;;  %v2037_v59 = vpack.c.bf16 %v2036_v56, %v2036_v56  ;;  %v6217_v56 = vld [vmem:[%s7529_s5 + $0x10] sm:$0xff]  }
 0x147   : > { %5723 = vmatpush3.bf16.msra.mxu0 %v6145_v60  ;;  %5726 = vmatprep.mubr.msk.bf16.mxu0 %vm6369_vm0, %v6368_v25  ;;  %v2859_v60 = vpack.c.bf16 %v2858_v57, %v2858_v57  ;;  %v6205_v57 = vld [vmem:[%s7527_s3 + $0x88] sm:$0xff]  }
 0x148   : > { %5724 = vmatprep.subr.bf16.mxu0 %v6368_v25 }
 0x149   : > { %5621 = vmatpush3.bf16.msra.mxu1 %v6146_v61  ;;  %v6177_v61 = vld [vmem:[%s7527_s3 + $0x50] sm:$0xff]  }
 0x14a   : > { %5634 = vmatprep.subr.bf16.mxu1 %v6368_v25 }
 0x14b   : > { %5725 = vmatpush3.bf16.msra.mxu0 %v6147_v63  ;;  %v2161_v63 = vld [vmem:[#allocation2 + $0x20] ss:$2 sm:$0x7] }
 0x14c   : > { %5623 = vmatmul.mubr.msk.bf16.vlgmr.msra.gmra.mrb[28].mxu1 %vm641_vm1, %v1153_v0  ;;  %5738 = vmatprep.subr.bf16.mxu0 %v6368_v25  ;;  %v6179_v0 = vld [vmem:[%s7527_s3 + $0x58] sm:$0xff]  }
 0x14d   : > { %5635 = vmatpush3.bf16.msra.mxu1 %v6148_v1  ;;  %5638 = vmatprep.mubr.msk.bf16.mxu1 %vm6369_vm0, %v6368_v25  ;;  %v2162_v1 = vpack.c.bf16 %v2161_v63, %v2161_v63  ;;  %v3295_v63 = vld [vmem:[#allocation2 + $0x32] ss:$2 sm:$0x7] }
 0x14e   : > { %5727 = vmatmul.mubr.msk.bf16.vlgmr.msra.gmra.mrb[44].mxu0 %vm641_vm1, %v1975_v4  ;;  %5636 = vmatprep.subr.bf16.mxu1 %v6368_v25  ;;  %v6181_v4 = vld [vmem:[%s7527_s3 + $0x70] sm:$0xff]  }
 0x14f   : > { %5739 = vmatpush3.bf16.msra.mxu0 %v6149_v3  ;;  %5742 = vmatprep.mubr.msk.bf16.mxu0 %vm6369_vm0, %v6368_v25  ;;  %v2982_v3 = vld [vmem:[#allocation2 + $0x29] ss:$2 sm:$0x7] }
 0x150   : > { %5740 = vmatprep.subr.bf16.mxu0 %v6368_v25 }
 0x151   : > { %5637 = vmatpush3.bf16.msra.mxu1 %v6150_v5  ;;  %v2983_v5 = vpack.c.bf16 %v2982_v3, %v2982_v3  ;;  %v3421_v3 = vld [vmem:[#allocation2 + $0x38] ss:$2 sm:$0x7] }
 0x152   : > { %5650 = vmatprep.subr.bf16.mxu1 %v6368_v25 }
 0x153   : > { %5741 = vmatpush3.bf16.msra.mxu0 %v6151_v6  ;;  %v6182_v6 = vld [vmem:[%s7527_s3 + $0xa8] sm:$0xff]  }
 0x154   : > { %5639 = vmatmul.mubr.msk.bf16.vlgmr.msra.gmra.mrb[32].mxu1 %vm641_vm1, %v1279_v10  ;;  %5754 = vmatprep.subr.bf16.mxu0 %v6368_v25  ;;  %v3106_v10 = vld [vmem:[#allocation2 + $0x2b] ss:$2 sm:$0x7] }
 0x155   : > { %5651 = vmatpush3.bf16.msra.mxu1 %v6152_v8  ;;  %5654 = vmatprep.mubr.msk.bf16.mxu1 %vm6369_vm0, %v6368_v25  ;;  %v2287_v8 = vld [vmem:[#allocation2 + $0x22] ss:$2 sm:$0x7] }
 0x156   : > { %5743 = vmatmul.mubr.msk.bf16.vlgmr.msra.gmra.mrb[48].mxu0 %vm641_vm1, %v2099_v12  ;;  %5652 = vmatprep.subr.bf16.mxu1 %v6368_v25  ;;  %v6190_v12 = vld [vmem:[%s7527_s3 + $0x90] sm:$0xff]  }
 0x157   : > { %5755 = vmatpush3.bf16.msra.mxu0 %v6153_v11  ;;  %5758 = vmatprep.mubr.msk.bf16.mxu0 %vm6369_vm0, %v6368_v25  ;;  %v2288_v11 = vpack.c.bf16 %v2287_v8, %v2287_v8  ;;  %v6212_v8 = vld [vmem:[%s7529_s5 + $0x20] sm:$0xff]  }
 0x158   : > { %5756 = vmatprep.subr.bf16.mxu0 %v6368_v25 }
 0x159   : > { %5653 = vmatpush3.bf16.msra.mxu1 %v6154_v13  ;;  %v3107_v13 = vpack.c.bf16 %v3106_v10, %v3106_v10  ;;  %v6214_v10 = vld [vmem:[%s7529_s5 + $0x28] sm:$0xff]  }
 0x15a   : > { %5666 = vmatprep.subr.bf16.mxu1 %v6368_v25 }
 0x15b   : > { %5757 = vmatpush3.bf16.msra.mxu0 %v6155_v14  ;;  %v6185_v14 = vld [vmem:[%s7527_s3 + $0xc8] sm:$0xff]  }
 0x15c   : > { %5655 = vmatmul.mubr.msk.bf16.vlgmr.msra.gmra.mrb[36].mxu1 %vm641_vm1, %v1405_v18  ;;  %5770 = vmatprep.subr.bf16.mxu0 %v6368_v25  ;;  %v6186_v18 = vld [vmem:[%s7527_s3 + $0xe0] sm:$0xff]  }
 0x15d   : > { %5667 = vmatpush3.bf16.msra.mxu1 %v6156_v17  ;;  %5670 = vmatprep.mubr.msk.bf16.mxu1 %vm6369_vm0, %v6368_v25  ;;  %v3232_v17 = vld [vmem:[#allocation2 + $0x31] ss:$2 sm:$0x7] }
 0x15e   : > { %5759 = vmatmul.mubr.msk.bf16.vlgmr.msra.gmra.mrb[52].mxu0 %vm641_vm1, %v2225_v19  ;;  %5668 = vmatprep.subr.bf16.mxu1 %v6368_v25  ;;  %v2414_v19 = vpack.c.bf16 %v2413_v15, %v2413_v15  ;;  %v6216_v15 = vld [vmem:[%s7529_s5 + $0x30] sm:$0xff]  }
 0x15f   : > { %5771 = vmatpush3.bf16.msra.mxu0 %v6157_v20  ;;  %5774 = vmatprep.mubr.msk.bf16.mxu0 %vm6369_vm0, %v6368_v25  ;;  %v3233_v20 = vpack.c.bf16 %v3232_v17, %v3232_v17 }
 0x160   : > { %5772 = vmatprep.subr.bf16.mxu0 %v6368_v25 }
 0x161   : > { %5669 = vmatpush3.bf16.msra.mxu1 %v6158_v21  ;;  %v6194_v21 = vld [vmem:[%s7527_s3 + $0xb0] sm:$0xff]  }
 0x162   : > { %5682 = vmatprep.subr.bf16.mxu1 %v6368_v25 }
 0x163   : > { %5773 = vmatpush3.bf16.msra.mxu0 %v6159_v22  ;;  %v6187_v22 = vld [vmem:[%s7527_s3 + $0xe8] sm:$0xff]  }
 0x164   : > { %5671 = vmatmul.mubr.msk.bf16.vlgmr.msra.gmra.mrb[40].mxu1 %vm641_vm1, %v1531_v27  ;;  %5786 = vmatprep.subr.bf16.mxu0 %v6368_v25  ;;  %v6188_v27 = vld [vmem:[%s7527_s3 + $0x10] sm:$0xff]  }
 0x165   : > { %5683 = vmatpush3.bf16.msra.mxu1 %v6160_v26  ;;  %5686 = vmatprep.mubr.msk.bf16.mxu1 %vm6369_vm0, %v6368_v25  ;;  %v3358_v26 = vld [vmem:[#allocation2 + $0x33] ss:$2 sm:$0x7] }
 0x166   : > { %5775 = vmatmul.mubr.msk.bf16.vlgmr.msra.gmra.mrb[56].mxu0 %vm641_vm1, %v2351_v28  ;;  %5684 = vmatprep.subr.bf16.mxu1 %v6368_v25  ;;  %v2540_v28 = vpack.c.bf16 %v2539_v23, %v2539_v23 }
 0x167   : > { %5787 = vmatpush3.bf16.msra.mxu0 %v6161_v29  ;;  %5790 = vmatprep.mubr.msk.bf16.mxu0 %vm6369_vm0, %v6368_v25  ;;  %v3359_v29 = vpack.c.bf16 %v3358_v26, %v3358_v26 }
 0x168   : > { %5788 = vmatprep.subr.bf16.mxu0 %v6368_v25 }
 0x169   : > { %5685 = vmatpush3.bf16.msra.mxu1 %v6162_v31  ;;  %v6198_v31 = vld [vmem:[%s7527_s3 + $0xd0] sm:$0xff]  }
 0x16a   : > { %5698 = vmatprep.subr.bf16.mxu1 %v6368_v25 }
 0x16b   : > { %5789 = vmatpush3.bf16.msra.mxu0 %v6163_v32  ;;  %v6189_v32 = vld [vmem:[%s7527_s3 + $0x18] sm:$0xff]  }
 0x16c   : > { %5687 = vmatmul.mubr.msk.bf16.vlgmr.msra.gmra.mrb[44].mxu1 %vm641_vm1, %v1673_v36  ;;  %5802 = vmatprep.subr.bf16.mxu0 %v6368_v25  ;;  %v6191_v36 = vld [vmem:[%s7527_s3 + $0x20] sm:$0xff]  }
 0x16d   : > { %5699 = vmatpush3.bf16.msra.mxu1 %v6164_v35  ;;  %5702 = vmatprep.mubr.msk.bf16.mxu1 %vm6369_vm0, %v6368_v25  ;;  %v3484_v35 = vld [vmem:[#allocation2 + $0x39] ss:$2 sm:$0x7] }
 0x16e   : > { %5791 = vmatmul.mubr.msk.bf16.vlgmr.msra.gmra.mrb[60].mxu0 %vm641_vm1, %v2477_v37  ;;  %5700 = vmatprep.subr.bf16.mxu1 %v6368_v25  ;;  %v2681_v37 = vpack.c.bf16 %v2680_v33, %v2680_v33 }
 0x16f   : > { %5803 = vmatpush3.bf16.msra.mxu0 %v6165_v38  ;;  %5806 = vmatprep.mubr.msk.bf16.mxu0 %vm6369_vm0, %v6368_v25  ;;  %v3485_v38 = vpack.c.bf16 %v3484_v35, %v3484_v35 }
 0x170   : > { %5804 = vmatprep.subr.bf16.mxu0 %v6368_v25 }
 0x171   : > { %5701 = vmatpush3.bf16.msra.mxu1 %v6166_v39  ;;  %v6202_v39 = vld [vmem:[%s7527_s3 + $0xf0] sm:$0xff]  }
 0x172   : > { %5714 = vmatprep.subr.bf16.mxu1 %v6368_v25 }
 0x173   : > { %5805 = vmatpush3.bf16.msra.mxu0 %v6167_v40  ;;  %v6193_v40 = vld [vmem:[%s7527_s3 + $0x28] sm:$0xff]  }
 0x174   : > { %5703 = vmatmul.mubr.msk.bf16.vlgmr.msra.gmra.mrb[48].mxu1 %vm641_vm1, %v1789_v44  ;;  %5818 = vmatprep.subr.bf16.mxu0 %v6368_v25  ;;  %v6195_v44 = vld [vmem:[%s7527_s3 + $0x40] sm:$0xff]  }
 0x175   : > { %5715 = vmatpush3.bf16.msra.mxu1 %v6168_v43  ;;  %5718 = vmatprep.mubr.msk.bf16.mxu1 %vm6369_vm0, %v6368_v25  ;;  %v3610_v43 = vld [vmem:[#allocation2 + $0x3b] ss:$2 sm:$0x7] }
 0x176   : > { %5807 = vmatmul.mubr.msk.bf16.vlgmr.msra.gmra.mrb[64].mxu0 %vm641_vm1, %v2603_v45  ;;  %5716 = vmatprep.subr.bf16.mxu1 %v6368_v25  ;;  %v2797_v45 = vpack.c.bf16 %v2796_v41, %v2796_v41 }
 0x177   : > { %5819 = vmatpush3.bf16.msra.mxu0 %v6169_v46  ;;  %5822 = vmatprep.mubr.msk.bf16.mxu0 %vm6369_vm0, %v6368_v25  ;;  %v3611_v46 = vpack.c.bf16 %v3610_v43, %v3610_v43 }
 0x178   : > { %5820 = vmatprep.subr.bf16.mxu0 %v6368_v25 }
 0x179   : > { %5717 = vmatpush3.bf16.msra.mxu1 %v6170_v30  ;;  %v6197_v30 = vld [vmem:[%s7527_s3 + $0x48] sm:$0xff]  }
 0x17a   : > { %5730 = vmatprep.subr.bf16.mxu1 %v6368_v25 }
 0x17b   : > { %5821 = vmatpush3.bf16.msra.mxu0 %v6171_v47  ;;  %v2920_v47 = vld [vmem:[#allocation2 + $0x28] ss:$2 sm:$0x7] }
 0x17c   : > { %5719 = vmatmul.mubr.msk.bf16.vlgmr.msra.gmra.mrb[52].mxu1 %vm641_vm1, %v1913_v51  ;;  %5834 = vmatprep.subr.bf16.mxu0 %v6368_v25  ;;  %v2921_v49 = vpack.c.bf16 %v2920_v47, %v2920_v47  ;;  %v6201_v51 = vld [vmem:[%s7527_s3 + $0x68] sm:$0xff]  }
 0x17d   : > { %5731 = vmatpush3.bf16.msra.mxu1 %v6172_v50  ;;  %5734 = vmatprep.mubr.msk.bf16.mxu1 %vm6369_vm0, %v6368_v25  ;;  %v6213_v50 = vld [vmem:[%s7529_s5] sm:$0xff]  }
 0x17e   : > { %5823 = vmatmul.mubr.msk.bf16.vlgmr.msra.gmra.mrb[68].mxu0 %vm641_vm1, %v2675_v52  ;;  %5732 = vmatprep.subr.bf16.mxu1 %v6368_v25  ;;  %v3044_v52 = vld [vmem:[#allocation2 + $0x2a] ss:$2 sm:$0x7] }
 0x17f   : > { %5835 = vmatpush3.bf16.msra.mxu0 %v6173_v53  ;;  %5838 = vmatprep.mubr.msk.bf16.mxu0 %vm6369_vm0, %v6368_v25  ;;  %v6215_v53 = vld [vmem:[%s7529_s5 + $0x8] sm:$0xff]  }
 0x180   : > { %5836 = vmatprep.subr.bf16.mxu0 %v6368_v25 }
 0x181   : > { %5733 = vmatpush3.bf16.msra.mxu1 %v6174_v54  ;;  %v6203_v54 = vld [vmem:[%s7527_s3 + $0x80] sm:$0xff]  }
 0x182   : > { %5746 = vmatprep.subr.bf16.mxu1 %v6368_v25 }
 0x183   : > { %5837 = vmatpush3.bf16.msra.mxu0 %v6175_v55  ;;  %v3045_v55 = vpack.c.bf16 %v3044_v52, %v3044_v52 }
 0x184   : > { %5735 = vmatmul.mubr.msk.bf16.vlgmr.msra.gmra.mrb[56].mxu1 %vm641_vm1, %v2037_v59  ;;  %5850 = vmatprep.subr.bf16.mxu0 %v6368_v25  ;;  %v6219_v59 = vld [vmem:[%s7529_s5 + $0x18] sm:$0xff]  }
 0x185   : > { %5747 = vmatpush3.bf16.msra.mxu1 %v6176_v58  ;;  %5750 = vmatprep.mubr.msk.bf16.mxu1 %vm6369_vm0, %v6368_v25  ;;  %v3169_v58 = vld [vmem:[#allocation2 + $0x30] ss:$2 sm:$0x7] }
 0x186   : > { %5839 = vmatmul.mubr.msk.bf16.vlgmr.msra.gmra.mrb[72].mxu0 %vm641_vm1, %v2859_v60  ;;  %5748 = vmatprep.subr.bf16.mxu1 %v6368_v25  ;;  %v3170_v60 = vpack.c.bf16 %v3169_v58, %v3169_v58 }
 0x187   : > { %5851 = vmatpush3.bf16.msra.mxu0 %v6177_v61  ;;  %5854 = vmatprep.mubr.msk.bf16.mxu0 %vm6369_vm0, %v6368_v25  ;;  %v6206_v61 = vld [vmem:[%s7527_s3 + $0xa0] sm:$0xff]  }
 0x188   : > { %5852 = vmatprep.subr.bf16.mxu0 %v6368_v25 }
 0x189   : > { %5749 = vmatpush3.bf16.msra.mxu1 %v6178_v62  ;;  %v6207_v62 = vld [vmem:[%s7527_s3 + $0xa8] sm:$0xff]  }
 0x18a   : > { %5762 = vmatprep.subr.bf16.mxu1 %v6368_v25 }
 0x18b   : > { %5853 = vmatpush3.bf16.msra.mxu0 %v6179_v0  ;;  %v6208_v0 = vld [vmem:[%s7527_s3 + $0xc0] sm:$0xff]  }
 0x18c   : > { %5751 = vmatmul.mubr.msk.bf16.vlgmr.msra.gmra.mrb[60].mxu1 %vm641_vm1, %v2162_v1  ;;  %5866 = vmatprep.subr.bf16.mxu0 %v6368_v25  ;;  %v3296_v1 = vpack.c.bf16 %v3295_v63, %v3295_v63 }
 0x18d   : > { %5763 = vmatpush3.bf16.msra.mxu1 %v6180_v2  ;;  %5766 = vmatprep.mubr.msk.bf16.mxu1 %vm6369_vm0, %v6368_v25  ;;  %v6209_v2 = vld [vmem:[%s7527_s3 + $0xc8] sm:$0xff]  }
 0x18e   : > { %5855 = vmatmul.mubr.msk.bf16.vlgmr.msra.gmra.mrb[76].mxu0 %vm641_vm1, %v2983_v5  ;;  %5764 = vmatprep.subr.bf16.mxu1 %v6368_v25  ;;  %v3422_v5 = vpack.c.bf16 %v3421_v3, %v3421_v3 }
 0x18f   : > { %5867 = vmatpush3.bf16.msra.mxu0 %v6181_v4  ;;  %5870 = vmatprep.mubr.msk.bf16.mxu0 %vm6369_vm0, %v6368_v25  ;;  %v6210_v4 = vld [vmem:[%s7527_s3 + $0xe0] sm:$0xff]  }
 0x190   : > { %5868 = vmatprep.subr.bf16.mxu0 %v6368_v25 }
 0x191   : > { %5765 = vmatpush3.bf16.msra.mxu1 %v6182_v6  ;;  %v6211_v6 = vld [vmem:[%s7527_s3 + $0xe8] sm:$0xff]  }
 0x192   : > { %5778 = vmatprep.subr.bf16.mxu1 %v6368_v25 }
 0x193   : > { %5869 = vmatpush3.bf16.msra.mxu0 %v6183_v7  ;;  %v3547_v7 = vld [vmem:[#allocation2 + $0x3a] ss:$2 sm:$0x7] }
 0x194   : > { %5767 = vmatmul.mubr.msk.bf16.vlgmr.msra.gmra.mrb[64].mxu1 %vm641_vm1, %v2288_v11  ;;  %5882 = vmatprep.subr.bf16.mxu0 %v6368_v25 }
 0x195   : > { %5779 = vmatpush3.bf16.msra.mxu1 %v6184_v9  ;;  %5782 = vmatprep.mubr.msk.bf16.mxu1 %vm6369_vm0, %v6368_v25  ;;  %v3548_v9 = vpack.c.bf16 %v3547_v7, %v3547_v7 }
 0x196   : > { %5871 = vmatmul.mubr.msk.bf16.vlgmr.msra.gmra.mrb[80].mxu0 %vm641_vm1, %v3107_v13  ;;  %5780 = vmatprep.subr.bf16.mxu1 %v6368_v25 }
 0x197   : > { %5883 = vmatpush3.bf16.msra.mxu0 %v6190_v12  ;;  %5886 = vmatprep.mubr.msk.bf16.mxu0 %vm6369_vm0, %v6368_v25 }
 0x198   : > { %5884 = vmatprep.subr.bf16.mxu0 %v6368_v25 }
 0x199   : > { %5781 = vmatpush3.bf16.msra.mxu1 %v6185_v14 }
 0x19a   : > { %5794 = vmatprep.subr.bf16.mxu1 %v6368_v25 }
 0x19b   : > { %5885 = vmatpush3.bf16.msra.mxu0 %v6192_v16 }
 0x19c   : > { %5783 = vmatmul.mubr.msk.bf16.vlgmr.msra.gmra.mrb[68].mxu1 %vm641_vm1, %v2414_v19  ;;  %5898 = vmatprep.subr.bf16.mxu0 %v6368_v25 }
 0x19d   : > { %5795 = vmatpush3.bf16.msra.mxu1 %v6186_v18  ;;  %5798 = vmatprep.mubr.msk.bf16.mxu1 %vm6369_vm0, %v6368_v25 }
 0x19e   : > { %5796 = vmatprep.subr.bf16.mxu1 %v6368_v25  ;;  %5887 = vmatmul.mubr.msk.bf16.vlgmr.msra.gmra.mrb[84].mxu0 %vm641_vm1, %v3233_v20  ;;  %v6218_v20 = vld [vmem:[%s7529_s5 + $0x38] sm:$0xff]  }
 0x19f   : > { %5899 = vmatpush3.bf16.msra.mxu0 %v6194_v21  ;;  %5902 = vmatprep.mubr.msk.bf16.mxu0 %vm6369_vm0, %v6368_v25 }
 0x1a0   : > { %5900 = vmatprep.subr.bf16.mxu0 %v6368_v25 }
 0x1a1   : > { %5797 = vmatpush3.bf16.msra.mxu1 %v6187_v22 }
 0x1a2   : > { %5810 = vmatprep.subr.bf16.mxu1 %v6368_v25 }
 0x1a3   : > { %5901 = vmatpush3.bf16.msra.mxu0 %v6196_v24 }
 0x1a4   : > { %5799 = vmatmul.mubr.msk.bf16.vlgmr.msra.gmra.mrb[72].mxu1 %vm641_vm1, %v2540_v28  ;;  %5914 = vmatprep.subr.bf16.mxu0 %v6368_v25 }
 0x1a5   : > { %5811 = vmatpush3.bf16.msra.mxu1 %v6188_v27  ;;  %5814 = vmatprep.mubr.msk.bf16.mxu1 %vm6369_vm0, %v6368_v25 }
 0x1a6   : > { %5812 = vmatprep.subr.bf16.mxu1 %v6368_v25  ;;  %5903 = vmatmul.mubr.msk.bf16.vlgmr.msra.gmra.mrb[88].mxu0 %vm641_vm1, %v3359_v29 }
 0x1a7   : > { %5915 = vmatpush3.bf16.msra.mxu0 %v6198_v31  ;;  %5918 = vmatprep.mubr.msk.bf16.mxu0 %vm6369_vm0, %v6368_v25 }
 0x1a8   : > { %5916 = vmatprep.subr.bf16.mxu0 %v6368_v25 }
 0x1a9   : > { %5813 = vmatpush3.bf16.msra.mxu1 %v6189_v32 }
 0x1aa   : > { %5826 = vmatprep.subr.bf16.mxu1 %v6368_v25 }
 0x1ab   : > { %5917 = vmatpush3.bf16.msra.mxu0 %v6200_v34 }
 0x1ac   : > { %5815 = vmatmul.mubr.msk.bf16.vlgmr.msra.gmra.mrb[76].mxu1 %vm641_vm1, %v2681_v37  ;;  %5930 = vmatprep.subr.bf16.mxu0 %v6368_v25 }
 0x1ad   : > { %5827 = vmatpush3.bf16.msra.mxu1 %v6191_v36  ;;  %5830 = vmatprep.mubr.msk.bf16.mxu1 %vm6369_vm0, %v6368_v25 }
 0x1ae   : > { %5828 = vmatprep.subr.bf16.mxu1 %v6368_v25  ;;  %5919 = vmatmul.mubr.msk.bf16.vlgmr.msra.gmra.mrb[92].mxu0 %vm641_vm1, %v3485_v38 }
 0x1af   : > { %5931 = vmatpush3.bf16.msra.mxu0 %v6202_v39  ;;  %5934 = vmatprep.mubr.msk.bf16.mxu0 %vm6369_vm0, %v6368_v25 }
 0x1b0   : > { %5932 = vmatprep.subr.bf16.mxu0 %v6368_v25 }
 0x1b1   : > { %5829 = vmatpush3.bf16.msra.mxu1 %v6193_v40 }
 0x1b2   : > { %5842 = vmatprep.subr.bf16.mxu1 %v6368_v25 }
 0x1b3   : > { %5933 = vmatpush3.bf16.msra.mxu0 %v6204_v42 }
 0x1b4   : > { %5831 = vmatmul.mubr.msk.bf16.vlgmr.msra.gmra.mrb[80].mxu1 %vm641_vm1, %v2797_v45  ;;  %5950 = vmatprep.subr.bf16.mxu0 %v6368_v25 }
 0x1b5   : > { %5843 = vmatpush3.bf16.msra.mxu1 %v6195_v44  ;;  %5846 = vmatprep.mubr.msk.bf16.mxu1 %vm6369_vm0, %v6368_v25 }
 0x1b6   : > { %5844 = vmatprep.subr.bf16.mxu1 %v6368_v25  ;;  %5935 = vmatmul.mubr.msk.bf16.vlgmr.msra.gmra.mrb[96].mxu0 %vm641_vm1, %v3611_v46 }
 0x1b7   : > { %5958 = vmatprep.mubr.msk.bf16.mxu0 %vm6369_vm0, %v6368_v25  ;;  %5951 = vmatpush3.bf16.msra.mxu0 %v6213_v50 }
 0x1b8   : > { %5952 = vmatprep.subr.bf16.mxu0 %v6368_v25 }
 0x1b9   : > { %5845 = vmatpush3.bf16.msra.mxu1 %v6197_v30 }
 0x1ba   : > { %5858 = vmatprep.subr.bf16.mxu1 %v6368_v25 }
 0x1bb   : > { %5953 = vmatpush3.bf16.msra.mxu0 %v6215_v53 }
 0x1bc   : > { %5847 = vmatmul.mubr.msk.bf16.vlgmr.msra.gmra.mrb[84].mxu1 %vm641_vm1, %v2921_v49  ;;  %5954 = vmatprep.subr.bf16.mxu0 %v6368_v25 }
 0x1bd   : > { %5859 = vmatpush3.bf16.msra.mxu1 %v6199_v48  ;;  %5862 = vmatprep.mubr.msk.bf16.mxu1 %vm6369_vm0, %v6368_v25 }
 0x1be   : > { %5860 = vmatprep.subr.bf16.mxu1 %v6368_v25 }
 0x1bf   : > { %5955 = vmatpush3.bf16.msra.mxu0 %v6217_v56 }
 0x1c0   : > { %5956 = vmatprep.subr.bf16.mxu0 %v6368_v25 }
 0x1c1   : > { %5861 = vmatpush3.bf16.msra.mxu1 %v6201_v51 }
 0x1c2   : > { %5874 = vmatprep.subr.bf16.mxu1 %v6368_v25 }
 0x1c3   : > { %5957 = vmatpush3.bf16.msra.mxu0 %v6219_v59 }
 0x1c4   : > { %5863 = vmatmul.mubr.msk.bf16.vlgmr.msra.gmra.mrb[88].mxu1 %vm641_vm1, %v3045_v55  ;;  %5974 = vmatprep.subr.bf16.mxu0 %v6368_v25 }
 0x1c5   : > { %5875 = vmatpush3.bf16.msra.mxu1 %v6203_v54  ;;  %5878 = vmatprep.mubr.msk.bf16.mxu1 %vm6369_vm0, %v6368_v25 }
 0x1c6   : > { %5876 = vmatprep.subr.bf16.mxu1 %v6368_v25 }
 0x1c9   : > { %5877 = vmatpush3.bf16.msra.mxu1 %v6205_v57 }
 0x1ca   : > { %5890 = vmatprep.subr.bf16.mxu1 %v6368_v25 }
 0x1cc   : > { %5879 = vmatmul.mubr.msk.bf16.vlgmr.msra.gmra.mrb[92].mxu1 %vm641_vm1, %v3170_v60 }
 0x1cd   : > { %5891 = vmatpush3.bf16.msra.mxu1 %v6206_v61  ;;  %5894 = vmatprep.mubr.msk.bf16.mxu1 %vm6369_vm0, %v6368_v25 }
 0x1ce   : > { %5892 = vmatprep.subr.bf16.mxu1 %v6368_v25 }
 0x1d1   : > { %5893 = vmatpush3.bf16.msra.mxu1 %v6207_v62 }
 0x1d2   : > { %5906 = vmatprep.subr.bf16.mxu1 %v6368_v25 }
 0x1d4   : > { %5895 = vmatmul.mubr.msk.bf16.vlgmr.msra.gmra.mrb[96].mxu1 %vm641_vm1, %v3296_v1 }
 0x1d5   : > { %5907 = vmatpush3.bf16.msra.mxu1 %v6208_v0  ;;  %5910 = vmatprep.mubr.msk.bf16.mxu1 %vm6369_vm0, %v6368_v25 }
 0x1d6   : > { %5908 = vmatprep.subr.bf16.mxu1 %v6368_v25 }
 0x1d9   : > { %5909 = vmatpush3.bf16.msra.mxu1 %v6209_v2 }
 0x1da   : > { %5922 = vmatprep.subr.bf16.mxu1 %v6368_v25 }
 0x1dc   : > { %5911 = vmatmul.mubr.msk.bf16.vlgmr.msra.gmra.mrb[100].mxu1 %vm641_vm1, %v3422_v5 }
 0x1dd   : > { %5923 = vmatpush3.bf16.msra.mxu1 %v6210_v4  ;;  %5926 = vmatprep.mubr.msk.bf16.mxu1 %vm6369_vm0, %v6368_v25 }
 0x1de   : > { %5924 = vmatprep.subr.bf16.mxu1 %v6368_v25 }
 0x1e1   : > { %5925 = vmatpush3.bf16.msra.mxu1 %v6211_v6 }
 0x1e2   : > { %5938 = vmatprep.subr.bf16.mxu1 %v6368_v25 }
 0x1e4   : > { %5927 = vmatmul.mubr.msk.bf16.vlgmr.msra.gmra.mrb[104].mxu1 %vm641_vm1, %v3548_v9 }
 0x1e5   : > { %5939 = vmatpush3.bf16.msra.mxu1 %v6212_v8  ;;  %5946 = vmatprep.mubr.msk.bf16.mxu1 %vm6369_vm0, %v6368_v25 }
 0x1e6   : > { %5940 = vmatprep.subr.bf16.mxu1 %v6368_v25 }
 0x1e7   : > { %v712_v11 = vpop.f32.mrb[0].mxu1 }
 0x1e8   : > { %v5560_v12 = vpop.f32.mrb[1].mxu1 }
 0x1e9   : > { %v715_v13 = vpop.f32.mrb[2].mxu1  ;;  %v7121_v14 = vpop.f32.mrb[16].mxu0  ;;  %5941 = vmatpush3.bf16.msra.mxu1 %v6214_v10 }
 0x1ea   : > { %v5561_v16 = vpop.f32.mrb[3].mxu1  ;;  %v5616_v17 = vpop.f32.mrb[17].mxu0  ;;  %5942 = vmatprep.subr.bf16.mxu1 %v6368_v25 }
 0x1eb   : > { %v1147_v18 = vpop.f32.mrb[18].mxu0 }
 0x1ec   : > { %v5617_v19 = vpop.f32.mrb[19].mxu0 }
 0x1ed   : > { %5943 = vmatpush3.bf16.msra.mxu1 %v6216_v15 }
 0x1ee   : > { %5944 = vmatprep.subr.bf16.mxu1 %v6368_v25 }
 0x1ef   : > { %v767_v21 = vpop.f32.mrb[4].mxu1 }
 0x1f0   : > { %v768_v22 = vadd.f32 %v767_v21, %v712_v11  ;;  %v5568_v23 = vpop.f32.mrb[5].mxu1 }
 0x1f1   : > { %v770_v24 = vpop.f32.mrb[6].mxu1  ;;  %v1270_v26 = vpop.f32.mrb[20].mxu0  ;;  %5945 = vmatpush3.bf16.msra.mxu1 %v6218_v20 }
 0x1f2   : > { %v5569_v27 = vpop.f32.mrb[7].mxu1  ;;  %v5632_v28 = vpop.f32.mrb[21].mxu0  ;;  %5962 = vmatprep.subr.bf16.mxu1 %v6368_v25 }
 0x1f3   : > { %v1273_v29 = vpop.f32.mrb[22].mxu0 }
 0x1f4   : > { %v5633_v31 = vpop.f32.mrb[23].mxu0 }
 0x1f7   : > { %v829_v32 = vpop.f32.mrb[8].mxu1 }
 0x1f8   : > { %v835_v33 = vadd.f32 %v829_v32, %v768_v22  ;;  %v5576_v34 = vpop.f32.mrb[9].mxu1 }
 0x1f9   : > { %v832_v35 = vpop.f32.mrb[10].mxu1  ;;  %v1396_v36 = vpop.f32.mrb[24].mxu0 }
 0x1fa   : > { %v5577_v37 = vpop.f32.mrb[11].mxu1  ;;  %v5648_v38 = vpop.f32.mrb[25].mxu0 }
 0x1fb   : > { %v1399_v39 = vpop.f32.mrb[26].mxu0 }
 0x1fc   : > { %v5649_v40 = vpop.f32.mrb[27].mxu0 }
 0x1ff   : > { %v892_v41 = vpop.f32.mrb[12].mxu1 }
 0x200   : > { %v898_v42 = vadd.f32 %v892_v41, %v835_v33  ;;  %v5584_v43 = vpop.f32.mrb[13].mxu1 }
 0x201   : > { %v895_v44 = vpop.f32.mrb[14].mxu1  ;;  %v1522_v45 = vpop.f32.mrb[28].mxu0 }
 0x202   : > { %v5585_v46 = vpop.f32.mrb[15].mxu1  ;;  %v5664_v30 = vpop.f32.mrb[29].mxu0 }
 0x203   : > { %v1525_v47 = vpop.f32.mrb[30].mxu0 }
 0x204   : > { %v5665_v48 = vpop.f32.mrb[31].mxu0 }
 0x207   : > { %v955_v49 = vpop.f32.mrb[16].mxu1 }
 0x208   : > { %v961_v50 = vadd.f32 %v955_v49, %v898_v42  ;;  %v5592_v51 = vpop.f32.mrb[17].mxu1 }
 0x209   : > { %v958_v52 = vpop.f32.mrb[18].mxu1  ;;  %v1648_v53 = vpop.f32.mrb[32].mxu0 }
 0x20a   : > { %v5593_v54 = vpop.f32.mrb[19].mxu1  ;;  %v5680_v55 = vpop.f32.mrb[33].mxu0 }
 0x20b   : > { %v1651_v56 = vpop.f32.mrb[34].mxu0 }
 0x20c   : > { %v5681_v57 = vpop.f32.mrb[35].mxu0 }
 0x20f   : > { %v1018_v58 = vpop.f32.mrb[20].mxu1 }
 0x210   : > { %v1024_v59 = vadd.f32 %v1018_v58, %v961_v50  ;;  %v5600_v60 = vpop.f32.mrb[21].mxu1 }
 0x211   : > { %v1021_v61 = vpop.f32.mrb[22].mxu1  ;;  %v1782_v62 = vpop.f32.mrb[36].mxu0 }
 0x212   : > { %v5601_v63 = vpop.f32.mrb[23].mxu1  ;;  %v5696_v0 = vpop.f32.mrb[37].mxu0 }
 0x213   : > { %v1785_v1 = vpop.f32.mrb[38].mxu0 }
 0x214   : > { %v5697_v2 = vpop.f32.mrb[39].mxu0 }
 0x217   : > { %v1081_v3 = vpop.f32.mrb[24].mxu1 }
 0x218   : > { %v1087_v4 = vadd.f32 %v1081_v3, %v1024_v59  ;;  %v5608_v5 = vpop.f32.mrb[25].mxu1 }
 0x219   : > { %v1084_v6 = vpop.f32.mrb[26].mxu1  ;;  %v7132_v7 = vpop.f32.mrb[40].mxu0 }
 0x21a   : > { %v5609_v8 = vpop.f32.mrb[27].mxu1  ;;  %v5712_v9 = vpop.f32.mrb[41].mxu0  ;;  %v1150_v10 = vadd.f32 %v7121_v14, %v1087_v4  ;;  %v6220_v6 = vld [vmem:[%s7529_s5 + $0x40] sm:$0xff]  }
 0x21b   : > { %v1908_v11 = vpop.f32.mrb[42].mxu0 }
 0x21c   : > { %v5713_v12 = vpop.f32.mrb[43].mxu0  ;;  %v6224_v11 = vld [vmem:[%s7529_s5 + $0x60] sm:$0xff]  }
 0x21f   : > { %v1207_v13 = vpop.f32.mrb[28].mxu1 }
 0x220   : > { %v1213_v15 = vadd.f32 %v1207_v13, %v1150_v10  ;;  %v5624_v16 = vpop.f32.mrb[29].mxu1 }
 0x221   : > { %v1210_v17 = vpop.f32.mrb[30].mxu1  ;;  %v7135_v18 = vpop.f32.mrb[44].mxu0 }
 0x222   : > { %v5625_v19 = vpop.f32.mrb[31].mxu1  ;;  %v5728_v20 = vpop.f32.mrb[45].mxu0  ;;  %v1276_v21 = vadd.f32 %v1270_v26, %v1213_v15 }
 0x223   : > { %v2032_v22 = vpop.f32.mrb[46].mxu0  ;;  %v6221_v19 = vld [vmem:[%s7529_s5 + $0x48] sm:$0xff]  }
 0x224   : > { %v5729_v23 = vpop.f32.mrb[47].mxu0  ;;  %v6226_v22 = vld [vmem:[%s7529_s5 + $0x68] sm:$0xff]  }
 0x225   : > { %v6222_v23 = vld [vmem:[%s7529_s5 + $0x50] sm:$0xff]  }
 0x227   : > { %v1333_v24 = vpop.f32.mrb[32].mxu1 }
 0x228   : > { %v1339_v27 = vadd.f32 %v1333_v24, %v1276_v21  ;;  %v5640_v28 = vpop.f32.mrb[33].mxu1 }
 0x229   : > { %v1336_v29 = vpop.f32.mrb[34].mxu1  ;;  %v7137_v31 = vpop.f32.mrb[48].mxu0  ;;  %v6228_v28 = vld [vmem:[%s7529_s5 + $0x70] sm:$0xff]  }
 0x22a   : > { %v5641_v14 = vpop.f32.mrb[35].mxu1  ;;  %v5744_v32 = vpop.f32.mrb[49].mxu0  ;;  %v1402_v33 = vadd.f32 %v1396_v36, %v1339_v27  ;;  %v7144_v36 = vld [vmem:[%s7528_s4] ss:$0 sm:$0xff] }
 0x22b   : > { %v2156_v34 = vpop.f32.mrb[50].mxu0 }
 0x22c   : > { %v5745_v35 = vpop.f32.mrb[51].mxu0 }
 0x22d   : > { %v6223_v35 = vld [vmem:[%s7529_s5 + $0x58] sm:$0xff]  }
 0x22f   : > { %v1459_v37 = vpop.f32.mrb[36].mxu1 }
 0x230   : > { %v1465_v38 = vadd.f32 %v1459_v37, %v1402_v33  ;;  %v5656_v39 = vpop.f32.mrb[37].mxu1 }
 0x231   : > { %v1462_v40 = vpop.f32.mrb[38].mxu1  ;;  %v7139_v41 = vpop.f32.mrb[52].mxu0  ;;  %v6230_v39 = vld [vmem:[%s7529_s5 + $0x78] sm:$0xff]  }
 0x232   : > { %v5657_v26 = vpop.f32.mrb[39].mxu1  ;;  %v1528_v42 = vadd.f32 %v1522_v45, %v1465_v38  ;;  %v5760_v43 = vpop.f32.mrb[53].mxu0 }
 0x233   : > { %v2282_v44 = vpop.f32.mrb[54].mxu0  ;;  %v6225_v26 = vld [vmem:[%s7529_s5 + $0x80] sm:$0xff]  }
 0x234   : > { %v5761_v46 = vpop.f32.mrb[55].mxu0 }
 0x237   : > { %v1585_v30 = vpop.f32.mrb[40].mxu1 }
 0x238   : > { %v1591_v47 = vadd.f32 %v1585_v30, %v1528_v42  ;;  %v5672_v48 = vpop.f32.mrb[41].mxu1 }
 0x239   : > { %v1588_v49 = vpop.f32.mrb[42].mxu1  ;;  %v7146_v50 = vpop.f32.mrb[56].mxu0 }
 0x23a   : > { %v1654_v51 = vadd.f32 %v1648_v53, %v1591_v47  ;;  %v5673_v52 = vpop.f32.mrb[43].mxu1  ;;  %v5776_v54 = vpop.f32.mrb[57].mxu0 }
 0x23b   : > { %v2408_v55 = vpop.f32.mrb[58].mxu0  ;;  %v6227_v52 = vld [vmem:[%s7529_s5 + $0x88] sm:$0xff]  }
 0x23c   : > { %v1662_v45 = vadd.f32 %v7144_v36, %v1654_v51  ;;  %v5777_v56 = vpop.f32.mrb[59].mxu0 }
 0x23e   : > { %v1663_v57 = vmax.f32 %v1662_v45, 0.0  ;;  %v6229_v45 = vld [vmem:[%s7529_s5 + $0x90] sm:$0xff]  }
 0x23f   : > { %v1727_v58 = vpop.f32.mrb[44].mxu1 }
 0x240   : > { %1665 = vst.msk [vmem:[#allocation3] sm:$0x7] %vm1664_vm2, %v1663_v57  ;;  %v1783_v59 = vadd.f32 %v1782_v62, %v1727_v58  ;;  %v5688_v60 = vpop.f32.mrb[45].mxu1 }
 0x241   : > { %v1730_v61 = vpop.f32.mrb[46].mxu1  ;;  %v7150_v63 = vpop.f32.mrb[60].mxu0 }
 0x242   : > { %v5689_v0 = vpop.f32.mrb[47].mxu1  ;;  %v5792_v1 = vpop.f32.mrb[61].mxu0 }
 0x243   : > { %v2534_v2 = vpop.f32.mrb[62].mxu0  ;;  %v6231_v1 = vld [vmem:[%s7529_s5 + $0x98] sm:$0xff]  }
 0x244   : > { %v5793_v53 = vpop.f32.mrb[63].mxu0 }
 0x247   : > { %v1843_v3 = vpop.f32.mrb[48].mxu1  ;;  %v3692_v4 = vld [vmem:[#allocation3 + $0x1] sm:$0x1]  ;;  %v3682_v5 = vld [vmem:[#allocation3] sm:$0x1] }
 0x248   : > { %v1849_v8 = vadd.f32 %v1843_v3, %v1783_v59  ;;  %v5704_v9 = vpop.f32.mrb[49].mxu1  ;;  %v3693_v10 = vpack.c.bf16 %v3692_v4, %v3692_v4  ;;  %v3683_v62 = vpack.c.bf16 %v3682_v5, %v3682_v5  ;;  %v3837_v40 = vld [vmem:[#allocation3 + $0x2] sm:$0x1] }
 0x249   : > { %v1846_v12 = vpop.f32.mrb[50].mxu1  ;;  %v7158_v13 = vpop.f32.mrb[64].mxu0  ;;  %v3838_v44 = vpack.c.bf16 %v3837_v40, %v3837_v40 }
 0x24a   : > { %v5705_v15 = vpop.f32.mrb[51].mxu1  ;;  %5947 = vmatmul.mubr.msk.bf16.vlgmr.msra.gmra.mrb[108].mxu1 %vm3726_vm3, %v3693_v10  ;;  %5959 = vmatmul.mubr.msk.bf16.vlgmr.msra.gmra.mrb[100].mxu0 %vm3726_vm3, %v3683_v62  ;;  %v1911_v16 = vadd.f32 %v7132_v7, %v1849_v8  ;;  %v5808_v17 = vpop.f32.mrb[65].mxu0 }
 0x24b   : > { %5963 = vmatpush3.bf16.msra.mxu1 %v6220_v6  ;;  %v2660_v20 = vpop.f32.mrb[66].mxu0  ;;  %5970 = vmatprep.mubr.msk.bf16.mxu1 %vm6369_vm0, %v6368_v25 }
 0x24c   : > { %5964 = vmatprep.subr.bf16.mxu1 %v6368_v25  ;;  %v5809_v21 = vpop.f32.mrb[67].mxu0  ;;  %5975 = vmatpush3.bf16.msra.mxu0 %v6224_v11 }
 0x24d   : > { %5976 = vmatprep.subr.bf16.mxu0 %v6368_v25  ;;  %5982 = vmatprep.mubr.msk.bf16.mxu0 %vm6369_vm0, %v6368_v25 }
 0x24f   : > { %5965 = vmatpush3.bf16.msra.mxu1 %v6221_v19  ;;  %v1967_v7 = vpop.f32.mrb[52].mxu1 }
 0x250   : > { %v1973_v24 = vadd.f32 %v1967_v7, %v1911_v16  ;;  %v5720_v27 = vpop.f32.mrb[53].mxu1  ;;  %5966 = vmatprep.subr.bf16.mxu1 %v6368_v25  ;;  %5977 = vmatpush3.bf16.msra.mxu0 %v6226_v22 }
 0x251   : > { %v1970_v29 = vpop.f32.mrb[54].mxu1  ;;  %v7182_v14 = vpop.f32.mrb[68].mxu0  ;;  %5978 = vmatprep.subr.bf16.mxu0 %v6368_v25 }
 0x252   : > { %v5721_v32 = vpop.f32.mrb[55].mxu1  ;;  %v2035_v33 = vadd.f32 %v7135_v18, %v1973_v24  ;;  %v5824_v34 = vpop.f32.mrb[69].mxu0 }
 0x253   : > { %5967 = vmatpush3.bf16.msra.mxu1 %v6222_v23  ;;  %v2793_v37 = vpop.f32.mrb[70].mxu0 }
 0x254   : > { %5968 = vmatprep.subr.bf16.mxu1 %v6368_v25  ;;  %v5825_v38 = vpop.f32.mrb[71].mxu0  ;;  %5979 = vmatpush3.bf16.msra.mxu0 %v6228_v28 }
 0x255   : > { %5980 = vmatprep.subr.bf16.mxu0 %v6368_v25 }
 0x257   : > { %5969 = vmatpush3.bf16.msra.mxu1 %v6223_v35  ;;  %v2091_v18 = vpop.f32.mrb[56].mxu1 }
 0x258   : > { %v2097_v42 = vadd.f32 %v2091_v18, %v2035_v33  ;;  %v5736_v43 = vpop.f32.mrb[57].mxu1  ;;  %5986 = vmatprep.subr.bf16.mxu1 %v6368_v25  ;;  %5981 = vmatpush3.bf16.msra.mxu0 %v6230_v39 }
 0x259   : > { %v2094_v46 = vpop.f32.mrb[58].mxu1  ;;  %v7198_v30 = vpop.f32.mrb[72].mxu0  ;;  %5998 = vmatprep.subr.bf16.mxu0 %v6368_v25 }
 0x25a   : > { %5971 = vmatmul.mubr.msk.bf16.vlgmr.msra.gmra.mrb[112].mxu1 %vm3726_vm3, %v3838_v44  ;;  %v5737_v47 = vpop.f32.mrb[59].mxu1  ;;  %v5840_v48 = vpop.f32.mrb[73].mxu0  ;;  %v2159_v49 = vadd.f32 %v7137_v31, %v2097_v42 }
 0x25b   : > { %v2916_v51 = vpop.f32.mrb[74].mxu0  ;;  %5987 = vmatpush3.bf16.msra.mxu1 %v6225_v26  ;;  %5994 = vmatprep.mubr.msk.bf16.mxu1 %vm6369_vm0, %v6368_v25 }
 0x25c   : > { %v5841_v54 = vpop.f32.mrb[75].mxu0  ;;  %5988 = vmatprep.subr.bf16.mxu1 %v6368_v25 }
 0x25f   : > { %v2216_v55 = vpop.f32.mrb[60].mxu1  ;;  %5989 = vmatpush3.bf16.msra.mxu1 %v6227_v52 }
 0x260   : > { %v2222_v56 = vadd.f32 %v2216_v55, %v2159_v49  ;;  %v5752_v31 = vpop.f32.mrb[61].mxu1  ;;  %5990 = vmatprep.subr.bf16.mxu1 %v6368_v25  ;;  %v6232_v49 = vld [vmem:[%s7529_s5 + $0xa0] sm:$0xff]  }
 0x261   : > { %v2219_v57 = vpop.f32.mrb[62].mxu1  ;;  %v7213_v58 = vpop.f32.mrb[76].mxu0 }
 0x262   : > { %v5753_v59 = vpop.f32.mrb[63].mxu1  ;;  %v5856_v60 = vpop.f32.mrb[77].mxu0  ;;  %v2285_v61 = vadd.f32 %v7139_v41, %v2222_v56 }
 0x263   : > { %v3040_v0 = vpop.f32.mrb[78].mxu0  ;;  %5991 = vmatpush3.bf16.msra.mxu1 %v6229_v45  ;;  %v6233_v60 = vld [vmem:[%s7529_s5 + $0xa8] sm:$0xff]  }
 0x264   : > { %v5857_v2 = vpop.f32.mrb[79].mxu0  ;;  %5992 = vmatprep.subr.bf16.mxu1 %v6368_v25 }
 0x265   : > { %v6234_v2 = vld [vmem:[%s7529_s5 + $0xb0] sm:$0xff]  }
 0x267   : > { %v2342_v53 = vpop.f32.mrb[64].mxu1  ;;  %5993 = vmatpush3.bf16.msra.mxu1 %v6231_v1  ;;  %v6238_v1 = vld [vmem:[%s7529_s5 + $0xc8] sm:$0xff]  }
 0x268   : > { %v2348_v3 = vadd.f32 %v2342_v53, %v2285_v61  ;;  %v5768_v4 = vpop.f32.mrb[65].mxu1  ;;  %6010 = vmatprep.subr.bf16.mxu1 %v6368_v25 }
 0x269   : > { %v2345_v5 = vpop.f32.mrb[66].mxu1  ;;  %v7221_v6 = vpop.f32.mrb[80].mxu0  ;;  %v6240_v4 = vld [vmem:[%s7529_s5 + $0xd0] sm:$0xff]  }
 0x26a   : > { %v5769_v8 = vpop.f32.mrb[67].mxu1  ;;  %v5872_v41 = vpop.f32.mrb[81].mxu0  ;;  %v2411_v9 = vadd.f32 %v7146_v50, %v2348_v3 }
 0x26b   : > { %v3164_v10 = vpop.f32.mrb[82].mxu0 }
 0x26c   : > { %v5873_v62 = vpop.f32.mrb[83].mxu0  ;;  %v6242_v10 = vld [vmem:[%s7529_s5 + $0xd8] sm:$0xff]  }
 0x26f   : > { %v2468_v11 = vpop.f32.mrb[68].mxu1 }
 0x270   : > { %v2474_v12 = vadd.f32 %v2468_v11, %v2411_v9  ;;  %v5784_v15 = vpop.f32.mrb[69].mxu1  ;;  %v6235_v9 = vld [vmem:[%s7529_s5 + $0xb8] sm:$0xff]  }
 0x271   : > { %v2471_v16 = vpop.f32.mrb[70].mxu1  ;;  %v7224_v17 = vpop.f32.mrb[84].mxu0 }
 0x272   : > { %v5785_v19 = vpop.f32.mrb[71].mxu1  ;;  %v2537_v20 = vadd.f32 %v7150_v63, %v2474_v12  ;;  %v5888_v21 = vpop.f32.mrb[85].mxu0 }
 0x273   : > { %v3290_v22 = vpop.f32.mrb[86].mxu0 }
 0x274   : > { %v5889_v7 = vpop.f32.mrb[87].mxu0  ;;  %v6239_v22 = vld [vmem:[%s7529_s5 + $0xe8] sm:$0xff]  }
 0x277   : > { %v2594_v23 = vpop.f32.mrb[72].mxu1 }
 0x278   : > { %v2600_v24 = vadd.f32 %v2594_v23, %v2537_v20  ;;  %v5800_v27 = vpop.f32.mrb[73].mxu1  ;;  %v6241_v23 = vld [vmem:[%s7529_s5 + $0xf0] sm:$0xff]  }
 0x279   : > { %v2597_v28 = vpop.f32.mrb[74].mxu1  ;;  %v7227_v29 = vpop.f32.mrb[88].mxu0 }
 0x27a   : > { %v2663_v50 = vadd.f32 %v7158_v13, %v2600_v24  ;;  %v5801_v32 = vpop.f32.mrb[75].mxu1  ;;  %v5904_v33 = vpop.f32.mrb[89].mxu0 }
 0x27b   : > { %v3416_v34 = vpop.f32.mrb[90].mxu0  ;;  %v6243_v32 = vld [vmem:[%s7529_s5 + $0xf8] sm:$0xff]  }
 0x27c   : > { %v2671_v35 = vadd.f32 %v7144_v36, %v2663_v50  ;;  %v5905_v37 = vpop.f32.mrb[91].mxu0 }
 0x27e   : > { %v2672_v38 = vmax.f32 %v2671_v35, 0.0 }
 0x27f   : > { %v2735_v39 = vpop.f32.mrb[76].mxu1 }
 0x280   : > { %2673 = vst.msk [vmem:[#allocation3 + $0x3] sm:$0x7] %vm1664_vm2, %v2672_v38  ;;  %v2791_v63 = vadd.f32 %v7182_v14, %v2735_v39  ;;  %v5816_v40 = vpop.f32.mrb[77].mxu1  ;;  %v6236_v14 = vld [vmem:[%s7529_s5 + $0xc0] sm:$0xff]  }
 0x281   : > { %v2738_v18 = vpop.f32.mrb[78].mxu1  ;;  %v7233_v26 = vpop.f32.mrb[92].mxu0 }
 0x282   : > { %v5817_v42 = vpop.f32.mrb[79].mxu1  ;;  %v5920_v43 = vpop.f32.mrb[93].mxu0 }
 0x283   : > { %v3542_v44 = vpop.f32.mrb[94].mxu0 }
 0x284   : > { %v5921_v13 = vpop.f32.mrb[95].mxu0 }
 0x287   : > { %v2851_v46 = vpop.f32.mrb[80].mxu1  ;;  %v3915_v47 = vld [vmem:[#allocation3 + $0x3] sm:$0x1]  ;;  %v3993_v48 = vld [vmem:[#allocation3 + $0x4] sm:$0x1] }
 0x288   : > { %v2857_v51 = vadd.f32 %v2851_v46, %v2791_v63  ;;  %v5832_v52 = vpop.f32.mrb[81].mxu1  ;;  %v3916_v54 = vpack.c.bf16 %v3915_v47, %v3915_v47  ;;  %v3994_v55 = vpack.c.bf16 %v3993_v48, %v3993_v48  ;;  %v4071_v62 = vld [vmem:[#allocation3 + $0x5] sm:$0x1] }
 0x289   : > { %v2854_v45 = vpop.f32.mrb[82].mxu1  ;;  %v7241_v56 = vpop.f32.mrb[96].mxu0  ;;  %v4072_v16 = vpack.c.bf16 %v4071_v62, %v4071_v62  ;;  %v6257_v62 = vld [vmem:[%s7531_s7 + $0x28] ss:$16 sps:$4 sm:$0xff]  }
 0x28a   : > { %v5833_v31 = vpop.f32.mrb[83].mxu1  ;;  %5983 = vmatmul.mubr.msk.bf16.vlgmr.msra.gmra.mrb[104].mxu0 %vm3726_vm3, %v3916_v54  ;;  %5995 = vmatmul.mubr.msk.bf16.vlgmr.msra.gmra.mrb[116].mxu1 %vm3726_vm3, %v3994_v55  ;;  %v2919_v57 = vadd.f32 %v7198_v30, %v2857_v51  ;;  %v5936_v59 = vpop.f32.mrb[97].mxu0  ;;  %v6244_v55 = vld [vmem:[%s7529_s5 + $0x100] sm:$0xff]   ;;  %v6246_v45 = vld [vmem:[%s7529_s5 + $0x110] sm:$0xff]  }
 0x28b   : > { %5999 = vmatpush3.bf16.msra.mxu0 %v6232_v49  ;;  %6006 = vmatprep.mubr.msk.bf16.mxu0 %vm6369_vm0, %v6368_v25  ;;  %v3668_v61 = vpop.f32.mrb[98].mxu0 }
 0x28c   : > { %6000 = vmatprep.subr.bf16.mxu0 %v6368_v25  ;;  %v5937_v0 = vpop.f32.mrb[99].mxu0  ;;  %6011 = vmatpush3.bf16.msra.mxu1 %v6236_v14 }
 0x28d   : > { %6012 = vmatprep.subr.bf16.mxu1 %v6368_v25  ;;  %6018 = vmatprep.mubr.msk.bf16.mxu1 %vm6369_vm0, %v6368_v25 }
 0x28f   : > { %6001 = vmatpush3.bf16.msra.mxu0 %v6233_v60  ;;  %v2975_v30 = vpop.f32.mrb[84].mxu1 }
 0x290   : > { %v2981_v53 = vadd.f32 %v2975_v30, %v2919_v57  ;;  %v5848_v3 = vpop.f32.mrb[85].mxu1  ;;  %6002 = vmatprep.subr.bf16.mxu0 %v6368_v25  ;;  %6013 = vmatpush3.bf16.msra.mxu1 %v6238_v1 }
 0x291   : > { %v2978_v5 = vpop.f32.mrb[86].mxu1  ;;  %6014 = vmatprep.subr.bf16.mxu1 %v6368_v25 }
 0x292   : > { %v5849_v8 = vpop.f32.mrb[87].mxu1  ;;  %v3043_v41 = vadd.f32 %v7213_v58, %v2981_v53  ;;  %v6237_v58 = vld [vmem:[%s7529_s5 + $0xe0] sm:$0xff]   ;;  %v6251_v5 = vld [vmem:[%s7531_s7 + $0x8] ss:$16 sps:$4 sm:$0xff]  }
 0x293   : > { %6003 = vmatpush3.bf16.msra.mxu0 %v6234_v2  ;;  %v6253_v8 = vld [vmem:[%s7531_s7 + $0xc] ss:$16 sps:$4 sm:$0xff]  }
 0x294   : > { %6004 = vmatprep.subr.bf16.mxu0 %v6368_v25  ;;  %6015 = vmatpush3.bf16.msra.mxu1 %v6240_v4  ;;  %v6248_v4 = vld [vmem:[%s7531_s7] ss:$16 sps:$4 sm:$0xff]  }
 0x295   : > { %6016 = vmatprep.subr.bf16.mxu1 %v6368_v25 }
 0x297   : > { %6005 = vmatpush3.bf16.msra.mxu0 %v6235_v9  ;;  %v3099_v11 = vpop.f32.mrb[88].mxu1  ;;  %v6259_v9 = vld [vmem:[%s7531_s7 + $0x2c] ss:$16 sps:$4 sm:$0xff]  }
 0x298   : > { %v3105_v12 = vadd.f32 %v3099_v11, %v3043_v41  ;;  %v5864_v15 = vpop.f32.mrb[89].mxu1  ;;  %6022 = vmatprep.subr.bf16.mxu0 %v6368_v25  ;;  %6017 = vmatpush3.bf16.msra.mxu1 %v6242_v10  ;;  %v6256_v41 = vld [vmem:[%s7531_s7 + $0x24] ss:$16 sps:$4 sm:$0xff]   ;;  %v6254_v10 = vld [vmem:[%s7531_s7 + $0x20] ss:$16 sps:$4 sm:$0xff]  }
 0x299   : > { %v3102_v19 = vpop.f32.mrb[90].mxu1  ;;  %6034 = vmatprep.subr.bf16.mxu1 %v6368_v25 }
 0x29a   : > { %6007 = vmatmul.mubr.msk.bf16.vlgmr.msra.gmra.mrb[108].mxu0 %vm3726_vm3, %v4072_v16  ;;  %v5865_v20 = vpop.f32.mrb[91].mxu1  ;;  %v3167_v21 = vadd.f32 %v7221_v6, %v3105_v12  ;;  %v6265_v12 = vld [vmem:[%s7531_s7 + $0x4c] ss:$16 sps:$4 sm:$0xff]   ;;  %v6260_v19 = vld [vmem:[%s7531_s7 + $0x40] ss:$16 sps:$4 sm:$0xff]  }
 0x29b   : > { %6023 = vmatpush3.bf16.msra.mxu0 %v6237_v58  ;;  %6030 = vmatprep.mubr.msk.bf16.mxu0 %vm6369_vm0, %v6368_v25  ;;  %v6262_v58 = vld [vmem:[%s7531_s7 + $0x44] ss:$16 sps:$4 sm:$0xff]  }
 0x29c   : > { %6024 = vmatprep.subr.bf16.mxu0 %v6368_v25 }
 0x29f   : > { %v3224_v7 = vpop.f32.mrb[92].mxu1  ;;  %6025 = vmatpush3.bf16.msra.mxu0 %v6239_v22 }
 0x2a0   : > { %v3230_v24 = vadd.f32 %v3224_v7, %v3167_v21  ;;  %v5880_v27 = vpop.f32.mrb[93].mxu1  ;;  %6026 = vmatprep.subr.bf16.mxu0 %v6368_v25  ;;  %v6263_v21 = vld [vmem:[%s7531_s7 + $0x48] ss:$16 sps:$4 sm:$0xff]   ;;  %v6268_v7 = vld [vmem:[%s7531_s7 + $0x64] ss:$16 sps:$4 sm:$0xff]  }
 0x2a1   : > { %v3227_v6 = vpop.f32.mrb[94].mxu1  ;;  %v6269_v27 = vld [vmem:[%s7531_s7 + $0x68] ss:$16 sps:$4 sm:$0xff]  }
 0x2a2   : > { %v5881_v28 = vpop.f32.mrb[95].mxu1  ;;  %v3293_v50 = vadd.f32 %v7224_v17, %v3230_v24  ;;  %v6266_v24 = vld [vmem:[%s7531_s7 + $0x60] ss:$16 sps:$4 sm:$0xff]   ;;  %v6370_v6 = vmov 0  }
 0x2a3   : > { %6027 = vmatpush3.bf16.msra.mxu0 %v6241_v23  ;;  %v6271_v23 = vld [vmem:[%s7531_s7 + $0x6c] ss:$16 sps:$4 sm:$0xff]   ;;  %v6272_v28 = vld [vmem:[%s7533_s9 + $0x40] sm:$0xff]  }
 0x2a4   : > { %6028 = vmatprep.subr.bf16.mxu0 %v6368_v25 }
 0x2a7   : > { %v3350_v33 = vpop.f32.mrb[96].mxu1  ;;  %6029 = vmatpush3.bf16.msra.mxu0 %v6243_v32 }
 0x2a8   : > { %v3356_v34 = vadd.f32 %v3350_v33, %v3293_v50  ;;  %v5896_v35 = vpop.f32.mrb[97].mxu1  ;;  %v6273_v50 = vld [vmem:[%s7533_s9 + $0xc0] sm:$0xff]  }
 0x2a9   : > { %v3353_v37 = vpop.f32.mrb[98].mxu1 }
 0x2aa   : > { %v5897_v38 = vpop.f32.mrb[99].mxu1  ;;  %v3419_v39 = vadd.f32 %v7227_v29, %v3356_v34 }
 0x2af   : > { %v3476_v63 = vpop.f32.mrb[100].mxu1 }
 0x2b0   : > { %v3482_v40 = vadd.f32 %v3476_v63, %v3419_v39  ;;  %v5912_v18 = vpop.f32.mrb[101].mxu1 }
 0x2b1   : > { %v3479_v42 = vpop.f32.mrb[102].mxu1 }
 0x2b2   : > { %v5913_v17 = vpop.f32.mrb[103].mxu1  ;;  %v3545_v43 = vadd.f32 %v7233_v26, %v3482_v40 }
 0x2b7   : > { %v3602_v44 = vpop.f32.mrb[104].mxu1 }
 0x2b8   : > { %v3608_v13 = vadd.f32 %v3602_v44, %v3545_v43  ;;  %v5928_v46 = vpop.f32.mrb[105].mxu1 }
 0x2b9   : > { %v3605_v47 = vpop.f32.mrb[106].mxu1 }
 0x2ba   : > { %v3671_v48 = vadd.f32 %v7241_v56, %v3608_v13  ;;  %v5929_v49 = vpop.f32.mrb[107].mxu1  ;;  %v6247_v56 = vld [vmem:[%s7529_s5 + $0x118] sm:$0xff]  }
 0x2bc   : > { %v3679_v51 = vadd.f32 %v7144_v36, %v3671_v48  ;;  %v6245_v36 = vld [vmem:[%s7529_s5 + $0x108] sm:$0xff]  }
 0x2be   : > { %v3680_v52 = vmax.f32 %v3679_v51, 0.0 }
 0x2c0   : > { %3681 = vst.msk [vmem:[#allocation3 + $0x6] sm:$0x7] %vm1664_vm2, %v3680_v52 }
 0x2c7   : > { %v4149_v29 = vld [vmem:[#allocation3 + $0x6] sm:$0x1]  ;;  %v4227_v54 = vld [vmem:[#allocation3 + $0x7] sm:$0x1]  ;;  %v4305_v31 = vld [vmem:[#allocation3 + $0x8] sm:$0x1] }
 0x2c8   : > { %v4150_v14 = vpack.c.bf16 %v4149_v29, %v4149_v29  ;;  %v4228_v26 = vpack.c.bf16 %v4227_v54, %v4227_v54  ;;  %v4306_v57 = vpack.c.bf16 %v4305_v31, %v4305_v31 }
 0x2ca   : > { %6019 = vmatmul.mubr.msk.bf16.vlgmr.msra.gmra.mrb[120].mxu1 %vm3726_vm3, %v4150_v14  ;;  %6031 = vmatmul.mubr.msk.bf16.vlgmr.msra.gmra.mrb[112].mxu0 %vm3726_vm3, %v4228_v26 }
 0x2cb   : > { %6035 = vmatpush3.bf16.msra.mxu1 %v6244_v55  ;;  %6042 = vmatprep.mubr.msk.bf16.mxu1 %vm6369_vm0, %v6368_v25 }
 0x2cc   : > { %6036 = vmatprep.subr.bf16.mxu1 %v6368_v25  ;;  %4540 = vmatprep.mubr.bf16.mxu0 %v6370_v6 }
 0x2cf   : > { %6037 = vmatpush3.bf16.msra.mxu1 %v6245_v36  ;;  %v4383_v36 = vld [vmem:[%s7530_s6] sm:$0x1] }
 0x2d0   : > { %6038 = vmatprep.subr.bf16.mxu1 %v6368_v25 }
 0x2d3   : > { %6039 = vmatpush3.bf16.msra.mxu1 %v6246_v45 }
 0x2d4   : > { %6040 = vmatprep.subr.bf16.mxu1 %v6368_v25  ;;  %v6250_v25 = vld [vmem:[%s7531_s7 + $0x4] ss:$16 sps:$4 sm:$0xff]  }
 0x2d5   : > { %4508 = vmatprep.subr.bf16.mxu0 %v6250_v25  ;;  %v6281_v25 = vld [vmem:[%s7533_s9 + $0xd0] sm:$0xff]  }
 0x2d6   : > { %4509 = vmatpush1.bf16.msra.mxu0 %v6248_v4  ;;  %v6280_v4 = vld [vmem:[%s7533_s9 + $0x50] sm:$0xff]  }
 0x2d7   : > { %6041 = vmatpush3.bf16.msra.mxu1 %v6247_v56  ;;  %4510 = vmatprep.subr.bf16.mxu0 %v6256_v41  ;;  %v6284_v41 = vld [vmem:[%s7533_s9 + $0x58] sm:$0xff]  }
 0x2d8   : > { %4549 = vmatprep.subr.bf16.mxu1 %v6253_v8  ;;  %v6283_v8 = vld [vmem:[%s7533_s9 + $0x90] sm:$0xff]  }
 0x2da   : > { %6043 = vmatmul.mubr.msk.bf16.vlgmr.msra.gmra.mrb[124].mxu1 %vm3726_vm3, %v4306_v57  ;;  %4511 = vmatpush1.bf16.msra.mxu0 %v6254_v10  ;;  %v6286_v10 = vld [vmem:[%s7533_s9 + $0x18] sm:$0xff]  }
 0x2db   : > { %4550 = vmatpush1.bf16.msra.mxu1 %v6251_v5  ;;  %4512 = vmatprep.subr.bf16.mxu0 %v6262_v58  ;;  %v6282_v5 = vld [vmem:[%s7533_s9 + $0x10] sm:$0xff]   ;;  %v6289_v58 = vld [vmem:[%s7533_s9 + $0xe0] sm:$0xff]  }
 0x2dc   : > { %4551 = vmatprep.subr.bf16.mxu1 %v6259_v9  ;;  %4581 = vmatprep.mubr.bf16.mxu1 %v6370_v6  ;;  %v6285_v9 = vld [vmem:[%s7533_s9 + $0xd8] sm:$0xff]  }
 0x2dd   : > { %v6301_v6 = vld [vmem:[%s7533_s9 + $0xf8] sm:$0xff]  }
 0x2de   : > { %4513 = vmatpush1.bf16.msra.mxu0 %v6260_v19  ;;  %v6293_v19 = vld [vmem:[%s7533_s9 + $0xe8] sm:$0xff]  }
 0x2df   : > { %4552 = vmatpush1.bf16.msra.mxu1 %v6257_v62  ;;  %4514 = vmatprep.subr.bf16.mxu0 %v6268_v7  ;;  %v6287_v62 = vld [vmem:[%s7533_s9 + $0x98] sm:$0xff]   ;;  %v6297_v7 = vld [vmem:[%s7533_s9 + $0xf0] sm:$0xff]  }
 0x2e0   : > { %4553 = vmatprep.subr.bf16.mxu1 %v6265_v12  ;;  %v6290_v12 = vld [vmem:[%s7533_s9 + $0x20] sm:$0xff]  }
 0x2e2   : > { %4515 = vmatpush1.bf16.msra.mxu0 %v6266_v24  ;;  %v6299_v24 = vld [vmem:[%s7533_s9 + $0xb0] sm:$0xff]  }
 0x2e3   : > { %4554 = vmatpush1.bf16.msra.mxu1 %v6263_v21  ;;  %5510 = vmatprep.subr.bf16.mxu0 %v6272_v28  ;;  %v6295_v21 = vld [vmem:[%s7533_s9 + $0xa8] sm:$0xff]   ;;  %v6302_v28 = vld [vmem:[%s7533_s9 + $0x38] sm:$0xff]  }
 0x2e4   : > { %4555 = vmatprep.subr.bf16.mxu1 %v6271_v23  ;;  %v6298_v23 = vld [vmem:[%s7533_s9 + $0x30] sm:$0xff]  }
 0x2e7   : > { %4556 = vmatpush1.bf16.msra.mxu1 %v6269_v27  ;;  %v6300_v27 = vld [vmem:[%s7533_s9 + $0x78] sm:$0xff]  }
 0x2e8   : > { %5532 = vmatprep.subr.bf16.mxu1 %v6273_v50  ;;  %v6303_v50 = vld [vmem:[%s7533_s9 + $0xb8] sm:$0xff]  }
 0x31d   : > { %v3764_v59 = vpop.f32.mrb[108].mxu1  ;;  %v3831_v60 = vpop.f32.mrb[100].mxu0 }
 0x31e   : > { %v3832_v61 = vadd.f32 %v3831_v60, %v3764_v59  ;;  %v5948_v0 = vpop.f32.mrb[109].mxu1  ;;  %v5960_v1 = vpop.f32.mrb[101].mxu0 }
 0x31f   : > { %v3767_v30 = vpop.f32.mrb[110].mxu1  ;;  %v3834_v2 = vpop.f32.mrb[102].mxu0  ;;  %v6275_v0 = vld [vmem:[%s7533_s9 + $0x80] sm:$0xff]  }
 0x320   : > { %v5949_v53 = vpop.f32.mrb[111].mxu1  ;;  %v5961_v3 = vpop.f32.mrb[103].mxu0  ;;  %v6276_v30 = vld [vmem:[%s7533_s9 + $0x48] sm:$0xff]  }
 0x321   : > { %v6277_v2 = vld [vmem:[%s7533_s9 + $0xc8] sm:$0xff]  }
 0x322   : > { %v6278_v53 = vld [vmem:[%s7533_s9 + $0x8] sm:$0xff]  }
 0x323   : > { %v6279_v3 = vld [vmem:[%s7533_s9 + $0x88] sm:$0xff]  }
 0x32d   : > { %v3908_v11 = vpop.f32.mrb[112].mxu1 }
 0x32e   : > { %v3914_v15 = vadd.f32 %v3908_v11, %v3832_v61  ;;  %v5972_v16 = vpop.f32.mrb[113].mxu1  ;;  %v6274_v61 = vld [vmem:[%s7533_s9] sm:$0xff]  }
 0x32f   : > { %v3911_v20 = vpop.f32.mrb[114].mxu1  ;;  %v6288_v11 = vld [vmem:[%s7533_s9 + $0x60] sm:$0xff]   ;;  %v6292_v16 = vld [vmem:[%s7533_s9 + $0x68] sm:$0xff]  }
 0x330   : > { %v5973_v22 = vpop.f32.mrb[115].mxu1  ;;  %v6294_v20 = vld [vmem:[%s7533_s9 + $0x28] sm:$0xff]  }
 0x331   : > { %v6296_v22 = vld [vmem:[%s7533_s9 + $0x70] sm:$0xff]  }
 0x35d   : > { %v3986_v32 = vpop.f32.mrb[104].mxu0  ;;  %v4064_v33 = vpop.f32.mrb[116].mxu1 }
 0x35e   : > { %v3992_v34 = vadd.f32 %v3986_v32, %v3914_v15  ;;  %v5984_v35 = vpop.f32.mrb[105].mxu0  ;;  %v5996_v37 = vpop.f32.mrb[117].mxu1  ;;  %v6291_v15 = vld [vmem:[%s7533_s9 + $0xa0] sm:$0xff]   ;;  %v4485_v32 = vlaneseq }
 0x35f   : > { %v3989_v38 = vpop.f32.mrb[106].mxu0  ;;  %v4067_v39 = vpop.f32.mrb[118].mxu1  ;;  %v4403_v37 = vld [vmem:[%s7532_s8] sm:$0xf] }
 0x360   : > { %v4070_v63 = vadd.f32 %v4064_v33, %v3992_v34  ;;  %v5985_v40 = vpop.f32.mrb[107].mxu0  ;;  %v5997_v18 = vpop.f32.mrb[119].mxu1  ;;  %v4486_v33 = vshrl.u32 %v4485_v32, 7 }
 0x362   : > { %v4487_v34 = vsub.s32 0, %v4486_v33  ;;  %v4495_v35 = vsub.s32 2, %v4486_v33  ;;  %v4491_v38 = vsub.s32 1, %v4486_v33  ;;  %v4499_v39 = vsub.s32 3, %v4486_v33 }
 0x364   : > { %v4496_v40 = vrot.slane %v4403_v37, %v4495_v35  ;;  %v4492_v18 = vrot.slane %v4403_v37, %v4491_v38 }
 0x36d   : > { %v4142_v42 = vpop.f32.mrb[108].mxu0 }
 0x36e   : > { %v4148_v17 = vadd.f32 %v4142_v42, %v4070_v63  ;;  %v6008_v43 = vpop.f32.mrb[109].mxu0  ;;  %v4488_v63 = vrot.slane %v4403_v37, %v4487_v34  ;;  %v4500_v42 = vrot.slane %v4403_v37, %v4499_v39 }
 0x36f   : > { %v4145_v44 = vpop.f32.mrb[110].mxu0 }
 0x370   : > { %v6009_v13 = vpop.f32.mrb[111].mxu0 }
 0x39d   : > { %v4220_v46 = vpop.f32.mrb[120].mxu1  ;;  %v4298_v47 = vpop.f32.mrb[112].mxu0 }
 0x39e   : > { %v4226_v48 = vadd.f32 %v4220_v46, %v4148_v17  ;;  %v6020_v49 = vpop.f32.mrb[121].mxu1  ;;  %v6032_v51 = vpop.f32.mrb[113].mxu0 }
 0x39f   : > { %v4223_v52 = vpop.f32.mrb[122].mxu1  ;;  %v4301_v29 = vpop.f32.mrb[114].mxu0 }
 0x3a0   : > { %v4304_v54 = vadd.f32 %v4298_v47, %v4226_v48  ;;  %v6021_v55 = vpop.f32.mrb[123].mxu1  ;;  %v6033_v14 = vpop.f32.mrb[115].mxu0 }
 0x3ad   : > { %v4376_v26 = vpop.f32.mrb[124].mxu1 }
 0x3ae   : > { %v4382_v45 = vadd.f32 %v4376_v26, %v4304_v54  ;;  %v6044_v56 = vpop.f32.mrb[125].mxu1 }
 0x3af   : > { %v4379_v31 = vpop.f32.mrb[126].mxu1 }
 0x3b0   : > { %v4384_v57 = vadd.f32 %v4383_v36, %v4382_v45  ;;  %v6045_v59 = vpop.f32.mrb[127].mxu1 }
 0x3b2   : > { %v4385_v60 = vmax.f32 %v4384_v57, 0.0 }
 0x3b4   : > { %v4386_v1 = vpack.c.bf16 %v4385_v60, %v4385_v60 }
 0x3b6   : > { %5243 = vmatmul.mubr.msk.bf16.vlgmr.msra.gmra.mrb[116].mxu0 %vm3726_vm3, %v4386_v1  ;;  %5244 = vmatmul.mubr.msk.bf16.vlgmr.msra.gmra.mrb[128].mxu1 %vm3726_vm3, %v4386_v1 }
 0x3b7   : > { %5511 = vmatpush3.bf16.msra.mxu0 %v6274_v61  ;;  %5533 = vmatpush3.bf16.msra.mxu1 %v6275_v0  ;;  %v4662_v61 = vld [vmem:[%s7534_s10] sm:$0x1] }
 0x3b8   : > { %5512 = vmatprep.subr.bf16.mxu0 %v6276_v30  ;;  %5534 = vmatprep.subr.bf16.mxu1 %v6277_v2 }
 0x3bb   : > { %5513 = vmatpush3.bf16.msra.mxu0 %v6278_v53  ;;  %5535 = vmatpush3.bf16.msra.mxu1 %v6279_v3 }
 0x3bc   : > { %5514 = vmatprep.subr.bf16.mxu0 %v6280_v4  ;;  %5536 = vmatprep.subr.bf16.mxu1 %v6281_v25 }
 0x3bf   : > { %5515 = vmatpush3.bf16.msra.mxu0 %v6282_v5  ;;  %5537 = vmatpush3.bf16.msra.mxu1 %v6283_v8 }
 0x3c0   : > { %5516 = vmatprep.subr.bf16.mxu0 %v6284_v41  ;;  %5538 = vmatprep.subr.bf16.mxu1 %v6285_v9 }
 0x3c3   : > { %5517 = vmatpush3.bf16.msra.mxu0 %v6286_v10  ;;  %5539 = vmatpush3.bf16.msra.mxu1 %v6287_v62 }
 0x3c4   : > { %5518 = vmatprep.subr.bf16.mxu0 %v6288_v11  ;;  %5540 = vmatprep.subr.bf16.mxu1 %v6289_v58 }
 0x3c7   : > { %5519 = vmatpush3.bf16.msra.mxu0 %v6290_v12  ;;  %5541 = vmatpush3.bf16.msra.mxu1 %v6291_v15 }
 0x3c8   : > { %5520 = vmatprep.subr.bf16.mxu0 %v6292_v16  ;;  %5542 = vmatprep.subr.bf16.mxu1 %v6293_v19 }
 0x3cb   : > { %5521 = vmatpush3.bf16.msra.mxu0 %v6294_v20  ;;  %5543 = vmatpush3.bf16.msra.mxu1 %v6295_v21 }
 0x3cc   : > { %5522 = vmatprep.subr.bf16.mxu0 %v6296_v22  ;;  %5544 = vmatprep.subr.bf16.mxu1 %v6297_v7 }
 0x3cf   : > { %5523 = vmatpush3.bf16.msra.mxu0 %v6298_v23  ;;  %5545 = vmatpush3.bf16.msra.mxu1 %v6299_v24 }
 0x3d0   : > { %5524 = vmatprep.subr.bf16.mxu0 %v6300_v27  ;;  %5546 = vmatprep.subr.bf16.mxu1 %v6301_v6 }
 0x3d3   : > { %5525 = vmatpush3.bf16.msra.mxu0 %v6302_v28  ;;  %5547 = vmatpush3.bf16.msra.mxu1 %v6303_v50 }
 0x489   : > { %v4542_v17 = vpop.f32.mrb[116].mxu0  ;;  %v4583_v43 = vpop.f32.mrb[128].mxu1 }
 0x48a   : > { %v4543_v44 = vadd.f32 %v4542_v17, %v4488_v63  ;;  %v4584_v13 = vadd.f32 %v4583_v43, %v4496_v40  ;;  %v4544_v46 = vpop.f32.mrb[117].mxu0  ;;  %v4585_v47 = vpop.f32.mrb[129].mxu1 }
 0x48b   : > { %v4545_v48 = vadd.f32 %v4544_v46, %v4492_v18  ;;  %v4586_v49 = vadd.f32 %v4585_v47, %v4500_v42  ;;  %v4546_v51 = vpop.f32.mrb[118].mxu0  ;;  %v4587_v52 = vpop.f32.mrb[130].mxu1 }
 0x48c   : > { %v4590_v29 = vmax.f32 %v4543_v44, 0.0  ;;  %v4592_v54 = vmax.f32 %v4584_v13, 0.0  ;;  %v4547_v55 = vpop.f32.mrb[119].mxu0  ;;  %v4588_v14 = vpop.f32.mrb[131].mxu1 }
 0x48d   : > { %v4591_v26 = vmax.f32 %v4545_v48, 0.0  ;;  %v4593_v36 = vmax.f32 %v4586_v49, 0.0 }
 0x48e   : > { %v4594_v31 = vpack.c.bf16 %v4590_v29, %v4590_v29  ;;  %v4596_v57 = vpack.c.bf16 %v4592_v54, %v4592_v54 }
 0x48f   : > { %v4595_v45 = vpack.c.bf16 %v4591_v26, %v4591_v26  ;;  %v4597_v56 = vpack.c.bf16 %v4593_v36, %v4593_v36 }
 0x491   : > { %4887 = vmatprep.mubr.bf16.mxu0 %v4595_v45  ;;  %4927 = vmatprep.mubr.bf16.mxu1 %v4597_v56 }
 0x492   : > { %4888 = vmatmul.mubr.bf16.vlgmr.msra.gmra.mrb[120].mxu0 %v4594_v31  ;;  %4928 = vmatmul.mubr.bf16.vlgmr.msra.gmra.mrb[132].mxu1 %v4596_v57 }
 0x565   : > { %v5526_v59 = vpop.f32.mrb[120].mxu0  ;;  %v5548_v60 = vpop.f32.mrb[132].mxu1 }
 0x566   : > { %v5527_v0 = vpop.f32.mrb[121].mxu0  ;;  %v5549_v1 = vpop.f32.mrb[133].mxu1 }
 0x567   : > { %v5528_v30 = vadd.f32 %v5527_v0, %v5526_v59  ;;  %v5550_v2 = vadd.f32 %v5549_v1, %v5548_v60  ;;  %v5529_v53 = vpop.f32.mrb[122].mxu0  ;;  %v5551_v3 = vpop.f32.mrb[134].mxu1 }
 0x568   : > { %v5530_v4 = vpop.f32.mrb[123].mxu0  ;;  %v5552_v25 = vpop.f32.mrb[135].mxu1 }
 0x569   : > { %v4890_v5 = vadd.f32 %v5528_v30, %v4662_v61 }
 0x56b   : > { %v4930_v8 = vadd.f32 %v5550_v2, %v4890_v5 }
 0x56d   : > { %4935 = vst [vmem:[%s378_s15] sm:$0x1] %v4930_v8 }
 0x56e   : > { %6317 = shalt.err (!%p6314_p3)
}
 0x56f   : > { %s6318_s30 = scalar_lea.hbm %s7482_s26, 16  ;;  %s6322_s16 = scalar_lea.hbm %s7535_s11, 32 }
 0x570   : > { %p6319_p4 = scmp.ne.s32.totalorder %s7482_s26, %s6318_s30  ;;  %p6323_p9 = scmp.lt.u32.totalorder %s7482_s26, %s7535_s11 }
 0x571   : > { %p6324_p10 = scmp.lt.u32.totalorder %s6322_s16, %s6318_s30  ;;  %p6326_p12 = scmp.lt.u32.totalorder %s6318_s30, %s7482_s26 }
 0x572   : > { %p6320_p7 = pnand %p6319_p4, %p6470_p5 }
 0x573   : > { %p6325_p11 = por %p6324_p10, %p6323_p9 }
 0x574   : > { %p6321_p8 = pneg %p6320_p7 }
 0x575   : > { %p6327_p13 = por %p6326_p12, %p6325_p11 }
 0x577   : > { %p6328_p0 = pnand %p6327_p13, %p6321_p8 }
 0x579   : > { %6331 = shalt.err (!%p6328_p0)
}
 0x57a   : > { %6046 = dma.vmem_to_hbm [thread:$0]  (%p6470_p5), %s7484_s12, 16, %s7482_s26, %s4937_s22  }
 0x57b PF: > { %p6052_p1 = scmp.ge.s32.totalorder %s6366_s20, 2  ;;  %s4961_s25 = sand.u32 1, %s6354_s17  }
 0x57c   : > { %s4962_s29 = scalar_lea.sflag [#allocation5], %s4961_s25 }
 0x57d   : > { %p6049_p2 = pnand %p6052_p1, %p6474_p6 }
 0x57f   : > { %6349 = dma.done.wait (!%p6049_p2), %s4962_s29, 16  }
 0x580   : > { %6351 = vsyncadd (!%p6049_p2), %s4962_s29, 4294967280  ;;  %s7539_s13 = sld [smem:[#allocation7_spill]]  ;;  %p21_p3 = scmp.ge.s32.totalorder %s6457_s23, 4  }
 0x581   : > { %s7540_s17 = smov %s6358_s18  ;;  %s7541_s18 = smov %s6362_s19 }
 0x582   : > { %s7543_s20 = smov %s6457_s23  ;;  %23 = sbr.rel (!%p21_p3) target bundleno = 3 (0x3), region = 130 }
 0x586   : > { %s7542_s19 = smov %s7539_s13 }
 0x589   :  { %4966 = vsyncpa [#allocation5], 1 }
 0x58a   :  { %4968 = vsyncpa [#allocation5 + $0x1], 1 }

</bundles_post_ra>
